<compile_context>
chip_gen: v7x
topology: tpu7x:2x2x1
jax: 0.10.0
libtpu: 0.0.40
codegen_flags: <defaults>
</compile_context>

<pallas_src>
import jax
import jax.numpy as jnp
import numpy as np
from jax.experimental import pallas as pl
from jax.experimental.pallas import tpu as pltpu

_CL = 8  # sublane-aligned interior column offset inside the shared padded scratch


def _pad_cols(W):
    # columns actually read are [_CL-1, _CL+W+1); round the buffer width up to 8
    return ((_CL + W + 1 + 7) // 8) * 8


# ---------------------------------------------------------------------------
# Fused decoder kernel
# ---------------------------------------------------------------------------
def _make_decoder_kernel(n_res_layers, H, W, C_h, C_mid, C_outp):
    HW = H * W
    C4 = 4 * C_mid      # conv_stack_2 output: 4 sub-pixel phases stacked on channels
    NPH = 16            # conv_stack_3 output: 4x4 = 16 sub-pixel phases over the HxW base grid

    def kernel(x_ref, wr3_ref, wr1_ref, wt1_ref, bt1_ref,
               wt2_ref, bt2_ref, wt3_ref, bt3_ref,
               o_ref, pad_ref, col_ref):

        def stage(val, C_in, w_ref, b_ref):
            """9-tap im2col + ONE MXU dot.

            val: (H, W, C_in) f32. Stores it into the zero-bordered pad scratch,
            builds the (HW, 9*C_in) im2col tile with 9 shifted-window stores (vst
            slot), then issues a single matmul against the host-packed bf16 weight
            (9*C_in, n_out). Returns the (HW, n_out) f32 pre-activation.
            """
            pad_ref[1:1 + H, _CL:_CL + W, :C_in] = val
            for r in range(3):
                for s in range(3):
                    t = r * 3 + s
                    win = pad_ref[r:r + H, _CL - 1 + s:_CL - 1 + s + W, :C_in]
                    col_ref[:, t * C_in:(t + 1) * C_in] = win.reshape(HW, C_in)
            acc = jnp.dot(col_ref[:, :9 * C_in].astype(jnp.bfloat16), w_ref[...],
                          preferred_element_type=jnp.float32)
            if b_ref is not None:
                acc = acc + b_ref[...]
            return acc

        # Zero the (single, small) pad scratch once per grid step.  Borders are never
        # written afterwards; interiors are fully overwritten before every use.
        pad_ref[...] = jnp.zeros_like(pad_ref)

        x = x_ref[0].astype(jnp.float32)                        # (H, W, C_h)

        # ---- ResidualStack: n weight-shared layers, then ReLU --------------------
        for _ in range(n_res_layers):
            h = jnp.maximum(stage(jnp.maximum(x, 0.0), C_h, wr3_ref, None), 0.0)
            x = x + jnp.dot(h.astype(jnp.bfloat16), wr1_ref[...],
                            preferred_element_type=jnp.float32).reshape(H, W, C_h)
        a = jnp.maximum(x, 0.0)

        # ---- conv_stack_1: ConvTranspose2d(k=3, s=1, p=1) + ReLU -----------------
        b = jnp.maximum(stage(a, C_h, wt1_ref, bt1_ref), 0.0).reshape(H, W, C_h)

        # ---- conv_stack_2: ConvTranspose2d(k=4, s=2, p=1) + ReLU -----------------
        # One dot emits all 4 sub-pixel phases stacked along N; kept in the phase
        # domain (the 2Hx2W interleave is never materialized).
        c_all = jnp.maximum(stage(b, C_h, wt2_ref, bt2_ref), 0.0).reshape(H, W, C4)

        # ---- conv_stack_3: ConvTranspose2d(k=4, s=2, p=1), no activation ---------
        # Consumes c in the phase domain; one dot yields all 16 output phases
        # stacked along N -> a single lane-dense (H, W, 16*C_outp) store.
        d = stage(c_all, C4, wt3_ref, bt3_ref)
        o_ref[0] = d.reshape(H, W, NPH * C_outp).astype(o_ref.dtype)

    return kernel


def decoder_forward(x, p):
    """Fused Pallas decoder forward. x: (N, H, W, h_dim) NHWC latent."""
    N, H, W, C_h = x.shape
    C_res = p["res_w3"].shape[-1]
    C_mid = p["t2_w"].shape[-1]
    C_outp = p["c_outp"]
    in_dim = p["in_dim"]
    C4 = 4 * C_mid
    Cpad = max(C_h, C4)

    kernel = _make_decoder_kernel(p["n_res_layers"], H, W, C_h, C_mid, C_outp)

    out = pl.pallas_call(
        kernel,
        out_shape=jax.ShapeDtypeStruct((N, H, W, 16 * C_outp), x.dtype),
        grid=(N,),
        in_specs=[
            pl.BlockSpec((1, H, W, C_h), lambda n: (n, 0, 0, 0)),
            pl.BlockSpec((9 * C_h, C_res), lambda n: (0, 0)),     # residual 3x3 (packed)
            pl.BlockSpec((C_res, C_h), lambda n: (0, 0)),         # residual 1x1
            pl.BlockSpec((9 * C_h, C_h), lambda n: (0, 0)),       # conv_stack_1 (packed)
            pl.BlockSpec((1, C_h), lambda n: (0, 0)),
            pl.BlockSpec((9 * C_h, C4), lambda n: (0, 0)),        # conv_stack_2 (phase-packed)
            pl.BlockSpec((1, C4), lambda n: (0, 0)),
            pl.BlockSpec((9 * C4, 16 * C_outp), lambda n: (0, 0)),  # conv_stack_3 (phase-packed)
            pl.BlockSpec((1, 16 * C_outp), lambda n: (0, 0)),
        ],
        out_specs=pl.BlockSpec((1, H, W, 16 * C_outp), lambda n: (n, 0, 0, 0)),
        scratch_shapes=[
            pltpu.VMEM((H + 2, _pad_cols(W), Cpad), jnp.float32),  # shared padded activation
            pltpu.VMEM((H * W, 9 * Cpad), jnp.float32),            # shared im2col tile
        ],
        compiler_params=pltpu.CompilerParams(dimension_semantics=("parallel",)),
    )(x, p["k_res_w3"], p["k_res_w1"], p["k_t1_w"], p["k_t1_b"],
      p["k_t2_w"], p["k_t2_b"], p["k_t3_w"], p["k_t3_b"])

    # Un-block the 4x4 sub-pixel phases (cheap XLA-side layout plumbing) and drop the
    # zero-padded output channels.
    y = out.reshape(N, H, W, 4, 4, C_outp).transpose(0, 1, 3, 2, 4, 5)
    return y.reshape(N, 4 * H, 4 * W, C_outp)[..., :in_dim]


# ---------------------------------------------------------------------------
# Parameters: PyTorch layouts -> HWIO reference weights + packed 2-D kernel weights
# ---------------------------------------------------------------------------
def init_decoder_params(key, in_dim, h_dim, n_res_layers, res_h_dim):
    ks = jax.random.split(key, 8)
    s = 0.05
    # PyTorch Conv2d weight: (out, in, kh, kw); ConvTranspose2d weight: (in, out, kh, kw)
    res_w3_pt = s * jax.random.normal(ks[0], (res_h_dim, h_dim, 3, 3), jnp.float32)  # bias=False
    res_w1_pt = s * jax.random.normal(ks[1], (h_dim, res_h_dim, 1, 1), jnp.float32)  # bias=False
    t1_w_pt = s * jax.random.normal(ks[2], (h_dim, h_dim, 3, 3), jnp.float32)
    t1_b = s * jax.random.normal(ks[3], (h_dim,), jnp.float32)
    t2_w_pt = s * jax.random.normal(ks[4], (h_dim, h_dim // 2, 4, 4), jnp.float32)
    t2_b = s * jax.random.normal(ks[5], (h_dim // 2,), jnp.float32)
    t3_w_pt = s * jax.random.normal(ks[6], (h_dim // 2, in_dim, 4, 4), jnp.float32)
    t3_b = s * jax.random.normal(ks[7], (in_dim,), jnp.float32)

    def conv_pt_to_hwio(w):       # Conv2d (out,in,kh,kw) -> (kh,kw,in,out)
        return np.transpose(np.asarray(w), (2, 3, 1, 0))

    def convT_pt_to_hwio(w):      # ConvT (in,out,kh,kw) -> spatially flipped (kh,kw,in,out)
        w = np.asarray(w)
        return np.ascontiguousarray(np.transpose(w[:, :, ::-1, ::-1], (2, 3, 0, 1)))

    res_w3 = conv_pt_to_hwio(res_w3_pt)           # (3,3,h,res_h)
    res_w1 = conv_pt_to_hwio(res_w1_pt)           # (1,1,res_h,h)
    t1_w = convT_pt_to_hwio(t1_w_pt)              # (3,3,h,h)
    t2_w = convT_pt_to_hwio(t2_w_pt)              # (4,4,h,h//2)
    t3_w = convT_pt_to_hwio(t3_w_pt)              # (4,4,h//2,in_dim)

    C_h, C_mid = h_dim, h_dim // 2
    C_outp = ((in_dim + 7) // 8) * 8              # pad so 16*C_outp is a multiple of 128 (lane-dense)

    # Tap-stacked (9*C_in, C_out) weights for the stride-1 3x3 convs (K block = ky*3+kx).
    def pack3x3(w_hwio):
        kh, kw, ci, co = w_hwio.shape
        return w_hwio.reshape(kh * kw * ci, co)

    k_res_w3 = pack3x3(res_w3)                    # (9*C_h, res_h)
    k_t1_w = pack3x3(t1_w)                        # (9*C_h, C_h)

    # conv_stack_2: sub-pixel phases stacked along N, taps along K.
    #   phase (py,px) of ConvT(b) at base (u,v) = sum_{dy,dx} Pb[py+dy+u, px+dx+v] Wf[2dy+py, 2dx+px]
    k_t2_w = np.zeros((9 * C_h, 4 * C_mid), np.float32)
    for py in range(2):
        for px in range(2):
            g = 2 * py + px
            for dy in range(2):
                for dx in range(2):
                    tap = (py + dy) * 3 + (px + dx)
                    k_t2_w[tap * C_h:(tap + 1) * C_h, g * C_mid:(g + 1) * C_mid] = \
                        t2_w[2 * dy + py, 2 * dx + px]
    k_t2_b = np.tile(np.asarray(t2_b), 4)

    # conv_stack_3, consumed in the phase domain over the HxW base grid:
    #   K = 9 window taps x (4 c-phases x C_mid);  N = 16 output phases x C_outp.
    t3_w_pad = np.zeros((4, 4, C_mid, C_outp), np.float32)
    t3_w_pad[..., :in_dim] = t3_w
    # m = (needed c row) - 2*(base row)  ->  (window tap offset rho, input phase py)
    phase_of = {-1: (0, 1), 0: (1, 0), 1: (1, 1), 2: (2, 0)}
    k_t3_w = np.zeros((9 * 4 * C_mid, 16 * C_outp), np.float32)
    for ry in range(4):
        ay, qy = ry // 2, ry % 2
        for rx in range(4):
            bx, qx = rx // 2, rx % 2
            pout = ry * 4 + rx
            for dy in range(2):
                rho, py = phase_of[ay + qy + dy - 1]
                for dx in range(2):
                    sig, px = phase_of[bx + qx + dx - 1]
                    row = (rho * 3 + sig) * (4 * C_mid) + (2 * py + px) * C_mid
                    k_t3_w[row:row + C_mid, pout * C_outp:(pout + 1) * C_outp] = \
                        t3_w_pad[2 * dy + qy, 2 * dx + qx]
    t3_b_pad = np.zeros((C_outp,), np.float32)
    t3_b_pad[:in_dim] = np.asarray(t3_b)
    k_t3_b = np.tile(t3_b_pad, 16)

    bf = jnp.bfloat16
    return dict(
        n_res_layers=n_res_layers, in_dim=in_dim, c_outp=C_outp,
        # f32 HWIO weights for the XLA reference
        res_w3=jnp.asarray(res_w3), res_w1=jnp.asarray(res_w1),
        t1_w=jnp.asarray(t1_w), t1_b=t1_b,
        t2_w=jnp.asarray(t2_w), t2_b=t2_b,
        t3_w=jnp.asarray(t3_w), t3_b=t3_b,
        # kernel-side packed 2-D weights (bf16 MXU operands) and f32 biases
        k_res_w3=jnp.asarray(k_res_w3, bf),
        k_res_w1=jnp.asarray(res_w1[0, 0], bf),
        k_t1_w=jnp.asarray(k_t1_w, bf),
        k_t1_b=jnp.asarray(np.asarray(t1_b).reshape(1, -1), jnp.float32),
        k_t2_w=jnp.asarray(k_t2_w, bf),
        k_t2_b=jnp.asarray(k_t2_b.reshape(1, -1), jnp.float32),
        k_t3_w=jnp.asarray(k_t3_w, bf),
        k_t3_b=jnp.asarray(k_t3_b.reshape(1, -1), jnp.float32),
    )


# ---------------------------------------------------------------------------
# Pure-JAX reference (XLA convs) for correctness check
# ---------------------------------------------------------------------------
def decoder_reference(x, p):
    def conv(x, w, b=None, pad=0, lhs_dil=1):
        out = jax.lax.conv_general_dilated(
            x, w, window_strides=(1, 1),
            padding=((pad, pad), (pad, pad)),
            lhs_dilation=(lhs_dil, lhs_dil),
            dimension_numbers=("NHWC", "HWIO", "NHWC"))
        if b is not None:
            out = out + b
        return out

    for _ in range(p["n_res_layers"]):
        h = jax.nn.relu(conv(jax.nn.relu(x), p["res_w3"], pad=1))
        x = x + conv(h, p["res_w1"])
    x = jax.nn.relu(x)
    b = jax.nn.relu(conv(x, p["t1_w"], p["t1_b"], pad=1))
    c = jax.nn.relu(conv(b, p["t2_w"], p["t2_b"], pad=2, lhs_dil=2))
    d = conv(c, p["t3_w"], p["t3_b"], pad=2, lhs_dil=2)
    return d


if __name__ == "__main__":
    in_dim, h_dim, n_res_layers, res_h_dim = 3, 32, 2, 16
    N, H, W = 2, 8, 8

    key = jax.random.PRNGKey(0)
    kx, kp = jax.random.split(key)
    # latent z in NHWC (PyTorch input would be (N, h_dim, H, W) in NCHW)
    x = jax.random.normal(kx, (N, H, W, h_dim), jnp.float32)
    params = init_decoder_params(kp, in_dim, h_dim, n_res_layers, res_h_dim)

    out = jax.block_until_ready(decoder_forward(x, params))
    assert out.shape == (N, 4 * H, 4 * W, in_dim), out.shape

    ref = decoder_reference(x, params)
    # bf16 MXU operands with f32 accumulation -> loosened tolerance vs the f32 reference
    np.testing.assert_allclose(np.asarray(out), np.asarray(ref), rtol=2e-2, atol=2e-2)
    print("KERNEL_OK")
</pallas_src>

<mosaic_0001>
module attributes {stable_mosaic.version = 11 : i64} {
  func.func @kernel(%arg0: i32, %arg1: memref<1x8x8x32xf32, #tpu.memory_space<vmem>>, %arg2: memref<288x16xbf16, #tpu.memory_space<vmem>>, %arg3: memref<16x32xbf16, #tpu.memory_space<vmem>>, %arg4: memref<288x32xbf16, #tpu.memory_space<vmem>>, %arg5: memref<1x32xf32, #tpu.memory_space<vmem>>, %arg6: memref<288x64xbf16, #tpu.memory_space<vmem>>, %arg7: memref<1x64xf32, #tpu.memory_space<vmem>>, %arg8: memref<576x128xbf16, #tpu.memory_space<vmem>>, %arg9: memref<1x128xf32, #tpu.memory_space<vmem>>, %arg10: memref<1x8x8x128xf32, #tpu.memory_space<vmem>>, %arg11: memref<10x24x64xf32, #tpu.memory_space<vmem>>, %arg12: memref<64x576xf32, #tpu.memory_space<vmem>>) attributes {dimension_semantics = [#tpu.dimension_semantics<parallel>], iteration_bounds = array<i64: 2>, scalar_prefetch = 0 : i64, scratch_operands = 2 : i64, tpu.core_type = #tpu.core_type<tc>, window_params = [{transform_indices = @transform_0, window_bounds = array<i64: 1, 8, 8, 32>}, {pipeline_mode = #tpu.pipeline_mode<synchronous>, transform_indices = @transform_1, window_bounds = array<i64: 288, 16>}, {pipeline_mode = #tpu.pipeline_mode<synchronous>, transform_indices = @transform_2, window_bounds = array<i64: 16, 32>}, {pipeline_mode = #tpu.pipeline_mode<synchronous>, transform_indices = @transform_3, window_bounds = array<i64: 288, 32>}, {pipeline_mode = #tpu.pipeline_mode<synchronous>, transform_indices = @transform_4, window_bounds = array<i64: 1, 32>}, {pipeline_mode = #tpu.pipeline_mode<synchronous>, transform_indices = @transform_5, window_bounds = array<i64: 288, 64>}, {pipeline_mode = #tpu.pipeline_mode<synchronous>, transform_indices = @transform_6, window_bounds = array<i64: 1, 64>}, {pipeline_mode = #tpu.pipeline_mode<synchronous>, transform_indices = @transform_7, window_bounds = array<i64: 576, 128>}, {pipeline_mode = #tpu.pipeline_mode<synchronous>, transform_indices = @transform_8, window_bounds = array<i64: 1, 128>}, {transform_indices = @transform_9, window_bounds = array<i64: 1, 8, 8, 128>}]} {
    %cst = arith.constant 0.000000e+00 : f32
    %0 = vector.broadcast %cst : f32 to vector<10x24x64xf32>
    %c0 = arith.constant 0 : index
    %c0_0 = arith.constant 0 : index
    %c0_1 = arith.constant 0 : index
    %1 = vector.load %arg11[%c0, %c0_0, %c0_1] : memref<10x24x64xf32, #tpu.memory_space<vmem>>, vector<10x24x64xf32>
    tpu.vector_store %arg11[%c0, %c0_0, %c0_1], %0 {strides = array<i32>} : memref<10x24x64xf32, #tpu.memory_space<vmem>>, vector<10x24x64xf32>,
    %c0_2 = arith.constant 0 : index
    %c0_3 = arith.constant 0 : index
    %c0_4 = arith.constant 0 : index
    %c0_5 = arith.constant 0 : index
    %2 = vector.load %arg1[%c0_2, %c0_3, %c0_4, %c0_5] : memref<1x8x8x32xf32, #tpu.memory_space<vmem>>, vector<1x8x8x32xf32>
    %3 = vector.shape_cast %2 : vector<1x8x8x32xf32> to vector<8x8x32xf32>
    %cst_6 = arith.constant 0.000000e+00 : f32
    %4 = vector.broadcast %cst_6 : f32 to vector<8x8x32xf32>
    %5 = arith.maximumf %3, %4 : vector<8x8x32xf32>
    %c1 = arith.constant 1 : index
    %c8 = arith.constant 8 : index
    %c0_7 = arith.constant 0 : index
    %6 = vector.load %arg11[%c1, %c8, %c0_7] : memref<10x24x64xf32, #tpu.memory_space<vmem>>, vector<8x8x32xf32>
    tpu.vector_store %arg11[%c1, %c8, %c0_7], %5 {strides = array<i32>} : memref<10x24x64xf32, #tpu.memory_space<vmem>>, vector<8x8x32xf32>,
    %c0_8 = arith.constant 0 : index
    %c7 = arith.constant 7 : index
    %c0_9 = arith.constant 0 : index
    %7 = vector.load %arg11[%c0_8, %c7, %c0_9] : memref<10x24x64xf32, #tpu.memory_space<vmem>>, vector<8x8x32xf32>
    %8 = vector.shape_cast %7 : vector<8x8x32xf32> to vector<64x32xf32>
    %c0_10 = arith.constant 0 : index
    %c0_11 = arith.constant 0 : index
    %9 = vector.load %arg12[%c0_10, %c0_11] : memref<64x576xf32, #tpu.memory_space<vmem>>, vector<64x32xf32>
    tpu.vector_store %arg12[%c0_10, %c0_11], %8 {strides = array<i32>} : memref<64x576xf32, #tpu.memory_space<vmem>>, vector<64x32xf32>,
    %c0_12 = arith.constant 0 : index
    %c8_13 = arith.constant 8 : index
    %c0_14 = arith.constant 0 : index
    %10 = vector.load %arg11[%c0_12, %c8_13, %c0_14] : memref<10x24x64xf32, #tpu.memory_space<vmem>>, vector<8x8x32xf32>
    %11 = vector.shape_cast %10 : vector<8x8x32xf32> to vector<64x32xf32>
    %c0_15 = arith.constant 0 : index
    %c32 = arith.constant 32 : index
    %12 = vector.load %arg12[%c0_15, %c32] : memref<64x576xf32, #tpu.memory_space<vmem>>, vector<64x32xf32>
    tpu.vector_store %arg12[%c0_15, %c32], %11 {strides = array<i32>} : memref<64x576xf32, #tpu.memory_space<vmem>>, vector<64x32xf32>,
    %c0_16 = arith.constant 0 : index
    %c9 = arith.constant 9 : index
    %c0_17 = arith.constant 0 : index
    %13 = vector.load %arg11[%c0_16, %c9, %c0_17] : memref<10x24x64xf32, #tpu.memory_space<vmem>>, vector<8x8x32xf32>
    %14 = vector.shape_cast %13 : vector<8x8x32xf32> to vector<64x32xf32>
    %c0_18 = arith.constant 0 : index
    %c64 = arith.constant 64 : index
    %15 = vector.load %arg12[%c0_18, %c64] : memref<64x576xf32, #tpu.memory_space<vmem>>, vector<64x32xf32>
    tpu.vector_store %arg12[%c0_18, %c64], %14 {strides = array<i32>} : memref<64x576xf32, #tpu.memory_space<vmem>>, vector<64x32xf32>,
    %c1_19 = arith.constant 1 : index
    %c7_20 = arith.constant 7 : index
    %c0_21 = arith.constant 0 : index
    %16 = vector.load %arg11[%c1_19, %c7_20, %c0_21] : memref<10x24x64xf32, #tpu.memory_space<vmem>>, vector<8x8x32xf32>
    %17 = vector.shape_cast %16 : vector<8x8x32xf32> to vector<64x32xf32>
    %c0_22 = arith.constant 0 : index
    %c96 = arith.constant 96 : index
    %18 = vector.load %arg12[%c0_22, %c96] : memref<64x576xf32, #tpu.memory_space<vmem>>, vector<64x32xf32>
    tpu.vector_store %arg12[%c0_22, %c96], %17 {strides = array<i32>} : memref<64x576xf32, #tpu.memory_space<vmem>>, vector<64x32xf32>,
    %c1_23 = arith.constant 1 : index
    %c8_24 = arith.constant 8 : index
    %c0_25 = arith.constant 0 : index
    %19 = vector.load %arg11[%c1_23, %c8_24, %c0_25] : memref<10x24x64xf32, #tpu.memory_space<vmem>>, vector<8x8x32xf32>
    %20 = vector.shape_cast %19 : vector<8x8x32xf32> to vector<64x32xf32>
    %c0_26 = arith.constant 0 : index
    %c128 = arith.constant 128 : index
    %21 = vector.load %arg12[%c0_26, %c128] : memref<64x576xf32, #tpu.memory_space<vmem>>, vector<64x32xf32>
    tpu.vector_store %arg12[%c0_26, %c128], %20 {strides = array<i32>} : memref<64x576xf32, #tpu.memory_space<vmem>>, vector<64x32xf32>,
    %c1_27 = arith.constant 1 : index
    %c9_28 = arith.constant 9 : index
    %c0_29 = arith.constant 0 : index
    %22 = vector.load %arg11[%c1_27, %c9_28, %c0_29] : memref<10x24x64xf32, #tpu.memory_space<vmem>>, vector<8x8x32xf32>
    %23 = vector.shape_cast %22 : vector<8x8x32xf32> to vector<64x32xf32>
    %c0_30 = arith.constant 0 : index
    %c160 = arith.constant 160 : index
    %24 = vector.load %arg12[%c0_30, %c160] : memref<64x576xf32, #tpu.memory_space<vmem>>, vector<64x32xf32>
    tpu.vector_store %arg12[%c0_30, %c160], %23 {strides = array<i32>} : memref<64x576xf32, #tpu.memory_space<vmem>>, vector<64x32xf32>,
    %c2 = arith.constant 2 : index
    %c7_31 = arith.constant 7 : index
    %c0_32 = arith.constant 0 : index
    %25 = vector.load %arg11[%c2, %c7_31, %c0_32] : memref<10x24x64xf32, #tpu.memory_space<vmem>>, vector<8x8x32xf32>
    %26 = vector.shape_cast %25 : vector<8x8x32xf32> to vector<64x32xf32>
    %c0_33 = arith.constant 0 : index
    %c192 = arith.constant 192 : index
    %27 = vector.load %arg12[%c0_33, %c192] : memref<64x576xf32, #tpu.memory_space<vmem>>, vector<64x32xf32>
    tpu.vector_store %arg12[%c0_33, %c192], %26 {strides = array<i32>} : memref<64x576xf32, #tpu.memory_space<vmem>>, vector<64x32xf32>,
    %c2_34 = arith.constant 2 : index
    %c8_35 = arith.constant 8 : index
    %c0_36 = arith.constant 0 : index
    %28 = vector.load %arg11[%c2_34, %c8_35, %c0_36] : memref<10x24x64xf32, #tpu.memory_space<vmem>>, vector<8x8x32xf32>
    %29 = vector.shape_cast %28 : vector<8x8x32xf32> to vector<64x32xf32>
    %c0_37 = arith.constant 0 : index
    %c224 = arith.constant 224 : index
    %30 = vector.load %arg12[%c0_37, %c224] : memref<64x576xf32, #tpu.memory_space<vmem>>, vector<64x32xf32>
    tpu.vector_store %arg12[%c0_37, %c224], %29 {strides = array<i32>} : memref<64x576xf32, #tpu.memory_space<vmem>>, vector<64x32xf32>,
    %c2_38 = arith.constant 2 : index
    %c9_39 = arith.constant 9 : index
    %c0_40 = arith.constant 0 : index
    %31 = vector.load %arg11[%c2_38, %c9_39, %c0_40] : memref<10x24x64xf32, #tpu.memory_space<vmem>>, vector<8x8x32xf32>
    %32 = vector.shape_cast %31 : vector<8x8x32xf32> to vector<64x32xf32>
    %c0_41 = arith.constant 0 : index
    %c256 = arith.constant 256 : index
    %33 = vector.load %arg12[%c0_41, %c256] : memref<64x576xf32, #tpu.memory_space<vmem>>, vector<64x32xf32>
    tpu.vector_store %arg12[%c0_41, %c256], %32 {strides = array<i32>} : memref<64x576xf32, #tpu.memory_space<vmem>>, vector<64x32xf32>,
    %c0_42 = arith.constant 0 : index
    %c0_43 = arith.constant 0 : index
    %34 = vector.load %arg12[%c0_42, %c0_43] : memref<64x576xf32, #tpu.memory_space<vmem>>, vector<64x288xf32>
    %35 = arith.truncf %34 : vector<64x288xf32> to vector<64x288xbf16>
    %c0_44 = arith.constant 0 : index
    %c0_45 = arith.constant 0 : index
    %36 = vector.load %arg2[%c0_44, %c0_45] : memref<288x16xbf16, #tpu.memory_space<vmem>>, vector<288x16xbf16>
    %cst_46 = arith.constant dense<0.000000e+00> : vector<64x16xf32>
    %37 = tpu.matmul %35, %36, %cst_46 {dimension_numbers = #tpu.dot_dimension_numbers<[1], [0], [0], [1], [0, 0, 1, 1], [], []>} : vector<64x288xbf16>, vector<288x16xbf16>, vector<64x16xf32> -> vector<64x16xf32>
    %cst_47 = arith.constant 0.000000e+00 : f32
    %38 = vector.broadcast %cst_47 : f32 to vector<64x16xf32>
    %39 = arith.maximumf %37, %38 : vector<64x16xf32>
    %40 = arith.truncf %39 : vector<64x16xf32> to vector<64x16xbf16>
    %c0_48 = arith.constant 0 : index
    %c0_49 = arith.constant 0 : index
    %41 = vector.load %arg3[%c0_48, %c0_49] : memref<16x32xbf16, #tpu.memory_space<vmem>>, vector<16x32xbf16>
    %cst_50 = arith.constant dense<0.000000e+00> : vector<64x32xf32>
    %42 = tpu.matmul %40, %41, %cst_50 {dimension_numbers = #tpu.dot_dimension_numbers<[1], [0], [0], [1], [0, 0, 1, 1], [], []>} : vector<64x16xbf16>, vector<16x32xbf16>, vector<64x32xf32> -> vector<64x32xf32>
    %43 = vector.shape_cast %42 : vector<64x32xf32> to vector<8x8x32xf32>
    %44 = arith.addf %3, %43 : vector<8x8x32xf32>
    %cst_51 = arith.constant 0.000000e+00 : f32
    %45 = vector.broadcast %cst_51 : f32 to vector<8x8x32xf32>
    %46 = arith.maximumf %44, %45 : vector<8x8x32xf32>
    %c1_52 = arith.constant 1 : index
    %c8_53 = arith.constant 8 : index
    %c0_54 = arith.constant 0 : index
    %47 = vector.load %arg11[%c1_52, %c8_53, %c0_54] : memref<10x24x64xf32, #tpu.memory_space<vmem>>, vector<8x8x32xf32>
    tpu.vector_store %arg11[%c1_52, %c8_53, %c0_54], %46 {strides = array<i32>} : memref<10x24x64xf32, #tpu.memory_space<vmem>>, vector<8x8x32xf32>,
    %c0_55 = arith.constant 0 : index
    %c7_56 = arith.constant 7 : index
    %c0_57 = arith.constant 0 : index
    %48 = vector.load %arg11[%c0_55, %c7_56, %c0_57] : memref<10x24x64xf32, #tpu.memory_space<vmem>>, vector<8x8x32xf32>
    %49 = vector.shape_cast %48 : vector<8x8x32xf32> to vector<64x32xf32>
    %c0_58 = arith.constant 0 : index
    %c0_59 = arith.constant 0 : index
    %50 = vector.load %arg12[%c0_58, %c0_59] : memref<64x576xf32, #tpu.memory_space<vmem>>, vector<64x32xf32>
    tpu.vector_store %arg12[%c0_58, %c0_59], %49 {strides = array<i32>} : memref<64x576xf32, #tpu.memory_space<vmem>>, vector<64x32xf32>,
    %c0_60 = arith.constant 0 : index
    %c8_61 = arith.constant 8 : index
    %c0_62 = arith.constant 0 : index
    %51 = vector.load %arg11[%c0_60, %c8_61, %c0_62] : memref<10x24x64xf32, #tpu.memory_space<vmem>>, vector<8x8x32xf32>
    %52 = vector.shape_cast %51 : vector<8x8x32xf32> to vector<64x32xf32>
    %c0_63 = arith.constant 0 : index
    %c32_64 = arith.constant 32 : index
    %53 = vector.load %arg12[%c0_63, %c32_64] : memref<64x576xf32, #tpu.memory_space<vmem>>, vector<64x32xf32>
    tpu.vector_store %arg12[%c0_63, %c32_64], %52 {strides = array<i32>} : memref<64x576xf32, #tpu.memory_space<vmem>>, vector<64x32xf32>,
    %c0_65 = arith.constant 0 : index
    %c9_66 = arith.constant 9 : index
    %c0_67 = arith.constant 0 : index
    %54 = vector.load %arg11[%c0_65, %c9_66, %c0_67] : memref<10x24x64xf32, #tpu.memory_space<vmem>>, vector<8x8x32xf32>
    %55 = vector.shape_cast %54 : vector<8x8x32xf32> to vector<64x32xf32>
    %c0_68 = arith.constant 0 : index
    %c64_69 = arith.constant 64 : index
    %56 = vector.load %arg12[%c0_68, %c64_69] : memref<64x576xf32, #tpu.memory_space<vmem>>, vector<64x32xf32>
    tpu.vector_store %arg12[%c0_68, %c64_69], %55 {strides = array<i32>} : memref<64x576xf32, #tpu.memory_space<vmem>>, vector<64x32xf32>,
    %c1_70 = arith.constant 1 : index
    %c7_71 = arith.constant 7 : index
    %c0_72 = arith.constant 0 : index
    %57 = vector.load %arg11[%c1_70, %c7_71, %c0_72] : memref<10x24x64xf32, #tpu.memory_space<vmem>>, vector<8x8x32xf32>
    %58 = vector.shape_cast %57 : vector<8x8x32xf32> to vector<64x32xf32>
    %c0_73 = arith.constant 0 : index
    %c96_74 = arith.constant 96 : index
    %59 = vector.load %arg12[%c0_73, %c96_74] : memref<64x576xf32, #tpu.memory_space<vmem>>, vector<64x32xf32>
    tpu.vector_store %arg12[%c0_73, %c96_74], %58 {strides = array<i32>} : memref<64x576xf32, #tpu.memory_space<vmem>>, vector<64x32xf32>,
    %c1_75 = arith.constant 1 : index
    %c8_76 = arith.constant 8 : index
    %c0_77 = arith.constant 0 : index
    %60 = vector.load %arg11[%c1_75, %c8_76, %c0_77] : memref<10x24x64xf32, #tpu.memory_space<vmem>>, vector<8x8x32xf32>
    %61 = vector.shape_cast %60 : vector<8x8x32xf32> to vector<64x32xf32>
    %c0_78 = arith.constant 0 : index
    %c128_79 = arith.constant 128 : index
    %62 = vector.load %arg12[%c0_78, %c128_79] : memref<64x576xf32, #tpu.memory_space<vmem>>, vector<64x32xf32>
    tpu.vector_store %arg12[%c0_78, %c128_79], %61 {strides = array<i32>} : memref<64x576xf32, #tpu.memory_space<vmem>>, vector<64x32xf32>,
    %c1_80 = arith.constant 1 : index
    %c9_81 = arith.constant 9 : index
    %c0_82 = arith.constant 0 : index
    %63 = vector.load %arg11[%c1_80, %c9_81, %c0_82] : memref<10x24x64xf32, #tpu.memory_space<vmem>>, vector<8x8x32xf32>
    %64 = vector.shape_cast %63 : vector<8x8x32xf32> to vector<64x32xf32>
    %c0_83 = arith.constant 0 : index
    %c160_84 = arith.constant 160 : index
    %65 = vector.load %arg12[%c0_83, %c160_84] : memref<64x576xf32, #tpu.memory_space<vmem>>, vector<64x32xf32>
    tpu.vector_store %arg12[%c0_83, %c160_84], %64 {strides = array<i32>} : memref<64x576xf32, #tpu.memory_space<vmem>>, vector<64x32xf32>,
    %c2_85 = arith.constant 2 : index
    %c7_86 = arith.constant 7 : index
    %c0_87 = arith.constant 0 : index
    %66 = vector.load %arg11[%c2_85, %c7_86, %c0_87] : memref<10x24x64xf32, #tpu.memory_space<vmem>>, vector<8x8x32xf32>
    %67 = vector.shape_cast %66 : vector<8x8x32xf32> to vector<64x32xf32>
    %c0_88 = arith.constant 0 : index
    %c192_89 = arith.constant 192 : index
    %68 = vector.load %arg12[%c0_88, %c192_89] : memref<64x576xf32, #tpu.memory_space<vmem>>, vector<64x32xf32>
    tpu.vector_store %arg12[%c0_88, %c192_89], %67 {strides = array<i32>} : memref<64x576xf32, #tpu.memory_space<vmem>>, vector<64x32xf32>,
    %c2_90 = arith.constant 2 : index
    %c8_91 = arith.constant 8 : index
    %c0_92 = arith.constant 0 : index
    %69 = vector.load %arg11[%c2_90, %c8_91, %c0_92] : memref<10x24x64xf32, #tpu.memory_space<vmem>>, vector<8x8x32xf32>
    %70 = vector.shape_cast %69 : vector<8x8x32xf32> to vector<64x32xf32>
    %c0_93 = arith.constant 0 : index
    %c224_94 = arith.constant 224 : index
    %71 = vector.load %arg12[%c0_93, %c224_94] : memref<64x576xf32, #tpu.memory_space<vmem>>, vector<64x32xf32>
    tpu.vector_store %arg12[%c0_93, %c224_94], %70 {strides = array<i32>} : memref<64x576xf32, #tpu.memory_space<vmem>>, vector<64x32xf32>,
    %c2_95 = arith.constant 2 : index
    %c9_96 = arith.constant 9 : index
    %c0_97 = arith.constant 0 : index
    %72 = vector.load %arg11[%c2_95, %c9_96, %c0_97] : memref<10x24x64xf32, #tpu.memory_space<vmem>>, vector<8x8x32xf32>
    %73 = vector.shape_cast %72 : vector<8x8x32xf32> to vector<64x32xf32>
    %c0_98 = arith.constant 0 : index
    %c256_99 = arith.constant 256 : index
    %74 = vector.load %arg12[%c0_98, %c256_99] : memref<64x576xf32, #tpu.memory_space<vmem>>, vector<64x32xf32>
    tpu.vector_store %arg12[%c0_98, %c256_99], %73 {strides = array<i32>} : memref<64x576xf32, #tpu.memory_space<vmem>>, vector<64x32xf32>,
    %c0_100 = arith.constant 0 : index
    %c0_101 = arith.constant 0 : index
    %75 = vector.load %arg12[%c0_100, %c0_101] : memref<64x576xf32, #tpu.memory_space<vmem>>, vector<64x288xf32>
    %76 = arith.truncf %75 : vector<64x288xf32> to vector<64x288xbf16>
    %c0_102 = arith.constant 0 : index
    %c0_103 = arith.constant 0 : index
    %77 = vector.load %arg2[%c0_102, %c0_103] : memref<288x16xbf16, #tpu.memory_space<vmem>>, vector<288x16xbf16>
    %cst_104 = arith.constant dense<0.000000e+00> : vector<64x16xf32>
    %78 = tpu.matmul %76, %77, %cst_104 {dimension_numbers = #tpu.dot_dimension_numbers<[1], [0], [0], [1], [0, 0, 1, 1], [], []>} : vector<64x288xbf16>, vector<288x16xbf16>, vector<64x16xf32> -> vector<64x16xf32>
    %cst_105 = arith.constant 0.000000e+00 : f32
    %79 = vector.broadcast %cst_105 : f32 to vector<64x16xf32>
    %80 = arith.maximumf %78, %79 : vector<64x16xf32>
    %81 = arith.truncf %80 : vector<64x16xf32> to vector<64x16xbf16>
    %c0_106 = arith.constant 0 : index
    %c0_107 = arith.constant 0 : index
    %82 = vector.load %arg3[%c0_106, %c0_107] : memref<16x32xbf16, #tpu.memory_space<vmem>>, vector<16x32xbf16>
    %cst_108 = arith.constant dense<0.000000e+00> : vector<64x32xf32>
    %83 = tpu.matmul %81, %82, %cst_108 {dimension_numbers = #tpu.dot_dimension_numbers<[1], [0], [0], [1], [0, 0, 1, 1], [], []>} : vector<64x16xbf16>, vector<16x32xbf16>, vector<64x32xf32> -> vector<64x32xf32>
    %84 = vector.shape_cast %83 : vector<64x32xf32> to vector<8x8x32xf32>
    %85 = arith.addf %44, %84 : vector<8x8x32xf32>
    %cst_109 = arith.constant 0.000000e+00 : f32
    %86 = vector.broadcast %cst_109 : f32 to vector<8x8x32xf32>
    %87 = arith.maximumf %85, %86 : vector<8x8x32xf32>
    %c1_110 = arith.constant 1 : index
    %c8_111 = arith.constant 8 : index
    %c0_112 = arith.constant 0 : index
    %88 = vector.load %arg11[%c1_110, %c8_111, %c0_112] : memref<10x24x64xf32, #tpu.memory_space<vmem>>, vector<8x8x32xf32>
    tpu.vector_store %arg11[%c1_110, %c8_111, %c0_112], %87 {strides = array<i32>} : memref<10x24x64xf32, #tpu.memory_space<vmem>>, vector<8x8x32xf32>,
    %c0_113 = arith.constant 0 : index
    %c7_114 = arith.constant 7 : index
    %c0_115 = arith.constant 0 : index
    %89 = vector.load %arg11[%c0_113, %c7_114, %c0_115] : memref<10x24x64xf32, #tpu.memory_space<vmem>>, vector<8x8x32xf32>
    %90 = vector.shape_cast %89 : vector<8x8x32xf32> to vector<64x32xf32>
    %c0_116 = arith.constant 0 : index
    %c0_117 = arith.constant 0 : index
    %91 = vector.load %arg12[%c0_116, %c0_117] : memref<64x576xf32, #tpu.memory_space<vmem>>, vector<64x32xf32>
    tpu.vector_store %arg12[%c0_116, %c0_117], %90 {strides = array<i32>} : memref<64x576xf32, #tpu.memory_space<vmem>>, vector<64x32xf32>,
    %c0_118 = arith.constant 0 : index
    %c8_119 = arith.constant 8 : index
    %c0_120 = arith.constant 0 : index
    %92 = vector.load %arg11[%c0_118, %c8_119, %c0_120] : memref<10x24x64xf32, #tpu.memory_space<vmem>>, vector<8x8x32xf32>
    %93 = vector.shape_cast %92 : vector<8x8x32xf32> to vector<64x32xf32>
    %c0_121 = arith.constant 0 : index
    %c32_122 = arith.constant 32 : index
    %94 = vector.load %arg12[%c0_121, %c32_122] : memref<64x576xf32, #tpu.memory_space<vmem>>, vector<64x32xf32>
    tpu.vector_store %arg12[%c0_121, %c32_122], %93 {strides = array<i32>} : memref<64x576xf32, #tpu.memory_space<vmem>>, vector<64x32xf32>,
    %c0_123 = arith.constant 0 : index
    %c9_124 = arith.constant 9 : index
    %c0_125 = arith.constant 0 : index
    %95 = vector.load %arg11[%c0_123, %c9_124, %c0_125] : memref<10x24x64xf32, #tpu.memory_space<vmem>>, vector<8x8x32xf32>
    %96 = vector.shape_cast %95 : vector<8x8x32xf32> to vector<64x32xf32>
    %c0_126 = arith.constant 0 : index
    %c64_127 = arith.constant 64 : index
    %97 = vector.load %arg12[%c0_126, %c64_127] : memref<64x576xf32, #tpu.memory_space<vmem>>, vector<64x32xf32>
    tpu.vector_store %arg12[%c0_126, %c64_127], %96 {strides = array<i32>} : memref<64x576xf32, #tpu.memory_space<vmem>>, vector<64x32xf32>,
    %c1_128 = arith.constant 1 : index
    %c7_129 = arith.constant 7 : index
    %c0_130 = arith.constant 0 : index
    %98 = vector.load %arg11[%c1_128, %c7_129, %c0_130] : memref<10x24x64xf32, #tpu.memory_space<vmem>>, vector<8x8x32xf32>
    %99 = vector.shape_cast %98 : vector<8x8x32xf32> to vector<64x32xf32>
    %c0_131 = arith.constant 0 : index
    %c96_132 = arith.constant 96 : index
    %100 = vector.load %arg12[%c0_131, %c96_132] : memref<64x576xf32, #tpu.memory_space<vmem>>, vector<64x32xf32>
    tpu.vector_store %arg12[%c0_131, %c96_132], %99 {strides = array<i32>} : memref<64x576xf32, #tpu.memory_space<vmem>>, vector<64x32xf32>,
    %c1_133 = arith.constant 1 : index
    %c8_134 = arith.constant 8 : index
    %c0_135 = arith.constant 0 : index
    %101 = vector.load %arg11[%c1_133, %c8_134, %c0_135] : memref<10x24x64xf32, #tpu.memory_space<vmem>>, vector<8x8x32xf32>
    %102 = vector.shape_cast %101 : vector<8x8x32xf32> to vector<64x32xf32>
    %c0_136 = arith.constant 0 : index
    %c128_137 = arith.constant 128 : index
    %103 = vector.load %arg12[%c0_136, %c128_137] : memref<64x576xf32, #tpu.memory_space<vmem>>, vector<64x32xf32>
    tpu.vector_store %arg12[%c0_136, %c128_137], %102 {strides = array<i32>} : memref<64x576xf32, #tpu.memory_space<vmem>>, vector<64x32xf32>,
    %c1_138 = arith.constant 1 : index
    %c9_139 = arith.constant 9 : index
    %c0_140 = arith.constant 0 : index
    %104 = vector.load %arg11[%c1_138, %c9_139, %c0_140] : memref<10x24x64xf32, #tpu.memory_space<vmem>>, vector<8x8x32xf32>
    %105 = vector.shape_cast %104 : vector<8x8x32xf32> to vector<64x32xf32>
    %c0_141 = arith.constant 0 : index
    %c160_142 = arith.constant 160 : index
    %106 = vector.load %arg12[%c0_141, %c160_142] : memref<64x576xf32, #tpu.memory_space<vmem>>, vector<64x32xf32>
    tpu.vector_store %arg12[%c0_141, %c160_142], %105 {strides = array<i32>} : memref<64x576xf32, #tpu.memory_space<vmem>>, vector<64x32xf32>,
    %c2_143 = arith.constant 2 : index
    %c7_144 = arith.constant 7 : index
    %c0_145 = arith.constant 0 : index
    %107 = vector.load %arg11[%c2_143, %c7_144, %c0_145] : memref<10x24x64xf32, #tpu.memory_space<vmem>>, vector<8x8x32xf32>
    %108 = vector.shape_cast %107 : vector<8x8x32xf32> to vector<64x32xf32>
    %c0_146 = arith.constant 0 : index
    %c192_147 = arith.constant 192 : index
    %109 = vector.load %arg12[%c0_146, %c192_147] : memref<64x576xf32, #tpu.memory_space<vmem>>, vector<64x32xf32>
    tpu.vector_store %arg12[%c0_146, %c192_147], %108 {strides = array<i32>} : memref<64x576xf32, #tpu.memory_space<vmem>>, vector<64x32xf32>,
    %c2_148 = arith.constant 2 : index
    %c8_149 = arith.constant 8 : index
    %c0_150 = arith.constant 0 : index
    %110 = vector.load %arg11[%c2_148, %c8_149, %c0_150] : memref<10x24x64xf32, #tpu.memory_space<vmem>>, vector<8x8x32xf32>
    %111 = vector.shape_cast %110 : vector<8x8x32xf32> to vector<64x32xf32>
    %c0_151 = arith.constant 0 : index
    %c224_152 = arith.constant 224 : index
    %112 = vector.load %arg12[%c0_151, %c224_152] : memref<64x576xf32, #tpu.memory_space<vmem>>, vector<64x32xf32>
    tpu.vector_store %arg12[%c0_151, %c224_152], %111 {strides = array<i32>} : memref<64x576xf32, #tpu.memory_space<vmem>>, vector<64x32xf32>,
    %c2_153 = arith.constant 2 : index
    %c9_154 = arith.constant 9 : index
    %c0_155 = arith.constant 0 : index
    %113 = vector.load %arg11[%c2_153, %c9_154, %c0_155] : memref<10x24x64xf32, #tpu.memory_space<vmem>>, vector<8x8x32xf32>
    %114 = vector.shape_cast %113 : vector<8x8x32xf32> to vector<64x32xf32>
    %c0_156 = arith.constant 0 : index
    %c256_157 = arith.constant 256 : index
    %115 = vector.load %arg12[%c0_156, %c256_157] : memref<64x576xf32, #tpu.memory_space<vmem>>, vector<64x32xf32>
    tpu.vector_store %arg12[%c0_156, %c256_157], %114 {strides = array<i32>} : memref<64x576xf32, #tpu.memory_space<vmem>>, vector<64x32xf32>,
    %c0_158 = arith.constant 0 : index
    %c0_159 = arith.constant 0 : index
    %116 = vector.load %arg12[%c0_158, %c0_159] : memref<64x576xf32, #tpu.memory_space<vmem>>, vector<64x288xf32>
    %117 = arith.truncf %116 : vector<64x288xf32> to vector<64x288xbf16>
    %c0_160 = arith.constant 0 : index
    %c0_161 = arith.constant 0 : index
    %118 = vector.load %arg4[%c0_160, %c0_161] : memref<288x32xbf16, #tpu.memory_space<vmem>>, vector<288x32xbf16>
    %cst_162 = arith.constant dense<0.000000e+00> : vector<64x32xf32>
    %119 = tpu.matmul %117, %118, %cst_162 {dimension_numbers = #tpu.dot_dimension_numbers<[1], [0], [0], [1], [0, 0, 1, 1], [], []>} : vector<64x288xbf16>, vector<288x32xbf16>, vector<64x32xf32> -> vector<64x32xf32>
    %c0_163 = arith.constant 0 : index
    %c0_164 = arith.constant 0 : index
    %120 = vector.load %arg5[%c0_163, %c0_164] : memref<1x32xf32, #tpu.memory_space<vmem>>, vector<1x32xf32>
    %121 = vector.broadcast %120 : vector<1x32xf32> to vector<64x32xf32>
    %122 = arith.addf %119, %121 : vector<64x32xf32>
    %cst_165 = arith.constant 0.000000e+00 : f32
    %123 = vector.broadcast %cst_165 : f32 to vector<64x32xf32>
    %124 = arith.maximumf %122, %123 : vector<64x32xf32>
    %125 = vector.shape_cast %124 : vector<64x32xf32> to vector<8x8x32xf32>
    %c1_166 = arith.constant 1 : index
    %c8_167 = arith.constant 8 : index
    %c0_168 = arith.constant 0 : index
    %126 = vector.load %arg11[%c1_166, %c8_167, %c0_168] : memref<10x24x64xf32, #tpu.memory_space<vmem>>, vector<8x8x32xf32>
    tpu.vector_store %arg11[%c1_166, %c8_167, %c0_168], %125 {strides = array<i32>} : memref<10x24x64xf32, #tpu.memory_space<vmem>>, vector<8x8x32xf32>,
    %c0_169 = arith.constant 0 : index
    %c7_170 = arith.constant 7 : index
    %c0_171 = arith.constant 0 : index
    %127 = vector.load %arg11[%c0_169, %c7_170, %c0_171] : memref<10x24x64xf32, #tpu.memory_space<vmem>>, vector<8x8x32xf32>
    %128 = vector.shape_cast %127 : vector<8x8x32xf32> to vector<64x32xf32>
    %c0_172 = arith.constant 0 : index
    %c0_173 = arith.constant 0 : index
    %129 = vector.load %arg12[%c0_172, %c0_173] : memref<64x576xf32, #tpu.memory_space<vmem>>, vector<64x32xf32>
    tpu.vector_store %arg12[%c0_172, %c0_173], %128 {strides = array<i32>} : memref<64x576xf32, #tpu.memory_space<vmem>>, vector<64x32xf32>,
    %c0_174 = arith.constant 0 : index
    %c8_175 = arith.constant 8 : index
    %c0_176 = arith.constant 0 : index
    %130 = vector.load %arg11[%c0_174, %c8_175, %c0_176] : memref<10x24x64xf32, #tpu.memory_space<vmem>>, vector<8x8x32xf32>
    %131 = vector.shape_cast %130 : vector<8x8x32xf32> to vector<64x32xf32>
    %c0_177 = arith.constant 0 : index
    %c32_178 = arith.constant 32 : index
    %132 = vector.load %arg12[%c0_177, %c32_178] : memref<64x576xf32, #tpu.memory_space<vmem>>, vector<64x32xf32>
    tpu.vector_store %arg12[%c0_177, %c32_178], %131 {strides = array<i32>} : memref<64x576xf32, #tpu.memory_space<vmem>>, vector<64x32xf32>,
    %c0_179 = arith.constant 0 : index
    %c9_180 = arith.constant 9 : index
    %c0_181 = arith.constant 0 : index
    %133 = vector.load %arg11[%c0_179, %c9_180, %c0_181] : memref<10x24x64xf32, #tpu.memory_space<vmem>>, vector<8x8x32xf32>
    %134 = vector.shape_cast %133 : vector<8x8x32xf32> to vector<64x32xf32>
    %c0_182 = arith.constant 0 : index
    %c64_183 = arith.constant 64 : index
    %135 = vector.load %arg12[%c0_182, %c64_183] : memref<64x576xf32, #tpu.memory_space<vmem>>, vector<64x32xf32>
    tpu.vector_store %arg12[%c0_182, %c64_183], %134 {strides = array<i32>} : memref<64x576xf32, #tpu.memory_space<vmem>>, vector<64x32xf32>,
    %c1_184 = arith.constant 1 : index
    %c7_185 = arith.constant 7 : index
    %c0_186 = arith.constant 0 : index
    %136 = vector.load %arg11[%c1_184, %c7_185, %c0_186] : memref<10x24x64xf32, #tpu.memory_space<vmem>>, vector<8x8x32xf32>
    %137 = vector.shape_cast %136 : vector<8x8x32xf32> to vector<64x32xf32>
    %c0_187 = arith.constant 0 : index
    %c96_188 = arith.constant 96 : index
    %138 = vector.load %arg12[%c0_187, %c96_188] : memref<64x576xf32, #tpu.memory_space<vmem>>, vector<64x32xf32>
    tpu.vector_store %arg12[%c0_187, %c96_188], %137 {strides = array<i32>} : memref<64x576xf32, #tpu.memory_space<vmem>>, vector<64x32xf32>,
    %c1_189 = arith.constant 1 : index
    %c8_190 = arith.constant 8 : index
    %c0_191 = arith.constant 0 : index
    %139 = vector.load %arg11[%c1_189, %c8_190, %c0_191] : memref<10x24x64xf32, #tpu.memory_space<vmem>>, vector<8x8x32xf32>
    %140 = vector.shape_cast %139 : vector<8x8x32xf32> to vector<64x32xf32>
    %c0_192 = arith.constant 0 : index
    %c128_193 = arith.constant 128 : index
    %141 = vector.load %arg12[%c0_192, %c128_193] : memref<64x576xf32, #tpu.memory_space<vmem>>, vector<64x32xf32>
    tpu.vector_store %arg12[%c0_192, %c128_193], %140 {strides = array<i32>} : memref<64x576xf32, #tpu.memory_space<vmem>>, vector<64x32xf32>,
    %c1_194 = arith.constant 1 : index
    %c9_195 = arith.constant 9 : index
    %c0_196 = arith.constant 0 : index
    %142 = vector.load %arg11[%c1_194, %c9_195, %c0_196] : memref<10x24x64xf32, #tpu.memory_space<vmem>>, vector<8x8x32xf32>
    %143 = vector.shape_cast %142 : vector<8x8x32xf32> to vector<64x32xf32>
    %c0_197 = arith.constant 0 : index
    %c160_198 = arith.constant 160 : index
    %144 = vector.load %arg12[%c0_197, %c160_198] : memref<64x576xf32, #tpu.memory_space<vmem>>, vector<64x32xf32>
    tpu.vector_store %arg12[%c0_197, %c160_198], %143 {strides = array<i32>} : memref<64x576xf32, #tpu.memory_space<vmem>>, vector<64x32xf32>,
    %c2_199 = arith.constant 2 : index
    %c7_200 = arith.constant 7 : index
    %c0_201 = arith.constant 0 : index
    %145 = vector.load %arg11[%c2_199, %c7_200, %c0_201] : memref<10x24x64xf32, #tpu.memory_space<vmem>>, vector<8x8x32xf32>
    %146 = vector.shape_cast %145 : vector<8x8x32xf32> to vector<64x32xf32>
    %c0_202 = arith.constant 0 : index
    %c192_203 = arith.constant 192 : index
    %147 = vector.load %arg12[%c0_202, %c192_203] : memref<64x576xf32, #tpu.memory_space<vmem>>, vector<64x32xf32>
    tpu.vector_store %arg12[%c0_202, %c192_203], %146 {strides = array<i32>} : memref<64x576xf32, #tpu.memory_space<vmem>>, vector<64x32xf32>,
    %c2_204 = arith.constant 2 : index
    %c8_205 = arith.constant 8 : index
    %c0_206 = arith.constant 0 : index
    %148 = vector.load %arg11[%c2_204, %c8_205, %c0_206] : memref<10x24x64xf32, #tpu.memory_space<vmem>>, vector<8x8x32xf32>
    %149 = vector.shape_cast %148 : vector<8x8x32xf32> to vector<64x32xf32>
    %c0_207 = arith.constant 0 : index
    %c224_208 = arith.constant 224 : index
    %150 = vector.load %arg12[%c0_207, %c224_208] : memref<64x576xf32, #tpu.memory_space<vmem>>, vector<64x32xf32>
    tpu.vector_store %arg12[%c0_207, %c224_208], %149 {strides = array<i32>} : memref<64x576xf32, #tpu.memory_space<vmem>>, vector<64x32xf32>,
    %c2_209 = arith.constant 2 : index
    %c9_210 = arith.constant 9 : index
    %c0_211 = arith.constant 0 : index
    %151 = vector.load %arg11[%c2_209, %c9_210, %c0_211] : memref<10x24x64xf32, #tpu.memory_space<vmem>>, vector<8x8x32xf32>
    %152 = vector.shape_cast %151 : vector<8x8x32xf32> to vector<64x32xf32>
    %c0_212 = arith.constant 0 : index
    %c256_213 = arith.constant 256 : index
    %153 = vector.load %arg12[%c0_212, %c256_213] : memref<64x576xf32, #tpu.memory_space<vmem>>, vector<64x32xf32>
    tpu.vector_store %arg12[%c0_212, %c256_213], %152 {strides = array<i32>} : memref<64x576xf32, #tpu.memory_space<vmem>>, vector<64x32xf32>,
    %c0_214 = arith.constant 0 : index
    %c0_215 = arith.constant 0 : index
    %154 = vector.load %arg12[%c0_214, %c0_215] : memref<64x576xf32, #tpu.memory_space<vmem>>, vector<64x288xf32>
    %155 = arith.truncf %154 : vector<64x288xf32> to vector<64x288xbf16>
    %c0_216 = arith.constant 0 : index
    %c0_217 = arith.constant 0 : index
    %156 = vector.load %arg6[%c0_216, %c0_217] : memref<288x64xbf16, #tpu.memory_space<vmem>>, vector<288x64xbf16>
    %cst_218 = arith.constant dense<0.000000e+00> : vector<64x64xf32>
    %157 = tpu.matmul %155, %156, %cst_218 {dimension_numbers = #tpu.dot_dimension_numbers<[1], [0], [0], [1], [0, 0, 1, 1], [], []>} : vector<64x288xbf16>, vector<288x64xbf16>, vector<64x64xf32> -> vector<64x64xf32>
    %c0_219 = arith.constant 0 : index
    %c0_220 = arith.constant 0 : index
    %158 = vector.load %arg7[%c0_219, %c0_220] : memref<1x64xf32, #tpu.memory_space<vmem>>, vector<1x64xf32>
    %159 = vector.broadcast %158 : vector<1x64xf32> to vector<64x64xf32>
    %160 = arith.addf %157, %159 : vector<64x64xf32>
    %cst_221 = arith.constant 0.000000e+00 : f32
    %161 = vector.broadcast %cst_221 : f32 to vector<64x64xf32>
    %162 = arith.maximumf %160, %161 : vector<64x64xf32>
    %163 = vector.shape_cast %162 : vector<64x64xf32> to vector<8x8x64xf32>
    %c1_222 = arith.constant 1 : index
    %c8_223 = arith.constant 8 : index
    %c0_224 = arith.constant 0 : index
    %164 = vector.load %arg11[%c1_222, %c8_223, %c0_224] : memref<10x24x64xf32, #tpu.memory_space<vmem>>, vector<8x8x64xf32>
    tpu.vector_store %arg11[%c1_222, %c8_223, %c0_224], %163 {strides = array<i32>} : memref<10x24x64xf32, #tpu.memory_space<vmem>>, vector<8x8x64xf32>,
    %c0_225 = arith.constant 0 : index
    %c7_226 = arith.constant 7 : index
    %c0_227 = arith.constant 0 : index
    %165 = vector.load %arg11[%c0_225, %c7_226, %c0_227] : memref<10x24x64xf32, #tpu.memory_space<vmem>>, vector<8x8x64xf32>
    %166 = vector.shape_cast %165 : vector<8x8x64xf32> to vector<64x64xf32>
    %c0_228 = arith.constant 0 : index
    %c0_229 = arith.constant 0 : index
    %167 = vector.load %arg12[%c0_228, %c0_229] : memref<64x576xf32, #tpu.memory_space<vmem>>, vector<64x64xf32>
    tpu.vector_store %arg12[%c0_228, %c0_229], %166 {strides = array<i32>} : memref<64x576xf32, #tpu.memory_space<vmem>>, vector<64x64xf32>,
    %c0_230 = arith.constant 0 : index
    %c8_231 = arith.constant 8 : index
    %c0_232 = arith.constant 0 : index
    %168 = vector.load %arg11[%c0_230, %c8_231, %c0_232] : memref<10x24x64xf32, #tpu.memory_space<vmem>>, vector<8x8x64xf32>
    %169 = vector.shape_cast %168 : vector<8x8x64xf32> to vector<64x64xf32>
    %c0_233 = arith.constant 0 : index
    %c64_234 = arith.constant 64 : index
    %170 = vector.load %arg12[%c0_233, %c64_234] : memref<64x576xf32, #tpu.memory_space<vmem>>, vector<64x64xf32>
    tpu.vector_store %arg12[%c0_233, %c64_234], %169 {strides = array<i32>} : memref<64x576xf32, #tpu.memory_space<vmem>>, vector<64x64xf32>,
    %c0_235 = arith.constant 0 : index
    %c9_236 = arith.constant 9 : index
    %c0_237 = arith.constant 0 : index
    %171 = vector.load %arg11[%c0_235, %c9_236, %c0_237] : memref<10x24x64xf32, #tpu.memory_space<vmem>>, vector<8x8x64xf32>
    %172 = vector.shape_cast %171 : vector<8x8x64xf32> to vector<64x64xf32>
    %c0_238 = arith.constant 0 : index
    %c128_239 = arith.constant 128 : index
    %173 = vector.load %arg12[%c0_238, %c128_239] : memref<64x576xf32, #tpu.memory_space<vmem>>, vector<64x64xf32>
    tpu.vector_store %arg12[%c0_238, %c128_239], %172 {strides = array<i32>} : memref<64x576xf32, #tpu.memory_space<vmem>>, vector<64x64xf32>,
    %c1_240 = arith.constant 1 : index
    %c7_241 = arith.constant 7 : index
    %c0_242 = arith.constant 0 : index
    %174 = vector.load %arg11[%c1_240, %c7_241, %c0_242] : memref<10x24x64xf32, #tpu.memory_space<vmem>>, vector<8x8x64xf32>
    %175 = vector.shape_cast %174 : vector<8x8x64xf32> to vector<64x64xf32>
    %c0_243 = arith.constant 0 : index
    %c192_244 = arith.constant 192 : index
    %176 = vector.load %arg12[%c0_243, %c192_244] : memref<64x576xf32, #tpu.memory_space<vmem>>, vector<64x64xf32>
    tpu.vector_store %arg12[%c0_243, %c192_244], %175 {strides = array<i32>} : memref<64x576xf32, #tpu.memory_space<vmem>>, vector<64x64xf32>,
    %c1_245 = arith.constant 1 : index
    %c8_246 = arith.constant 8 : index
    %c0_247 = arith.constant 0 : index
    %177 = vector.load %arg11[%c1_245, %c8_246, %c0_247] : memref<10x24x64xf32, #tpu.memory_space<vmem>>, vector<8x8x64xf32>
    %178 = vector.shape_cast %177 : vector<8x8x64xf32> to vector<64x64xf32>
    %c0_248 = arith.constant 0 : index
    %c256_249 = arith.constant 256 : index
    %179 = vector.load %arg12[%c0_248, %c256_249] : memref<64x576xf32, #tpu.memory_space<vmem>>, vector<64x64xf32>
    tpu.vector_store %arg12[%c0_248, %c256_249], %178 {strides = array<i32>} : memref<64x576xf32, #tpu.memory_space<vmem>>, vector<64x64xf32>,
    %c1_250 = arith.constant 1 : index
    %c9_251 = arith.constant 9 : index
    %c0_252 = arith.constant 0 : index
    %180 = vector.load %arg11[%c1_250, %c9_251, %c0_252] : memref<10x24x64xf32, #tpu.memory_space<vmem>>, vector<8x8x64xf32>
    %181 = vector.shape_cast %180 : vector<8x8x64xf32> to vector<64x64xf32>
    %c0_253 = arith.constant 0 : index
    %c320 = arith.constant 320 : index
    %182 = vector.load %arg12[%c0_253, %c320] : memref<64x576xf32, #tpu.memory_space<vmem>>, vector<64x64xf32>
    tpu.vector_store %arg12[%c0_253, %c320], %181 {strides = array<i32>} : memref<64x576xf32, #tpu.memory_space<vmem>>, vector<64x64xf32>,
    %c2_254 = arith.constant 2 : index
    %c7_255 = arith.constant 7 : index
    %c0_256 = arith.constant 0 : index
    %183 = vector.load %arg11[%c2_254, %c7_255, %c0_256] : memref<10x24x64xf32, #tpu.memory_space<vmem>>, vector<8x8x64xf32>
    %184 = vector.shape_cast %183 : vector<8x8x64xf32> to vector<64x64xf32>
    %c0_257 = arith.constant 0 : index
    %c384 = arith.constant 384 : index
    %185 = vector.load %arg12[%c0_257, %c384] : memref<64x576xf32, #tpu.memory_space<vmem>>, vector<64x64xf32>
    tpu.vector_store %arg12[%c0_257, %c384], %184 {strides = array<i32>} : memref<64x576xf32, #tpu.memory_space<vmem>>, vector<64x64xf32>,
    %c2_258 = arith.constant 2 : index
    %c8_259 = arith.constant 8 : index
    %c0_260 = arith.constant 0 : index
    %186 = vector.load %arg11[%c2_258, %c8_259, %c0_260] : memref<10x24x64xf32, #tpu.memory_space<vmem>>, vector<8x8x64xf32>
    %187 = vector.shape_cast %186 : vector<8x8x64xf32> to vector<64x64xf32>
    %c0_261 = arith.constant 0 : index
    %c448 = arith.constant 448 : index
    %188 = vector.load %arg12[%c0_261, %c448] : memref<64x576xf32, #tpu.memory_space<vmem>>, vector<64x64xf32>
    tpu.vector_store %arg12[%c0_261, %c448], %187 {strides = array<i32>} : memref<64x576xf32, #tpu.memory_space<vmem>>, vector<64x64xf32>,
    %c2_262 = arith.constant 2 : index
    %c9_263 = arith.constant 9 : index
    %c0_264 = arith.constant 0 : index
    %189 = vector.load %arg11[%c2_262, %c9_263, %c0_264] : memref<10x24x64xf32, #tpu.memory_space<vmem>>, vector<8x8x64xf32>
    %190 = vector.shape_cast %189 : vector<8x8x64xf32> to vector<64x64xf32>
    %c0_265 = arith.constant 0 : index
    %c512 = arith.constant 512 : index
    %191 = vector.load %arg12[%c0_265, %c512] : memref<64x576xf32, #tpu.memory_space<vmem>>, vector<64x64xf32>
    tpu.vector_store %arg12[%c0_265, %c512], %190 {strides = array<i32>} : memref<64x576xf32, #tpu.memory_space<vmem>>, vector<64x64xf32>,
    %c0_266 = arith.constant 0 : index
    %c0_267 = arith.constant 0 : index
    %192 = vector.load %arg12[%c0_266, %c0_267] : memref<64x576xf32, #tpu.memory_space<vmem>>, vector<64x576xf32>
    %193 = arith.truncf %192 : vector<64x576xf32> to vector<64x576xbf16>
    %c0_268 = arith.constant 0 : index
    %c0_269 = arith.constant 0 : index
    %194 = vector.load %arg8[%c0_268, %c0_269] : memref<576x128xbf16, #tpu.memory_space<vmem>>, vector<576x128xbf16>
    %cst_270 = arith.constant dense<0.000000e+00> : vector<64x128xf32>
    %195 = tpu.matmul %193, %194, %cst_270 {dimension_numbers = #tpu.dot_dimension_numbers<[1], [0], [0], [1], [0, 0, 1, 1], [], []>} : vector<64x576xbf16>, vector<576x128xbf16>, vector<64x128xf32> -> vector<64x128xf32>
    %c0_271 = arith.constant 0 : index
    %c0_272 = arith.constant 0 : index
    %196 = vector.load %arg9[%c0_271, %c0_272] : memref<1x128xf32, #tpu.memory_space<vmem>>, vector<1x128xf32>
    %197 = vector.broadcast %196 : vector<1x128xf32> to vector<64x128xf32>
    %198 = arith.addf %195, %197 : vector<64x128xf32>
    %199 = vector.shape_cast %198 : vector<64x128xf32> to vector<8x8x128xf32>
    %c0_273 = arith.constant 0 : index
    %c0_274 = arith.constant 0 : index
    %c0_275 = arith.constant 0 : index
    %c0_276 = arith.constant 0 : index
    %200 = vector.load %arg10[%c0_273, %c0_274, %c0_275, %c0_276] : memref<1x8x8x128xf32, #tpu.memory_space<vmem>>, vector<1x8x8x128xf32>
    %201 = vector.shape_cast %200 : vector<1x8x8x128xf32> to vector<8x8x128xf32>
    %202 = vector.shape_cast %199 : vector<8x8x128xf32> to vector<1x8x8x128xf32>
    tpu.vector_store %arg10[%c0_273, %c0_274, %c0_275, %c0_276], %202 {strides = array<i32>} : memref<1x8x8x128xf32, #tpu.memory_space<vmem>>, vector<1x8x8x128xf32>,
    return
  }
  func.func @transform_0(%arg0: i32) -> (i32, i32, i32, i32) {
    %c0_i32 = arith.constant 0 : i32
    %c0_i32_0 = arith.constant 0 : i32
    %c0_i32_1 = arith.constant 0 : i32
    %c0_i32_2 = arith.constant 0 : i32
    return %arg0, %c0_i32, %c0_i32_0, %c0_i32_1 : i32, i32, i32, i32
  }
  func.func @transform_1(%arg0: i32) -> (i32, i32) {
    %c0_i32 = arith.constant 0 : i32
    %c0_i32_0 = arith.constant 0 : i32
    %c0_i32_1 = arith.constant 0 : i32
    return %c0_i32, %c0_i32_0 : i32, i32
  }
  func.func @transform_2(%arg0: i32) -> (i32, i32) {
    %c0_i32 = arith.constant 0 : i32
    %c0_i32_0 = arith.constant 0 : i32
    %c0_i32_1 = arith.constant 0 : i32
    return %c0_i32, %c0_i32_0 : i32, i32
  }
  func.func @transform_3(%arg0: i32) -> (i32, i32) {
    %c0_i32 = arith.constant 0 : i32
    %c0_i32_0 = arith.constant 0 : i32
    %c0_i32_1 = arith.constant 0 : i32
    return %c0_i32, %c0_i32_0 : i32, i32
  }
  func.func @transform_4(%arg0: i32) -> (i32, i32) {
    %c0_i32 = arith.constant 0 : i32
    %c0_i32_0 = arith.constant 0 : i32
    %c0_i32_1 = arith.constant 0 : i32
    return %c0_i32, %c0_i32_0 : i32, i32
  }
  func.func @transform_5(%arg0: i32) -> (i32, i32) {
    %c0_i32 = arith.constant 0 : i32
    %c0_i32_0 = arith.constant 0 : i32
    %c0_i32_1 = arith.constant 0 : i32
    return %c0_i32, %c0_i32_0 : i32, i32
  }
  func.func @transform_6(%arg0: i32) -> (i32, i32) {
    %c0_i32 = arith.constant 0 : i32
    %c0_i32_0 = arith.constant 0 : i32
    %c0_i32_1 = arith.constant 0 : i32
    return %c0_i32, %c0_i32_0 : i32, i32
  }
  func.func @transform_7(%arg0: i32) -> (i32, i32) {
    %c0_i32 = arith.constant 0 : i32
    %c0_i32_0 = arith.constant 0 : i32
    %c0_i32_1 = arith.constant 0 : i32
    return %c0_i32, %c0_i32_0 : i32, i32
  }
  func.func @transform_8(%arg0: i32) -> (i32, i32) {
    %c0_i32 = arith.constant 0 : i32
    %c0_i32_0 = arith.constant 0 : i32
    %c0_i32_1 = arith.constant 0 : i32
    return %c0_i32, %c0_i32_0 : i32, i32
  }
  func.func @transform_9(%arg0: i32) -> (i32, i32, i32, i32) {
    %c0_i32 = arith.constant 0 : i32
    %c0_i32_0 = arith.constant 0 : i32
    %c0_i32_1 = arith.constant 0 : i32
    %c0_i32_2 = arith.constant 0 : i32
    return %arg0, %c0_i32, %c0_i32_0, %c0_i32_1 : i32, i32, i32, i32
  }
}

</mosaic_0001>

<bundles_post_ra>
// kernel: tpu_custom_call.1
= control target key start
LH: loop header
LB: loop body
LE: loop exit
PB: predicated region body
PF: predicated region fallthrough
CT: control target
= control target key end

     0   :  { %14 = vsyncpa [#allocation5], 0  ;;  %s6504_s0 = inlined_call_operand.vmem [shape: f32[2,8,8,32], index: 0, kind: input, shape index: {}]   ;;  %s6505_s1 = inlined_call_operand.vmem [shape: bf16[288,16], index: 1, kind: input, shape index: {}]   ;;  %s6506_s2 = inlined_call_operand.vmem [shape: bf16[16,32], index: 2, kind: input, shape index: {}]   ;;  %s6507_s3 = inlined_call_operand.vmem [shape: bf16[288,32], index: 3, kind: input, shape index: {}]   ;;  %s6508_s4 = inlined_call_operand.vmem [shape: f32[1,32], index: 4, kind: input, shape index: {}]   ;;  %s6509_s5 = inlined_call_operand.vmem [shape: bf16[288,64], index: 5, kind: input, shape index: {}]   ;;  %s6510_s6 = inlined_call_operand.vmem [shape: f32[1,64], index: 6, kind: input, shape index: {}]   ;;  %s6511_s7 = inlined_call_operand.vmem [shape: bf16[576,128], index: 7, kind: input, shape index: {}]   ;;  %s6512_s8 = inlined_call_operand.vmem [shape: f32[1,128], index: 8, kind: input, shape index: {}]   ;;  %s6513_s9 = inlined_call_operand.hbm [shape: f32[2,8,8,128], index: 9, kind: output, shape index: {}]  }
   0x1   :  { %16 = vsyncpa [#allocation5 + $0x1], 0  ;;  %s5038_s30 = smov 0   ;;  %s5040_s10 = smov 0  }
   0x2   :  { %s5042_s11 = smov 0   ;;  %s5044_s12 = smov 0  }
   0x3 LB: > { %s5059_s13 = sadd.s32 4294967295, %s4979_s12   ;;  %s4233_s14 = sadd.s32 4294967294, %s4979_s12   ;;  %s4979_s12 = sphi %s5044_s12, %s6519_s12   ;;  %s4975_s11 = sphi %s5042_s11, %s6518_s11   ;;  %s4971_s10 = sphi %s5040_s10, %s6517_s10   ;;  %s4967_s30 = sphi %s5038_s30, %s6516_s30  }
   0x4   : > { %s5063_s15 = sadd.s32 1, %s4979_s12   ;;  %s223_s16 = sadd.s32 1, %s4975_s11 }
   0x5   : > { %s220_s17 = ssub.s32 %s4979_s12, %s5063_s15  ;;  %p233_p0 = scmp.ne.s32.totalorder %s4975_s11, %s4971_s10 }
   0x6   : > { %p221_p1 = scmp.eq.s32.totalorder %s220_s17, 0  ;;  %p234_p2 = scmp.eq.s32.totalorder %s5059_s13, 1 }
   0x7   : > { %p239_p3 = scmp.ne.s32.totalorder %s4971_s10, %s4967_s30  ;;  %p240_p4 = scmp.eq.s32.totalorder %s4233_s14, 1 }
   0x8   : > { %s5074_s18 = scalar_select %p221_p1, %s4975_s11, %s223_s16  }
   0x9   : > { %p5076_p5 = por %p234_p2, %p233_p0  ;;  %p5080_p6 = por %p240_p4, %p239_p3 }
   0xa   : > { %p4236_p7 = scmp.ge.s32.totalorder %s4979_s12, 1  ;;  %p290_p8 = scmp.lt.s32.totalorder %s4979_s12, 3 }
   0xc   : > { %p291_p9 = pnand %p4236_p7, %p290_p8 }
   0xd   : > { %vm332_vm0 = vcmask (!%p291_p9), 523264   ;;  %v4799_v0 = vld [vmem:[%s6505_s1 + $0x40] sm:$0xff] (!%p291_p9)   ;;  %v4981_v1 = vmov (!%p291_p9), 0.0   ;;  %p326_p10 = scmp.lt.s32.totalorder (!%p291_p9), %s5059_s13, 1  ;;  %v4801_v3 = vld [vmem:[%s6505_s1 + $0x48] sm:$0xff] (!%p291_p9)   ;;  %v4803_v5 = vld [vmem:[%s6505_s1 + $0x50] sm:$0xff] (!%p291_p9)  }
   0xe   : > { %294 = sbr.rel (%p291_p9) target bundleno = 2510 (0x9ce), region = 56  ;;  %334 = vst.msk [vmem:[#allocation2 + $0x8] sm:$0xff] (!%p291_p9), %vm332_vm0, %v4981_v1  ;;  %333 = vst.msk [vmem:[#allocation2] sm:$0xff] (!%p291_p9), %vm332_vm0, %v4981_v1  ;;  %4388 = vmatprep.subr.bf16.mxu0 (!%p291_p9), %v4799_v0  ;;  %v4800_v2 = vld [vmem:[%s6505_s1] sm:$0xff] (!%p291_p9)   ;;  %v4802_v4 = vld [vmem:[%s6505_s1 + $0x8] sm:$0xff] (!%p291_p9)   ;;  %vm380_vm1 = vcmask (!%p291_p9), 261120  }
   0xf   : > { %335 = vst.msk [vmem:[#allocation2 + $0x10] sm:$0xff] (!%p291_p9), %vm332_vm0, %v4981_v1  ;;  %336 = vst.msk [vmem:[#allocation2 + $0x18] sm:$0xff] (!%p291_p9), %vm332_vm0, %v4981_v1  ;;  %4389 = vmatpush3.bf16.msra.mxu0 (!%p291_p9), %v4800_v2  ;;  %s4982_s24 = smov (!%p291_p9), 32   ;;  %v4804_v25 = vld [vmem:[%s6505_s1 + $0x10] sm:$0xff] (!%p291_p9)   ;;  %v4805_v26 = vld [vmem:[%s6505_s1 + $0x58] sm:$0xff] (!%p291_p9)   ;;  %s4984_s14 = smov (!%p291_p9), 96  }
  0x10   : > { %337 = vst.msk [vmem:[#allocation2 + $0x20] sm:$0xff] (!%p291_p9), %vm332_vm0, %v4981_v1  ;;  %338 = vst.msk [vmem:[#allocation2 + $0x28] sm:$0xff] (!%p291_p9), %vm332_vm0, %v4981_v1  ;;  %4390 = vmatprep.subr.bf16.mxu0 (!%p291_p9), %v4801_v3  ;;  %v4806_v27 = vld [vmem:[%s6505_s1 + $0x18] sm:$0xff] (!%p291_p9)   ;;  %v4807_v28 = vld [vmem:[%s6505_s1 + $0x60] sm:$0xff] (!%p291_p9)   ;;  %vm445_vm2 = vcmask (!%p291_p9), 523520   ;;  %vm494_vm3 = vcmask (!%p291_p9), 785920  }
  0x11   : > { %339 = vst.msk [vmem:[#allocation2 + $0x30] sm:$0xff] (!%p291_p9), %vm332_vm0, %v4981_v1  ;;  %340 = vst.msk [vmem:[#allocation2 + $0x38] sm:$0xff] (!%p291_p9), %vm332_vm0, %v4981_v1  ;;  %v4808_v29 = vld [vmem:[%s6505_s1 + $0x20] sm:$0xff] (!%p291_p9)   ;;  %v4809_v53 = vld [vmem:[%s6505_s1 + $0x68] sm:$0xff] (!%p291_p9)   ;;  %vm543_vm4 = vcmask (!%p291_p9), 1048320   ;;  %vm1071_vm5 = vcmask (!%p291_p9), 130048  }
  0x12   : > { %341 = vst.msk [vmem:[#allocation2 + $0x40] sm:$0xff] (!%p291_p9), %vm332_vm0, %v4981_v1  ;;  %342 = vst.msk [vmem:[#allocation2 + $0x48] sm:$0xff] (!%p291_p9), %vm332_vm0, %v4981_v1  ;;  %v4810_v54 = vld [vmem:[%s6505_s1 + $0x28] sm:$0xff] (!%p291_p9)   ;;  %v4811_v55 = vld [vmem:[%s6505_s1 + $0x70] sm:$0xff] (!%p291_p9)   ;;  %vm3370_vm6 = vcmask (!%p291_p9), 1048064   ;;  %s323_s23 = sand.u32 (!%p291_p9), 1, %s4971_s10  }
  0x13   : > { %343 = vst.msk [vmem:[#allocation2 + $0x50] sm:$0xff] (!%p291_p9), %vm332_vm0, %v4981_v1  ;;  %344 = vst.msk [vmem:[#allocation2 + $0x58] sm:$0xff] (!%p291_p9), %vm332_vm0, %v4981_v1  ;;  %4391 = vmatpush3.bf16.msra.mxu0 (!%p291_p9), %v4802_v4  ;;  %v4812_v56 = vld [vmem:[%s6505_s1 + $0x30] sm:$0xff] (!%p291_p9)   ;;  %v4813_v57 = vld [vmem:[%s6505_s1 + $0x80] sm:$0xff] (!%p291_p9)   ;;  %s4237_s26 = sshll.u32 (!%p291_p9), %s323_s23, 6  ;;  %s4985_s17 = smov (!%p291_p9), [#allocation4]  }
  0x14   : > { %345 = vst.msk [vmem:[#allocation2 + $0x60] sm:$0xff] (!%p291_p9), %vm332_vm0, %v4981_v1  ;;  %346 = vst.msk [vmem:[#allocation2 + $0x68] sm:$0xff] (!%p291_p9), %vm332_vm0, %v4981_v1  ;;  %4392 = vmatprep.subr.bf16.mxu0 (!%p291_p9), %v4803_v5  ;;  %v4814_v58 = vld [vmem:[%s6505_s1 + $0x78] sm:$0xff] (!%p291_p9)   ;;  %4670 = vmatprep.subr.bf16.mxu1 (!%p291_p9), %v4813_v57  ;;  %v4816_v61 = vld [vmem:[%s6505_s1 + $0x88] sm:$0xff] (!%p291_p9)  }
  0x15   : > { %347 = vst.msk [vmem:[#allocation2 + $0x70] sm:$0xff] %vm332_vm0, %v4981_v1  ;;  %348 = vst.msk [vmem:[#allocation2 + $0x78] sm:$0xff] %vm332_vm0, %v4981_v1  ;;  %s327_s25 = scalar_select %p326_p10, %s5059_s13, 1  ;;  %v5141_v9 = vld [vmem:[#allocation2 + $0x8] sm:$0xff]  ;;  %v4815_v60 = vld [vmem:[%s6505_s1 + $0x38] sm:$0xff]   ;;  %4671 = vmatpush3.bf16.msra.mxu1 %v4813_v57 }
  0x16   : > { %349 = vst.msk [vmem:[#allocation2 + $0x80] sm:$0xff] %vm332_vm0, %v4981_v1  ;;  %350 = vst.msk [vmem:[#allocation2 + $0x88] sm:$0xff] %vm332_vm0, %v4981_v1  ;;  %v5143_v10 = vld [vmem:[#allocation2 + $0x9] sm:$0xff]  ;;  %421 = vrot.lane.b32.xlu1 %v5141_v9, %s4982_s24  ;;  %4672 = vmatprep.subr.bf16.mxu1 %v4816_v61 }
  0x17   : > { %351 = vst.msk [vmem:[#allocation2 + $0x90] sm:$0xff] %vm332_vm0, %v4981_v1  ;;  %352 = vst.msk [vmem:[#allocation2 + $0x98] sm:$0xff] %vm332_vm0, %v4981_v1  ;;  %s4386_s28 = sshll.u32 %s327_s25, 6  ;;  %s4983_s25 = smov 64   ;;  %v5158_v24 = vld [vmem:[#allocation2 + $0x7] sm:$0xff]  ;;  %4393 = vmatpush3.bf16.msra.mxu0 %v4804_v25 }
  0x18   : > { %353 = vst.msk [vmem:[#allocation2 + $0xa0] sm:$0xff] %vm332_vm0, %v4981_v1  ;;  %354 = vst.msk [vmem:[#allocation2 + $0xa8] sm:$0xff] %vm332_vm0, %v4981_v1  ;;  %s5133_s21 = scalar_lea.vmem %s6504_s0, %s4386_s28  ;;  %470 = vrot.lane.b32.xlu0 %v5143_v10, %s4983_s25  ;;  %4394 = vmatprep.subr.bf16.mxu0 %v4805_v26 }
  0x19   : > { %355 = vst.msk [vmem:[#allocation2 + $0xb0] sm:$0xff] %vm332_vm0, %v4981_v1  ;;  %356 = vst.msk [vmem:[#allocation2 + $0xb8] sm:$0xff] %vm332_vm0, %v4981_v1  ;;  %v363_v6 = vld [vmem:[%s5133_s21] sm:$0xff]  ;;  %v364_v7 = vld [vmem:[%s5133_s21 + $0x8] sm:$0xff]  ;;  %4673 = vmatpush3.bf16.msra.mxu1 %v4816_v61 }
  0x1a   : > { %357 = vst.msk [vmem:[#allocation2 + $0xc0] sm:$0xff] %vm332_vm0, %v4981_v1  ;;  %358 = vst.msk [vmem:[#allocation2 + $0xc8] sm:$0xff] %vm332_vm0, %v4981_v1  ;;  %v365_v8 = vld [vmem:[%s5133_s21 + $0x10] sm:$0xff]  ;;  %v371_v11 = vmax.f32 %v363_v6, 0.0  ;;  %v372_v12 = vmax.f32 %v364_v7, 0.0  ;;  %v366_v14 = vld [vmem:[%s5133_s21 + $0x18] sm:$0xff] }
  0x1b   : > { %359 = vst.msk [vmem:[#allocation2 + $0xd0] sm:$0xff] %vm332_vm0, %v4981_v1  ;;  %360 = vst.msk [vmem:[#allocation2 + $0xd8] sm:$0xff] %vm332_vm0, %v4981_v1  ;;  %v373_v13 = vmax.f32 %v365_v8, 0.0  ;;  %v374_v15 = vmax.f32 %v366_v14, 0.0  ;;  %v367_v16 = vld [vmem:[%s5133_s21 + $0x20] sm:$0xff]  ;;  %v368_v17 = vld [vmem:[%s5133_s21 + $0x28] sm:$0xff]  ;;  %4395 = vmatpush3.bf16.msra.mxu0 %v4806_v27 }
  0x1c   : > { %361 = vst.msk [vmem:[#allocation2 + $0xe0] sm:$0xff] %vm332_vm0, %v4981_v1  ;;  %362 = vst.msk [vmem:[#allocation2 + $0xe8] sm:$0xff] %vm332_vm0, %v4981_v1  ;;  %v375_v18 = vmax.f32 %v367_v16, 0.0  ;;  %v376_v19 = vmax.f32 %v368_v17, 0.0  ;;  %v369_v20 = vld [vmem:[%s5133_s21 + $0x30] sm:$0xff]  ;;  %v370_v21 = vld [vmem:[%s5133_s21 + $0x38] sm:$0xff]  ;;  %4396 = vmatprep.subr.bf16.mxu0 %v4807_v28 }
  0x1d   : > { %381 = vst.msk [vmem:[#allocation2 + $0x20] sm:$0xff] %vm380_vm1, %v371_v11  ;;  %382 = vst.msk [vmem:[#allocation2 + $0x38] sm:$0xff] %vm380_vm1, %v372_v12  ;;  %v377_v22 = vmax.f32 %v369_v20, 0.0  ;;  %v378_v23 = vmax.f32 %v370_v21, 0.0 }
  0x1e   : > { %383 = vst.msk [vmem:[#allocation2 + $0x50] sm:$0xff] %vm380_vm1, %v373_v13  ;;  %384 = vst.msk [vmem:[#allocation2 + $0x68] sm:$0xff] %vm380_vm1, %v374_v15 }
  0x1f   : > { %385 = vst.msk [vmem:[#allocation2 + $0x80] sm:$0xff] %vm380_vm1, %v375_v18  ;;  %386 = vst.msk [vmem:[#allocation2 + $0x98] sm:$0xff] %vm380_vm1, %v376_v19  ;;  %4397 = vmatpush3.bf16.msra.mxu0 %v4808_v29 }
  0x20   : > { %397 = vst.msk [vmem:[#allocation3] sm:$0xff] %vm380_vm1, %v5158_v24  ;;  %387 = vst.msk [vmem:[#allocation2 + $0xb0] sm:$0xff] %vm380_vm1, %v377_v22  ;;  %4398 = vmatprep.subr.bf16.mxu0 %v4809_v53 }
  0x21   : > { %388 = vst.msk [vmem:[#allocation2 + $0xc8] sm:$0xff] %vm380_vm1, %v378_v23 }
  0x23   : > { %4399 = vmatpush3.bf16.msra.mxu0 %v4810_v54  ;;  %v5345_v3 = vld [vmem:[#allocation2 + $0xe1] sm:$0xff] }
  0x24   : > { %v568_v30 = vld [vmem:[#allocation2 + $0x21] sm:$0xff]  ;;  %v5181_v32 = vld [vmem:[#allocation2 + $0x39] sm:$0xff]  ;;  %4400 = vmatprep.subr.bf16.mxu0 %v4811_v55  ;;  %728 = vst.msk [vmem:[#allocation3 + $0x128] sm:$0xff] %vm380_vm1, %v5345_v3 }
  0x25   : > { %v406_v31 = vld [vmem:[#allocation2 + $0x20] sm:$0xff]  ;;  %584 = vrot.lane.b32.xlu0 %v568_v30, %s4982_s24  ;;  %v5185_v33 = vld [vmem:[#allocation2 + $0x4f] sm:$0xff]  ;;  %v5187_v34 = vld [vmem:[#allocation2 + $0x37] sm:$0xff]  ;;  %721 = vst.msk [vmem:[#allocation3 + $0x10] sm:$0xff] %vm380_vm1, %v5181_v32 }
  0x26   : > { %423 = vrot.lane.b32.xlu1 %v406_v31, %s4982_s24  ;;  %v5189_v35 = vld [vmem:[#allocation2 + $0x38] sm:$0xff]  ;;  %560 = vst.msk [vmem:[#allocation3 + $0x8] sm:$0xff] %vm380_vm1, %v406_v31  ;;  %v5194_v36 = vld [vmem:[#allocation2 + $0x50] sm:$0xff]  ;;  %399 = vst.msk [vmem:[#allocation3 + $0x50] sm:$0xff] %vm380_vm1, %v5187_v34 }
  0x27   : > { %v5196_v37 = vld [vmem:[#allocation2 + $0x1f] sm:$0xff]  ;;  %v5198_v38 = vld [vmem:[#allocation2 + $0x51] sm:$0xff]  ;;  %561 = vst.msk [vmem:[#allocation3 + $0x30] sm:$0xff] %vm380_vm1, %v5189_v35  ;;  %400 = vst.msk [vmem:[#allocation3 + $0x78] sm:$0xff] %vm380_vm1, %v5185_v33  ;;  %4401 = vmatpush3.bf16.msra.mxu0 %v4812_v56 }
  0x28   : > { %v5206_v39 = vld [vmem:[#allocation2 + $0x69] sm:$0xff]  ;;  %v5210_v41 = vld [vmem:[#allocation2 + $0x7f] sm:$0xff]  ;;  %398 = vst.msk [vmem:[#allocation3 + $0x28] sm:$0xff] %vm380_vm1, %v5196_v37  ;;  %562 = vst.msk [vmem:[#allocation3 + $0x58] sm:$0xff] %vm380_vm1, %v5194_v36  ;;  %4402 = vmatprep.subr.bf16.mxu0 %v4814_v58 }
  0x29   : > { %v5208_v40 = vld [vmem:[#allocation2 + $0x67] sm:$0xff]  ;;  %722 = vst.msk [vmem:[#allocation3 + $0x38] sm:$0xff] %vm380_vm1, %v5198_v38  ;;  %723 = vst.msk [vmem:[#allocation3 + $0x60] sm:$0xff] %vm380_vm1, %v5206_v39  ;;  %586 = vrot.lane.b32.xlu0 %v5181_v32, %s4982_s24  ;;  %v5234_v45 = vld [vmem:[#allocation2 + $0x99] sm:$0xff] }
  0x2a   : > { %v5218_v42 = vld [vmem:[#allocation2 + $0x68] sm:$0xff]  ;;  %v5220_v43 = vld [vmem:[#allocation2 + $0x80] sm:$0xff]  ;;  %401 = vst.msk [vmem:[#allocation3 + $0xa0] sm:$0xff] %vm380_vm1, %v5208_v40  ;;  %402 = vst.msk [vmem:[#allocation3 + $0xc8] sm:$0xff] %vm380_vm1, %v5210_v41  ;;  %635 = vrot.lane.b32.xlu1 %v5185_v33, %s4983_s25 }
  0x2b   : > { %v5222_v44 = vld [vmem:[#allocation2 + $0x81] sm:$0xff]  ;;  %v5236_v46 = vld [vmem:[#allocation2 + $0x97] sm:$0xff]  ;;  %v5238_v47 = vld [vmem:[#allocation2 + $0xaf] sm:$0xff]  ;;  %563 = vst.msk [vmem:[#allocation3 + $0x80] sm:$0xff] %vm380_vm1, %v5218_v42  ;;  %4403 = vmatpush3.bf16.msra.mxu0 %v4815_v60 }
  0x2c   : > { %724 = vst.msk [vmem:[#allocation3 + $0x88] sm:$0xff] %vm380_vm1, %v5222_v44  ;;  %564 = vst.msk [vmem:[#allocation3 + $0xa8] sm:$0xff] %vm380_vm1, %v5220_v43  ;;  %v5246_v48 = vld [vmem:[#allocation2 + $0x98] sm:$0xff]  ;;  %v5248_v49 = vld [vmem:[#allocation2 + $0xb0] sm:$0xff] }
  0x2d   : > { %v5250_v50 = vld [vmem:[#allocation2 + $0xb1] sm:$0xff]  ;;  %403 = vst.msk [vmem:[#allocation3 + $0xf0] sm:$0xff] %vm380_vm1, %v5236_v46  ;;  %404 = vst.msk [vmem:[#allocation3 + $0x118] sm:$0xff] %vm380_vm1, %v5238_v47  ;;  %v5258_v51 = vld [vmem:[#allocation2 + $0xc9] sm:$0xff]  ;;  %633 = vrot.lane.b32.xlu0 %v5187_v34, %s4983_s25 }
  0x2e   : > { %725 = vst.msk [vmem:[#allocation3 + $0xb0] sm:$0xff] %vm380_vm1, %v5234_v45  ;;  %v5260_v52 = vld [vmem:[#allocation2 + $0xc8] sm:$0xff]  ;;  %565 = vst.msk [vmem:[#allocation3 + $0xd0] sm:$0xff] %vm380_vm1, %v5246_v48  ;;  %472 = vrot.lane.b32.xlu1 %v568_v30, %s4983_s25  ;;  %v731_v59 = vld [vmem:[#allocation3 + $0x10] sm:$0xff] }
  0x2f   : > { %566 = vst.msk [vmem:[#allocation3 + $0xf8] sm:$0xff] %vm380_vm1, %v5248_v49  ;;  %726 = vst.msk [vmem:[#allocation3 + $0xd8] sm:$0xff] %vm380_vm1, %v5250_v50  ;;  %v752_v8 = vld [vmem:[#allocation3 + $0x128] sm:$0xff]  ;;  %v623_v13 = vld [vmem:[#allocation2 + $0xc7] sm:$0xff] }
  0x30   : > { %567 = vst.msk [vmem:[#allocation3 + $0x120] sm:$0xff] %vm380_vm1, %v5260_v52  ;;  %727 = vst.msk [vmem:[#allocation3 + $0x100] sm:$0xff] %vm380_vm1, %v5258_v51  ;;  %v734_v62 = vld [vmem:[#allocation3 + $0x38] sm:$0xff]  ;;  %v737_v63 = vld [vmem:[#allocation3 + $0x60] sm:$0xff] }
  0x31   : > { %681 = vrot.lane.b32.xlu0 %v5189_v35, %s4984_s14  ;;  %v755_v0 = vpack.c.bf16 %v734_v62, %v731_v59  ;;  %1508 = vst.msk [vmem:[#allocation3 + $0x128] sm:$0xff] %vm380_vm1, %v5345_v3  ;;  %v624_v12 = vld [vmem:[#allocation2 + $0xdf] sm:$0xff] }
  0x32   : > { %683 = vrot.lane.b32.xlu1 %v5194_v36, %s4984_s14  ;;  %v5379_v14 = vld [vmem:[#allocation2 + $0xe0] sm:$0xff] }
  0x33   : > { %v740_v1 = vld [vmem:[#allocation3 + $0x88] sm:$0xff]  ;;  %4674 = vmatprep.mubr.msk.bf16.mxu1 %vm380_vm1, %v755_v0 }
  0x34   : > { %v758_v2 = vpack.c.bf16 %v740_v1, %v737_v63 }
  0x35   : > { %519 = vrot.lane.b32.xlu0 %v5196_v37, %s4984_s14  ;;  %v743_v4 = vld [vmem:[#allocation3 + $0xb0] sm:$0xff] }
  0x36   : > { %521 = vrot.lane.b32.xlu1 %v5187_v34, %s4984_s14  ;;  %4675 = vmatmul.mubr.msk.bf16.vlgmr.msra.gmra.mrb[0].mxu1 %vm380_vm1, %v758_v2  ;;  %v746_v5 = vld [vmem:[#allocation3 + $0xd8] sm:$0xff] }
  0x37   : > { %v761_v6 = vpack.c.bf16 %v746_v5, %v743_v4  ;;  %v749_v7 = vld [vmem:[#allocation3 + $0x100] sm:$0xff] }
  0x38   : > { %v764_v11 = vpack.c.bf16 %v752_v8, %v749_v7 }
  0x39   : > { %588 = vrot.lane.b32.xlu0 %v5198_v38, %s4982_s24  ;;  %4678 = vmatprep.mubr.msk.bf16.mxu1 %vm380_vm1, %v761_v6 }
  0x3a   : > { %590 = vrot.lane.b32.xlu1 %v5206_v39, %s4982_s24 }
  0x3d   : > { %425 = vrot.lane.b32.xlu0 %v5189_v35, %s4982_s24 }
  0x3e   : > { %427 = vrot.lane.b32.xlu1 %v5194_v36, %s4982_s24  ;;  %4679 = vmatmul.mubr.msk.bf16.gmra.mrb[4].mxu1 %vm380_vm1, %v764_v11 }
  0x41   : > { %637 = vrot.lane.b32.xlu0 %v5208_v40, %s4983_s25 }
  0x42   : > { %639 = vrot.lane.b32.xlu1 %v5210_v41, %s4983_s25 }
  0x45   : > { %474 = vrot.lane.b32.xlu0 %v5181_v32, %s4983_s25 }
  0x46   : > { %476 = vrot.lane.b32.xlu1 %v5198_v38, %s4983_s25 }
  0x49   : > { %685 = vrot.lane.b32.xlu0 %v5218_v42, %s4984_s14 }
  0x4a   : > { %687 = vrot.lane.b32.xlu1 %v5220_v43, %s4984_s14 }
  0x4d   : > { %523 = vrot.lane.b32.xlu0 %v5185_v33, %s4984_s14 }
  0x4e   : > { %525 = vrot.lane.b32.xlu1 %v5208_v40, %s4984_s14 }
  0x51   : > { %592 = vrot.lane.b32.xlu0 %v5222_v44, %s4982_s24 }
  0x52   : > { %594 = vrot.lane.b32.xlu1 %v5234_v45, %s4982_s24 }
  0x55   : > { %429 = vrot.lane.b32.xlu0 %v5218_v42, %s4982_s24 }
  0x56   : > { %431 = vrot.lane.b32.xlu1 %v5220_v43, %s4982_s24 }
  0x59   : > { %641 = vrot.lane.b32.xlu0 %v5236_v46, %s4983_s25 }
  0x5a   : > { %643 = vrot.lane.b32.xlu1 %v5238_v47, %s4983_s25 }
  0x5d   : > { %478 = vrot.lane.b32.xlu0 %v5206_v39, %s4983_s25 }
  0x5e   : > { %480 = vrot.lane.b32.xlu1 %v5222_v44, %s4983_s25 }
  0x61   : > { %689 = vrot.lane.b32.xlu0 %v5246_v48, %s4984_s14 }
  0x62   : > { %691 = vrot.lane.b32.xlu1 %v5248_v49, %s4984_s14 }
  0x65   : > { %527 = vrot.lane.b32.xlu0 %v5210_v41, %s4984_s14 }
  0x66   : > { %529 = vrot.lane.b32.xlu1 %v5236_v46, %s4984_s14 }
  0x69   : > { %596 = vrot.lane.b32.xlu0 %v5250_v50, %s4982_s24 }
  0x6a   : > { %598 = vrot.lane.b32.xlu1 %v5258_v51, %s4982_s24 }
  0x6d   : > { %433 = vrot.lane.b32.xlu0 %v5246_v48, %s4982_s24 }
  0x6e   : > { %435 = vrot.lane.b32.xlu1 %v5248_v49, %s4982_s24 }
  0x71   : > { %645 = vrot.lane.b32.xlu0 %v623_v13, %s4983_s25 }
  0x72   : > { %647 = vrot.lane.b32.xlu1 %v624_v12, %s4983_s25 }
  0x75   : > { %482 = vrot.lane.b32.xlu0 %v5234_v45, %s4983_s25 }
  0x76   : > { %484 = vrot.lane.b32.xlu1 %v5250_v50, %s4983_s25 }
  0x79   : > { %693 = vrot.lane.b32.xlu0 %v5260_v52, %s4984_s14 }
  0x7a   : > { %695 = vrot.lane.b32.xlu1 %v5379_v14, %s4984_s14 }
  0x7d   : > { %531 = vrot.lane.b32.xlu0 %v5238_v47, %s4984_s14 }
  0x7e   : > { %533 = vrot.lane.b32.xlu1 %v623_v13, %s4984_s14 }
  0x81   : > { %1205 = vrot.lane.b32.xlu0 %v5141_v9, %s4982_s24 }
  0x82   : > { %1427 = vrot.lane.b32.xlu1 %v624_v12, %s4983_s25 }
  0x85   : > { %1253 = vrot.lane.b32.xlu0 %v5143_v10, %s4983_s25 }
  0x88   : > { %v422_v15 = vpop.permute.xlu1 %421 }
  0x89   : > { %446 = vst.msk [vmem:[#allocation3] sm:$0xff] %vm445_vm2, %v422_v15 }
  0x8a   : > { %v471_v16 = vpop.permute.xlu0 %470 }
  0x8b   : > { %495 = vst.msk [vmem:[#allocation3] sm:$0xff] %vm494_vm3, %v471_v16 }
  0x97   : > { %v585_v17 = vpop.permute.xlu0 %584 }
  0x98   : > { %v424_v18 = vpop.permute.xlu1 %423  ;;  %608 = vst.msk [vmem:[#allocation3 + $0x8] sm:$0xff] %vm445_vm2, %v585_v17 }
  0x99   : > { %447 = vst.msk [vmem:[#allocation3 + $0x28] sm:$0xff] %vm445_vm2, %v424_v18 }
  0x9b   : > { %v587_v9 = vpop.permute.xlu0 %586 }
  0x9c   : > { %v636_v19 = vpop.permute.xlu1 %635  ;;  %609 = vst.msk [vmem:[#allocation3 + $0x30] sm:$0xff] %vm445_vm2, %v587_v9 }
  0x9d   : > { %658 = vst.msk [vmem:[#allocation3 + $0x30] sm:$0xff] %vm494_vm3, %v636_v19 }
  0x9f   : > { %v634_v10 = vpop.permute.xlu0 %633 }
  0xa0   : > { %v473_v20 = vpop.permute.xlu1 %472  ;;  %657 = vst.msk [vmem:[#allocation3 + $0x8] sm:$0xff] %vm494_vm3, %v634_v10 }
  0xa1   : > { %496 = vst.msk [vmem:[#allocation3 + $0x28] sm:$0xff] %vm494_vm3, %v473_v20 }
  0xa3   : > { %v682_v21 = vpop.permute.xlu0 %681 }
  0xa4   : > { %v684_v22 = vpop.permute.xlu1 %683  ;;  %705 = vst.msk [vmem:[#allocation3 + $0x8] sm:$0xff] %vm543_vm4, %v682_v21 }
  0xa5   : > { %706 = vst.msk [vmem:[#allocation3 + $0x30] sm:$0xff] %vm543_vm4, %v684_v22 }
  0xa7   : > { %v520_v23 = vpop.permute.xlu0 %519 }
  0xa8   : > { %v522_v25 = vpop.permute.xlu1 %521  ;;  %544 = vst.msk [vmem:[#allocation3] sm:$0xff] %vm543_vm4, %v520_v23 }
  0xa9   : > { %545 = vst.msk [vmem:[#allocation3 + $0x28] sm:$0xff] %vm543_vm4, %v522_v25 }
  0xab   : > { %v589_v26 = vpop.permute.xlu0 %588  ;;  %v730_v28 = vld [vmem:[#allocation3 + $0x8] sm:$0xff] }
  0xac   : > { %v591_v27 = vpop.permute.xlu1 %590  ;;  %v733_v29 = vld [vmem:[#allocation3 + $0x30] sm:$0xff]  ;;  %610 = vst.msk [vmem:[#allocation3 + $0x58] sm:$0xff] %vm445_vm2, %v589_v26 }
  0xad   : > { %611 = vst.msk [vmem:[#allocation3 + $0x80] sm:$0xff] %vm445_vm2, %v591_v27  ;;  %v754_v30 = vpack.c.bf16 %v733_v29, %v730_v28  ;;  %v4817_v28 = vld [vmem:[%s6506_s2] sm:$0xff]  }
  0xae   : > { %4682 = vmatprep.subr.bf16.mxu1 %v4817_v28 }
  0xaf   : > { %953 = vmatprep.mubr.bf16.mxu0 %v754_v30  ;;  %v426_v31 = vpop.permute.xlu0 %425  ;;  %v729_v33 = vld [vmem:[#allocation3] sm:$0xff]  ;;  %4683 = vmatpush3.bf16.msra.mxu1 %v4817_v28  ;;  %v4911_v28 = vld [vmem:[%s5133_s21 + $0x18] sm:$0xff] }
  0xb0   : > { %v428_v32 = vpop.permute.xlu1 %427  ;;  %v732_v34 = vld [vmem:[#allocation3 + $0x28] sm:$0xff]  ;;  %448 = vst.msk [vmem:[#allocation3 + $0x50] sm:$0xff] %vm445_vm2, %v426_v31 }
  0xb1   : > { %449 = vst.msk [vmem:[#allocation3 + $0x78] sm:$0xff] %vm445_vm2, %v428_v32  ;;  %v753_v35 = vpack.c.bf16 %v732_v34, %v729_v33 }
  0xb2   : > { %1181 = vst.msk [vmem:[#allocation3] sm:$0xff] %vm380_vm1, %v5158_v24 }
  0xb3   : > { %954 = vmatmul.mubr.bf16.vlgmr.msra.gmra.mrb[0].mxu0 %v753_v35  ;;  %v638_v36 = vpop.permute.xlu0 %637 }
  0xb4   : > { %v640_v37 = vpop.permute.xlu1 %639  ;;  %659 = vst.msk [vmem:[#allocation3 + $0x58] sm:$0xff] %vm494_vm3, %v638_v36 }
  0xb5   : > { %660 = vst.msk [vmem:[#allocation3 + $0x80] sm:$0xff] %vm494_vm3, %v640_v37 }
  0xb7   : > { %v475_v38 = vpop.permute.xlu0 %474 }
  0xb8   : > { %v477_v39 = vpop.permute.xlu1 %476  ;;  %497 = vst.msk [vmem:[#allocation3 + $0x50] sm:$0xff] %vm494_vm3, %v475_v38 }
  0xb9   : > { %498 = vst.msk [vmem:[#allocation3 + $0x78] sm:$0xff] %vm494_vm3, %v477_v39 }
  0xbb   : > { %v686_v40 = vpop.permute.xlu0 %685 }
  0xbc   : > { %v688_v41 = vpop.permute.xlu1 %687  ;;  %707 = vst.msk [vmem:[#allocation3 + $0x58] sm:$0xff] %vm543_vm4, %v686_v40 }
  0xbd   : > { %708 = vst.msk [vmem:[#allocation3 + $0x80] sm:$0xff] %vm543_vm4, %v688_v41 }
  0xbf   : > { %v524_v24 = vpop.permute.xlu0 %523 }
  0xc0   : > { %v526_v42 = vpop.permute.xlu1 %525  ;;  %546 = vst.msk [vmem:[#allocation3 + $0x50] sm:$0xff] %vm543_vm4, %v524_v24 }
  0xc1   : > { %547 = vst.msk [vmem:[#allocation3 + $0x78] sm:$0xff] %vm543_vm4, %v526_v42 }
  0xc3   : > { %v593_v43 = vpop.permute.xlu0 %592  ;;  %v736_v45 = vld [vmem:[#allocation3 + $0x58] sm:$0xff] }
  0xc4   : > { %v595_v44 = vpop.permute.xlu1 %594  ;;  %v739_v46 = vld [vmem:[#allocation3 + $0x80] sm:$0xff]  ;;  %612 = vst.msk [vmem:[#allocation3 + $0xa8] sm:$0xff] %vm445_vm2, %v593_v43 }
  0xc5   : > { %613 = vst.msk [vmem:[#allocation3 + $0xd0] sm:$0xff] %vm445_vm2, %v595_v44  ;;  %v757_v47 = vpack.c.bf16 %v739_v46, %v736_v45 }
  0xc7   : > { %961 = vmatprep.mubr.bf16.mxu0 %v757_v47  ;;  %v430_v48 = vpop.permute.xlu0 %429  ;;  %v735_v50 = vld [vmem:[#allocation3 + $0x50] sm:$0xff] }
  0xc8   : > { %v432_v49 = vpop.permute.xlu1 %431  ;;  %v738_v51 = vld [vmem:[#allocation3 + $0x78] sm:$0xff]  ;;  %450 = vst.msk [vmem:[#allocation3 + $0xa0] sm:$0xff] %vm445_vm2, %v430_v48 }
  0xc9   : > { %451 = vst.msk [vmem:[#allocation3 + $0xc8] sm:$0xff] %vm445_vm2, %v432_v49  ;;  %v756_v52 = vpack.c.bf16 %v738_v51, %v735_v50 }
  0xcb   : > { %962 = vmatmul.mubr.bf16.gmra.mrb[4].mxu0 %v756_v52  ;;  %v642_v53 = vpop.permute.xlu0 %641 }
  0xcc   : > { %v644_v54 = vpop.permute.xlu1 %643  ;;  %661 = vst.msk [vmem:[#allocation3 + $0xa8] sm:$0xff] %vm494_vm3, %v642_v53 }
  0xcd   : > { %662 = vst.msk [vmem:[#allocation3 + $0xd0] sm:$0xff] %vm494_vm3, %v644_v54 }
  0xcf   : > { %v479_v55 = vpop.permute.xlu0 %478 }
  0xd0   : > { %v481_v56 = vpop.permute.xlu1 %480  ;;  %499 = vst.msk [vmem:[#allocation3 + $0xa0] sm:$0xff] %vm494_vm3, %v479_v55 }
  0xd1   : > { %500 = vst.msk [vmem:[#allocation3 + $0xc8] sm:$0xff] %vm494_vm3, %v481_v56 }
  0xd3   : > { %v690_v57 = vpop.permute.xlu0 %689 }
  0xd4   : > { %v692_v58 = vpop.permute.xlu1 %691  ;;  %709 = vst.msk [vmem:[#allocation3 + $0xa8] sm:$0xff] %vm543_vm4, %v690_v57 }
  0xd5   : > { %710 = vst.msk [vmem:[#allocation3 + $0xd0] sm:$0xff] %vm543_vm4, %v692_v58 }
  0xd7   : > { %v528_v59 = vpop.permute.xlu0 %527 }
  0xd8   : > { %v530_v60 = vpop.permute.xlu1 %529  ;;  %548 = vst.msk [vmem:[#allocation3 + $0xa0] sm:$0xff] %vm543_vm4, %v528_v59 }
  0xd9   : > { %549 = vst.msk [vmem:[#allocation3 + $0xc8] sm:$0xff] %vm543_vm4, %v530_v60 }
  0xdb   : > { %v597_v61 = vpop.permute.xlu0 %596  ;;  %v742_v63 = vld [vmem:[#allocation3 + $0xa8] sm:$0xff] }
  0xdc   : > { %v599_v62 = vpop.permute.xlu1 %598  ;;  %v745_v0 = vld [vmem:[#allocation3 + $0xd0] sm:$0xff]  ;;  %614 = vst.msk [vmem:[#allocation3 + $0xf8] sm:$0xff] %vm445_vm2, %v597_v61 }
  0xdd   : > { %615 = vst.msk [vmem:[#allocation3 + $0x120] sm:$0xff] %vm445_vm2, %v599_v62  ;;  %v760_v1 = vpack.c.bf16 %v745_v0, %v742_v63 }
  0xdf   : > { %969 = vmatprep.mubr.bf16.mxu0 %v760_v1  ;;  %v434_v2 = vpop.permute.xlu0 %433  ;;  %v741_v5 = vld [vmem:[#allocation3 + $0xa0] sm:$0xff] }
  0xe0   : > { %v436_v4 = vpop.permute.xlu1 %435  ;;  %v744_v6 = vld [vmem:[#allocation3 + $0xc8] sm:$0xff]  ;;  %452 = vst.msk [vmem:[#allocation3 + $0xf0] sm:$0xff] %vm445_vm2, %v434_v2 }
  0xe1   : > { %453 = vst.msk [vmem:[#allocation3 + $0x118] sm:$0xff] %vm445_vm2, %v436_v4  ;;  %v759_v7 = vpack.c.bf16 %v744_v6, %v741_v5 }
  0xe3   : > { %970 = vmatmul.mubr.bf16.gmra.mrb[8].mxu0 %v759_v7  ;;  %v646_v8 = vpop.permute.xlu0 %645 }
  0xe4   : > { %v648_v11 = vpop.permute.xlu1 %647  ;;  %663 = vst.msk [vmem:[#allocation3 + $0xf8] sm:$0xff] %vm494_vm3, %v646_v8 }
  0xe5   : > { %664 = vst.msk [vmem:[#allocation3 + $0x120] sm:$0xff] %vm494_vm3, %v648_v11 }
  0xe7   : > { %v483_v12 = vpop.permute.xlu0 %482 }
  0xe8   : > { %v485_v13 = vpop.permute.xlu1 %484  ;;  %501 = vst.msk [vmem:[#allocation3 + $0xf0] sm:$0xff] %vm494_vm3, %v483_v12 }
  0xe9   : > { %502 = vst.msk [vmem:[#allocation3 + $0x118] sm:$0xff] %vm494_vm3, %v485_v13 }
  0xeb   : > { %v694_v15 = vpop.permute.xlu0 %693 }
  0xec   : > { %v696_v16 = vpop.permute.xlu1 %695  ;;  %711 = vst.msk [vmem:[#allocation3 + $0xf8] sm:$0xff] %vm543_vm4, %v694_v15 }
  0xed   : > { %712 = vst.msk [vmem:[#allocation3 + $0x120] sm:$0xff] %vm543_vm4, %v696_v16  ;;  %v4818_v16 = vld [vmem:[%s6505_s1 + $0x80] sm:$0xff]  }
  0xee   : > { %4692 = vmatprep.subr.bf16.mxu0 %v4818_v16 }
  0xef   : > { %v532_v17 = vpop.permute.xlu0 %531  ;;  %4693 = vmatpush3.bf16.msra.mxu0 %v4818_v16 }
  0xf0   : > { %v534_v18 = vpop.permute.xlu1 %533  ;;  %550 = vst.msk [vmem:[#allocation3 + $0xf0] sm:$0xff] %vm543_vm4, %v532_v17  ;;  %v4819_v17 = vld [vmem:[%s6505_s1 + $0x88] sm:$0xff]  }
  0xf1   : > { %551 = vst.msk [vmem:[#allocation3 + $0x118] sm:$0xff] %vm543_vm4, %v534_v18  ;;  %4694 = vmatprep.subr.bf16.mxu0 %v4819_v17  ;;  %v5456_v18 = vld [vmem:[#allocation3 + $0x128] sm:$0xff] }
  0xf2   : > { %2287 = vst.msk [vmem:[#allocation3 + $0x128] sm:$0xff] %vm380_vm1, %v5345_v3 }
  0xf3   : > { %v748_v9 = vld [vmem:[#allocation3 + $0xf8] sm:$0xff]  ;;  %4695 = vmatpush3.bf16.msra.mxu0 %v4819_v17 }
  0xf4   : > { %v751_v19 = vld [vmem:[#allocation3 + $0x120] sm:$0xff]  ;;  %v4916_v17 = vld [vmem:[%s5133_s21 + $0x28] sm:$0xff] }
  0xf5   : > { %v763_v10 = vpack.c.bf16 %v751_v19, %v748_v9  ;;  %v1206_v9 = vpop.permute.xlu0 %1205 }
  0xf6   : > { %1229 = vst.msk [vmem:[#allocation3] sm:$0xff] %vm445_vm2, %v1206_v9 }
  0xf7   : > { %977 = vmatprep.mubr.bf16.mxu0 %v763_v10  ;;  %v747_v20 = vld [vmem:[#allocation3 + $0xf0] sm:$0xff] }
  0xf8   : > { %v750_v21 = vld [vmem:[#allocation3 + $0x118] sm:$0xff] }
  0xf9   : > { %v762_v22 = vpack.c.bf16 %v750_v21, %v747_v20  ;;  %v1254_v19 = vpop.permute.xlu0 %1253  ;;  %v4909_v20 = vld [vmem:[%s5133_s21 + $0x10] sm:$0xff] }
  0xfa   : > { %1277 = vst.msk [vmem:[#allocation3] sm:$0xff] %vm494_vm3, %v1254_v19 }
  0xfb   : > { %978 = vmatmul.mubr.bf16.gmra.mrb[12].mxu0 %v762_v22 }
 0x109   : > { %v4676_v23 = vpop.f32.mrb[0].mxu1 }
 0x10a   : > { %v1020_v25 = vpop.f32.mrb[1].mxu1 }
 0x10b   : > { %v4677_v26 = vpop.f32.mrb[2].mxu1 }
 0x10c   : > { %v1023_v27 = vpop.f32.mrb[3].mxu1 }
 0x111   : > { %v4680_v29 = vpop.f32.mrb[4].mxu1 }
 0x112   : > { %v1036_v30 = vpop.f32.mrb[5].mxu1 }
 0x113   : > { %v4681_v31 = vpop.f32.mrb[6].mxu1 }
 0x114   : > { %v1039_v32 = vpop.f32.mrb[7].mxu1 }
 0x186   : > { %v4404_v33 = vpop.f32.mrb[0].mxu0 }
 0x187   : > { %v4405_v34 = vpop.f32.mrb[1].mxu0 }
 0x188   : > { %v4406_v35 = vadd.f32 %v4405_v34, %v4404_v33  ;;  %v4407_v36 = vpop.f32.mrb[2].mxu0 }
 0x189   : > { %v4408_v37 = vpop.f32.mrb[3].mxu0 }
 0x18a   : > { %v4409_v38 = vadd.f32 %v4408_v37, %v4407_v36  ;;  %v1021_v39 = vadd.f32 %v4406_v35, %v1020_v25 }
 0x18c   : > { %v1024_v40 = vadd.f32 %v4409_v38, %v1023_v27  ;;  %v1051_v41 = vmax.f32 %v1021_v39, 0.0 }
 0x18e   : > { %v1052_v24 = vmax.f32 %v1024_v40, 0.0 }
 0x190   : > { %v1059_v42 = vpack.c.bf16 %v1052_v24, %v1051_v41 }
 0x192   : > { %4684 = vmatprep.mubr.msk.bf16.mxu1 %vm1071_vm5, %v1059_v42 }
 0x19e   : > { %v4410_v43 = vpop.f32.mrb[4].mxu0 }
 0x19f   : > { %v4411_v44 = vpop.f32.mrb[5].mxu0 }
 0x1a0   : > { %v4412_v45 = vadd.f32 %v4411_v44, %v4410_v43  ;;  %v4413_v46 = vpop.f32.mrb[6].mxu0 }
 0x1a1   : > { %v4414_v47 = vpop.f32.mrb[7].mxu0 }
 0x1a2   : > { %v1029_v48 = vadd.f32 %v4676_v23, %v4412_v45  ;;  %v4415_v49 = vadd.f32 %v4414_v47, %v4413_v46  ;;  %v4910_v23 = vld [vmem:[%s5133_s21] sm:$0xff]  ;;  %v4822_v47 = vld [vmem:[%s6505_s1 + $0x48] sm:$0xff]  }
 0x1a3   : > { %v4820_v45 = vld [vmem:[%s6505_s1 + $0x40] sm:$0xff]  }
 0x1a4   : > { %v1032_v50 = vadd.f32 %v4677_v26, %v4415_v49  ;;  %v1053_v51 = vmax.f32 %v1029_v48, 0.0  ;;  %v4821_v46 = vld [vmem:[%s6505_s1] sm:$0xff]   ;;  %4439 = vmatprep.subr.bf16.mxu1 %v4820_v45  ;;  %v4823_v48 = vld [vmem:[%s6505_s1 + $0x8] sm:$0xff]  }
 0x1a6   : > { %v1054_v52 = vmax.f32 %v1032_v50, 0.0  ;;  %v4824_v50 = vld [vmem:[%s6505_s1 + $0x50] sm:$0xff]  }
 0x1a8   : > { %v1060_v53 = vpack.c.bf16 %v1054_v52, %v1053_v51 }
 0x1aa   : > { %4685 = vmatmul.mubr.msk.bf16.vlgmr.msra.gmra.mrb[8].mxu1 %vm1071_vm5, %v1060_v53  ;;  %v4825_v53 = vld [vmem:[%s6505_s1 + $0x10] sm:$0xff]  }
 0x1ab   : > { %4440 = vmatpush3.bf16.msra.mxu1 %v4821_v46 }
 0x1ac   : > { %4441 = vmatprep.subr.bf16.mxu1 %v4822_v47 }
 0x1af   : > { %4442 = vmatpush3.bf16.msra.mxu1 %v4823_v48 }
 0x1b0   : > { %4443 = vmatprep.subr.bf16.mxu1 %v4824_v50 }
 0x1b3   : > { %4444 = vmatpush3.bf16.msra.mxu1 %v4825_v53 }
 0x1b6   : > { %v4416_v54 = vpop.f32.mrb[8].mxu0 }
 0x1b7   : > { %v4417_v55 = vpop.f32.mrb[9].mxu0 }
 0x1b8   : > { %v4418_v56 = vadd.f32 %v4417_v55, %v4416_v54  ;;  %v4419_v57 = vpop.f32.mrb[10].mxu0  ;;  %v4826_v55 = vld [vmem:[%s6505_s1 + $0x58] sm:$0xff]  }
 0x1b9   : > { %v4420_v58 = vpop.f32.mrb[11].mxu0  ;;  %4445 = vmatprep.subr.bf16.mxu1 %v4826_v55 }
 0x1ba   : > { %v4421_v59 = vadd.f32 %v4420_v58, %v4419_v57  ;;  %v1037_v60 = vadd.f32 %v4418_v56, %v1036_v30  ;;  %v4827_v56 = vld [vmem:[%s6505_s1 + $0x18] sm:$0xff]   ;;  %v4828_v57 = vld [vmem:[%s6505_s1 + $0x60] sm:$0xff]  }
 0x1bb   : > { %4446 = vmatpush3.bf16.msra.mxu1 %v4827_v56  ;;  %v4829_v58 = vld [vmem:[%s6505_s1 + $0x20] sm:$0xff]  }
 0x1bc   : > { %v1040_v61 = vadd.f32 %v4421_v59, %v1039_v32  ;;  %v1055_v62 = vmax.f32 %v1037_v60, 0.0  ;;  %4447 = vmatprep.subr.bf16.mxu1 %v4828_v57  ;;  %v4830_v59 = vld [vmem:[%s6505_s1 + $0x68] sm:$0xff]  }
 0x1bd   : > { %v4831_v60 = vld [vmem:[%s6505_s1 + $0x28] sm:$0xff]  }
 0x1be   : > { %v1056_v63 = vmax.f32 %v1040_v61, 0.0  ;;  %v4832_v61 = vld [vmem:[%s6505_s1 + $0x70] sm:$0xff]  }
 0x1bf   : > { %4448 = vmatpush3.bf16.msra.mxu1 %v4829_v58 }
 0x1c0   : > { %v1061_v0 = vpack.c.bf16 %v1056_v63, %v1055_v62  ;;  %4449 = vmatprep.subr.bf16.mxu1 %v4830_v59  ;;  %v4833_v62 = vld [vmem:[%s6505_s1 + $0x30] sm:$0xff]   ;;  %v4834_v63 = vld [vmem:[%s6505_s1 + $0x78] sm:$0xff]  }
 0x1c2   : > { %4688 = vmatprep.mubr.msk.bf16.mxu1 %vm1071_vm5, %v1061_v0  ;;  %v4835_v0 = vld [vmem:[%s6505_s1 + $0x38] sm:$0xff]  }
 0x1c3   : > { %4450 = vmatpush3.bf16.msra.mxu1 %v4831_v60 }
 0x1c4   : > { %4451 = vmatprep.subr.bf16.mxu1 %v4832_v61 }
 0x1c7   : > { %4452 = vmatpush3.bf16.msra.mxu1 %v4833_v62 }
 0x1c8   : > { %4453 = vmatprep.subr.bf16.mxu1 %v4834_v63 }
 0x1cb   : > { %4454 = vmatpush3.bf16.msra.mxu1 %v4835_v0 }
 0x1ce   : > { %v4422_v1 = vpop.f32.mrb[12].mxu0 }
 0x1cf   : > { %v4423_v2 = vpop.f32.mrb[13].mxu0 }
 0x1d0   : > { %v4424_v4 = vadd.f32 %v4423_v2, %v4422_v1  ;;  %v4425_v5 = vpop.f32.mrb[14].mxu0  ;;  %v4913_v2 = vld [vmem:[%s5133_s21 + $0x30] sm:$0xff] }
 0x1d1   : > { %v4426_v6 = vpop.f32.mrb[15].mxu0 }
 0x1d2   : > { %v1045_v7 = vadd.f32 %v4680_v29, %v4424_v4  ;;  %v4427_v8 = vadd.f32 %v4426_v6, %v4425_v5  ;;  %v4914_v6 = vld [vmem:[%s5133_s21 + $0x20] sm:$0xff] }
 0x1d4   : > { %v1048_v11 = vadd.f32 %v4681_v31, %v4427_v8  ;;  %v1057_v12 = vmax.f32 %v1045_v7, 0.0  ;;  %v4912_v31 = vld [vmem:[%s5133_s21 + $0x8] sm:$0xff] }
 0x1d6   : > { %v1058_v13 = vmax.f32 %v1048_v11, 0.0 }
 0x1d8   : > { %v1062_v15 = vpack.c.bf16 %v1058_v13, %v1057_v12  ;;  %v4915_v12 = vld [vmem:[%s5133_s21 + $0x38] sm:$0xff]  ;;  %s4921_s21 = sshll.u32 %s4985_s17, 4  ;;  %s4922_s21 = int_to_ptr.vmem [resolvable:$false] %s4921_s21 }
 0x1d9   : > { %s4923_s22 = scalar_lea.vmem %s4922_s21, 2048 }
 0x1da   : > { %4689 = vmatmul.mubr.msk.bf16.gmra.mrb[12].mxu1 %vm1071_vm5, %v1062_v15 }
 0x27d   : > { %v4686_v10 = vpop.f32.mrb[8].mxu1 }
 0x27e   : > { %v5463_v21 = vadd.f32 %v4909_v20, %v4686_v10  ;;  %v1118_v22 = vpop.f32.mrb[9].mxu1 }
 0x27f   : > { %v5466_v25 = vadd.f32 %v4910_v23, %v1118_v22  ;;  %v4687_v26 = vpop.f32.mrb[10].mxu1 }
 0x280   : > { %v1159_v27 = vmax.f32 %v5463_v21, 0.0  ;;  %v5470_v3 = vadd.f32 %v4911_v28, %v4687_v26  ;;  %v1121_v29 = vpop.f32.mrb[11].mxu1 }
 0x281   : > { %v1157_v30 = vmax.f32 %v5466_v25, 0.0  ;;  %v5474_v32 = vadd.f32 %v4912_v31, %v1121_v29 }
 0x282   : > { %1167 = vst.msk [vmem:[#allocation2 + $0x50] sm:$0xff] %vm380_vm1, %v1159_v27  ;;  %v1160_v33 = vmax.f32 %v5470_v3, 0.0 }
 0x283   : > { %1165 = vst.msk [vmem:[#allocation2 + $0x20] sm:$0xff] %vm380_vm1, %v1157_v30  ;;  %v1158_v34 = vmax.f32 %v5474_v32, 0.0 }
 0x284   : > { %1168 = vst.msk [vmem:[#allocation2 + $0x68] sm:$0xff] %vm380_vm1, %v1160_v33 }
 0x285   : > { %1166 = vst.msk [vmem:[#allocation2 + $0x38] sm:$0xff] %vm380_vm1, %v1158_v34 }
 0x289   : > { %v1398_v35 = vld [vmem:[#allocation2 + $0x4f] sm:$0xff] }
 0x28a   : > { %v1351_v36 = vld [vmem:[#allocation2 + $0x51] sm:$0xff]  ;;  %1415 = vrot.lane.b32.xlu1 %v1398_v35, %s4983_s25  ;;  %v1285_v38 = vld [vmem:[#allocation2 + $0x1f] sm:$0xff]  ;;  %1184 = vst.msk [vmem:[#allocation3 + $0x78] sm:$0xff] %vm380_vm1, %v1398_v35 }
 0x28b   : > { %v1446_v37 = vld [vmem:[#allocation2 + $0x50] sm:$0xff]  ;;  %1369 = vrot.lane.b32.xlu0 %v1351_v36, %s4982_s24  ;;  %1502 = vst.msk [vmem:[#allocation3 + $0x38] sm:$0xff] %vm380_vm1, %v1351_v36  ;;  %v1190_v39 = vld [vmem:[#allocation2 + $0x20] sm:$0xff]  ;;  %v1447_v41 = vld [vmem:[#allocation2 + $0x68] sm:$0xff] }
 0x28c   : > { %1343 = vst.msk [vmem:[#allocation3 + $0x58] sm:$0xff] %vm380_vm1, %v1446_v37  ;;  %v1399_v40 = vld [vmem:[#allocation2 + $0x67] sm:$0xff]  ;;  %1341 = vst.msk [vmem:[#allocation3 + $0x8] sm:$0xff] %vm380_vm1, %v1190_v39  ;;  %v5489_v42 = vld [vmem:[#allocation2 + $0x39] sm:$0xff] }
 0x28d   : > { %v1352_v24 = vld [vmem:[#allocation2 + $0x69] sm:$0xff]  ;;  %1182 = vst.msk [vmem:[#allocation3 + $0x28] sm:$0xff] %vm380_vm1, %v1285_v38  ;;  %v5491_v43 = vld [vmem:[#allocation2 + $0x37] sm:$0xff]  ;;  %1344 = vst.msk [vmem:[#allocation3 + $0x80] sm:$0xff] %vm380_vm1, %v1447_v41 }
 0x28e   : > { %v5493_v44 = vld [vmem:[#allocation2 + $0x38] sm:$0xff]  ;;  %1503 = vst.msk [vmem:[#allocation3 + $0x60] sm:$0xff] %vm380_vm1, %v1352_v24  ;;  %1185 = vst.msk [vmem:[#allocation3 + $0xa0] sm:$0xff] %vm380_vm1, %v1399_v40  ;;  %1463 = vrot.lane.b32.xlu1 %v1446_v37, %s4984_s14  ;;  %v1349_v49 = vld [vmem:[#allocation2 + $0x21] sm:$0xff] }
 0x28f   : > { %1501 = vst.msk [vmem:[#allocation3 + $0x10] sm:$0xff] %vm380_vm1, %v5489_v42  ;;  %1342 = vst.msk [vmem:[#allocation3 + $0x30] sm:$0xff] %vm380_vm1, %v5493_v44  ;;  %1305 = vrot.lane.b32.xlu0 %v1398_v35, %s4984_s14 }
 0x290   : > { %1183 = vst.msk [vmem:[#allocation3 + $0x50] sm:$0xff] %vm380_vm1, %v5491_v43 }
 0x292   : > { %1211 = vrot.lane.b32.xlu1 %v1446_v37, %s4982_s24  ;;  %v1514_v52 = vld [vmem:[#allocation3 + $0x38] sm:$0xff] }
 0x293   : > { %1365 = vrot.lane.b32.xlu0 %v1349_v49, %s4982_s24 }
 0x295   : > { %v1517_v35 = vld [vmem:[#allocation3 + $0x60] sm:$0xff] }
 0x296   : > { %v1511_v51 = vld [vmem:[#allocation3 + $0x10] sm:$0xff]  ;;  %1259 = vrot.lane.b32.xlu1 %v1351_v36, %s4983_s25 }
 0x297   : > { %v1535_v54 = vpack.c.bf16 %v1514_v52, %v1511_v51  ;;  %1301 = vrot.lane.b32.xlu0 %v1285_v38, %s4984_s14 }
 0x299   : > { %4696 = vmatprep.mubr.msk.bf16.mxu0 %vm380_vm1, %v1535_v54 }
 0x29a   : > { %1207 = vrot.lane.b32.xlu1 %v1190_v39, %s4982_s24 }
 0x29b   : > { %1417 = vrot.lane.b32.xlu0 %v1399_v40, %s4983_s25 }
 0x29e   : > { %1255 = vrot.lane.b32.xlu1 %v1349_v49, %s4983_s25 }
 0x29f   : > { %1465 = vrot.lane.b32.xlu0 %v1447_v41, %s4984_s14 }
 0x2a2   : > { %1371 = vrot.lane.b32.xlu1 %v1352_v24, %s4982_s24 }
 0x2a3   : > { %1213 = vrot.lane.b32.xlu0 %v1447_v41, %s4982_s24 }
 0x2a6   : > { %1307 = vrot.lane.b32.xlu1 %v1399_v40, %s4984_s14 }
 0x2a7   : > { %1261 = vrot.lane.b32.xlu0 %v1352_v24, %s4983_s25 }
 0x2aa   : > { %1367 = vrot.lane.b32.xlu1 %v5489_v42, %s4982_s24 }
 0x2ab   : > { %1413 = vrot.lane.b32.xlu0 %v5491_v43, %s4983_s25 }
 0x2ad   : > { %v4690_v1 = vpop.f32.mrb[12].mxu1 }
 0x2ae   : > { %v5572_v4 = vadd.f32 %v4913_v2, %v4690_v1  ;;  %1303 = vrot.lane.b32.xlu1 %v5491_v43, %s4984_s14  ;;  %v1134_v5 = vpop.f32.mrb[13].mxu1 }
 0x2af   : > { %1461 = vrot.lane.b32.xlu0 %v5493_v44, %s4984_s14  ;;  %v5579_v7 = vadd.f32 %v4914_v6, %v1134_v5  ;;  %v4691_v8 = vpop.f32.mrb[14].mxu1 }
 0x2b0   : > { %v1163_v11 = vmax.f32 %v5572_v4, 0.0  ;;  %v5583_v13 = vadd.f32 %v4915_v12, %v4691_v8  ;;  %v1137_v15 = vpop.f32.mrb[15].mxu1 }
 0x2b1   : > { %v1161_v16 = vmax.f32 %v5579_v7, 0.0  ;;  %v5587_v9 = vadd.f32 %v4916_v17, %v1137_v15 }
 0x2b2   : > { %1171 = vst.msk [vmem:[#allocation2 + $0xb0] sm:$0xff] %vm380_vm1, %v1163_v11  ;;  %v1164_v19 = vmax.f32 %v5583_v13, 0.0 }
 0x2b3   : > { %1209 = vrot.lane.b32.xlu0 %v5493_v44, %s4982_s24  ;;  %1169 = vst.msk [vmem:[#allocation2 + $0x80] sm:$0xff] %vm380_vm1, %v1161_v16  ;;  %v1162_v10 = vmax.f32 %v5587_v9, 0.0 }
 0x2b4   : > { %1172 = vst.msk [vmem:[#allocation2 + $0xc8] sm:$0xff] %vm380_vm1, %v1164_v19 }
 0x2b5   : > { %1170 = vst.msk [vmem:[#allocation2 + $0x98] sm:$0xff] %vm380_vm1, %v1162_v10 }
 0x2b7   : > { %1257 = vrot.lane.b32.xlu0 %v5489_v42, %s4983_s25 }
 0x2b9   : > { %v1402_v20 = vld [vmem:[#allocation2 + $0xaf] sm:$0xff] }
 0x2ba   : > { %v1355_v22 = vld [vmem:[#allocation2 + $0xb1] sm:$0xff]  ;;  %1423 = vrot.lane.b32.xlu1 %v1402_v20, %s4983_s25  ;;  %v1353_v26 = vld [vmem:[#allocation2 + $0x81] sm:$0xff]  ;;  %1188 = vst.msk [vmem:[#allocation3 + $0x118] sm:$0xff] %vm380_vm1, %v1402_v20 }
 0x2bb   : > { %v1450_v23 = vld [vmem:[#allocation2 + $0xb0] sm:$0xff]  ;;  %1377 = vrot.lane.b32.xlu0 %v1355_v22, %s4982_s24  ;;  %v1289_v27 = vld [vmem:[#allocation2 + $0x7f] sm:$0xff]  ;;  %1506 = vst.msk [vmem:[#allocation3 + $0xd8] sm:$0xff] %vm380_vm1, %v1355_v22  ;;  %1504 = vst.msk [vmem:[#allocation3 + $0x88] sm:$0xff] %vm380_vm1, %v1353_v26 }
 0x2bc   : > { %v1448_v28 = vld [vmem:[#allocation2 + $0x80] sm:$0xff]  ;;  %1347 = vst.msk [vmem:[#allocation3 + $0xf8] sm:$0xff] %vm380_vm1, %v1450_v23  ;;  %v1451_v29 = vld [vmem:[#allocation2 + $0xc8] sm:$0xff]  ;;  %1186 = vst.msk [vmem:[#allocation3 + $0xc8] sm:$0xff] %vm380_vm1, %v1289_v27 }
 0x2bd   : > { %v1499_v30 = vld [vmem:[#allocation2 + $0xc9] sm:$0xff]  ;;  %1345 = vst.msk [vmem:[#allocation3 + $0xa8] sm:$0xff] %vm380_vm1, %v1448_v28  ;;  %v1497_v31 = vld [vmem:[#allocation2 + $0x99] sm:$0xff]  ;;  %1348 = vst.msk [vmem:[#allocation3 + $0x120] sm:$0xff] %vm380_vm1, %v1451_v29 }
 0x2be   : > { %1507 = vst.msk [vmem:[#allocation3 + $0x100] sm:$0xff] %vm380_vm1, %v1499_v30  ;;  %v1401_v33 = vld [vmem:[#allocation2 + $0x97] sm:$0xff]  ;;  %1505 = vst.msk [vmem:[#allocation3 + $0xb0] sm:$0xff] %vm380_vm1, %v1497_v31  ;;  %1471 = vrot.lane.b32.xlu1 %v1450_v23, %s4984_s14  ;;  %v1403_v40 = vld [vmem:[#allocation2 + $0xc7] sm:$0xff] }
 0x2bf   : > { %v1449_v34 = vld [vmem:[#allocation2 + $0x98] sm:$0xff]  ;;  %1187 = vst.msk [vmem:[#allocation3 + $0xf0] sm:$0xff] %vm380_vm1, %v1401_v33  ;;  %1373 = vrot.lane.b32.xlu0 %v1353_v26, %s4982_s24 }
 0x2c0   : > { %1346 = vst.msk [vmem:[#allocation3 + $0xd0] sm:$0xff] %vm380_vm1, %v1449_v34 }
 0x2c2   : > { %1219 = vrot.lane.b32.xlu1 %v1450_v23, %s4982_s24  ;;  %v1520_v36 = vld [vmem:[#allocation3 + $0x88] sm:$0xff]  ;;  %v1526_v39 = vld [vmem:[#allocation3 + $0xd8] sm:$0xff] }
 0x2c3   : > { %1309 = vrot.lane.b32.xlu0 %v1289_v27, %s4984_s14  ;;  %v1538_v37 = vpack.c.bf16 %v1520_v36, %v1517_v35 }
 0x2c5   : > { %v1523_v38 = vld [vmem:[#allocation3 + $0xb0] sm:$0xff]  ;;  %4697 = vmatmul.mubr.msk.bf16.vlgmr.msra.gmra.mrb[16].mxu0 %vm380_vm1, %v1538_v37  ;;  %v1529_v24 = vld [vmem:[#allocation3 + $0x100] sm:$0xff] }
 0x2c6   : > { %v1541_v41 = vpack.c.bf16 %v1526_v39, %v1523_v38  ;;  %1267 = vrot.lane.b32.xlu1 %v1355_v22, %s4983_s25  ;;  %v1544_v42 = vpack.c.bf16 %v5456_v18, %v1529_v24  ;;  %v5638_v18 = vpop.permute.xlu1 %1427 }
 0x2c7   : > { %1425 = vrot.lane.b32.xlu0 %v1403_v40, %s4983_s25 }
 0x2c8   : > { %4700 = vmatprep.mubr.msk.bf16.mxu0 %vm380_vm1, %v1541_v41 }
 0x2ca   : > { %1419 = vrot.lane.b32.xlu1 %v1289_v27, %s4983_s25 }
 0x2cb   : > { %1473 = vrot.lane.b32.xlu0 %v1451_v29, %s4984_s14 }
 0x2cd   : > { %4701 = vmatmul.mubr.msk.bf16.gmra.mrb[20].mxu0 %vm380_vm1, %v1544_v42 }
 0x2ce   : > { %1467 = vrot.lane.b32.xlu1 %v1448_v28, %s4984_s14 }
 0x2cf   : > { %1421 = vrot.lane.b32.xlu0 %v1401_v33, %s4983_s25 }
 0x2d2   : > { %1215 = vrot.lane.b32.xlu1 %v1448_v28, %s4982_s24 }
 0x2d3   : > { %1469 = vrot.lane.b32.xlu0 %v1449_v34, %s4984_s14 }
 0x2d6   : > { %1263 = vrot.lane.b32.xlu1 %v1353_v26, %s4983_s25 }
 0x2d7   : > { %1217 = vrot.lane.b32.xlu0 %v1449_v34, %s4982_s24 }
 0x2da   : > { %1379 = vrot.lane.b32.xlu1 %v1499_v30, %s4982_s24 }
 0x2db   : > { %1265 = vrot.lane.b32.xlu0 %v1497_v31, %s4983_s25 }
 0x2de   : > { %1375 = vrot.lane.b32.xlu1 %v1497_v31, %s4982_s24 }
 0x2df   : > { %1313 = vrot.lane.b32.xlu0 %v1402_v20, %s4984_s14 }
 0x2e2   : > { %1311 = vrot.lane.b32.xlu1 %v1401_v33, %s4984_s14 }
 0x2e6   : > { %1475 = vrot.lane.b32.xlu1 %v5379_v14, %s4984_s14 }
 0x2ea   : > { %1315 = vrot.lane.b32.xlu1 %v1403_v40, %s4984_s14 }
 0x2fc   : > { %v1416_v43 = vpop.permute.xlu1 %1415 }
 0x2fd   : > { %v1370_v44 = vpop.permute.xlu0 %1369 }
 0x2fe   : > { %1391 = vst.msk [vmem:[#allocation3 + $0x58] sm:$0xff] %vm445_vm2, %v1370_v44 }
 0x300   : > { %v1464_v45 = vpop.permute.xlu1 %1463 }
 0x301   : > { %v1306_v46 = vpop.permute.xlu0 %1305 }
 0x304   : > { %v1212_v47 = vpop.permute.xlu1 %1211 }
 0x305   : > { %v1366_v48 = vpop.permute.xlu0 %1365  ;;  %1232 = vst.msk [vmem:[#allocation3 + $0x78] sm:$0xff] %vm445_vm2, %v1212_v47 }
 0x306   : > { %1389 = vst.msk [vmem:[#allocation3 + $0x8] sm:$0xff] %vm445_vm2, %v1366_v48 }
 0x308   : > { %v1260_v49 = vpop.permute.xlu1 %1259 }
 0x309   : > { %v1302_v50 = vpop.permute.xlu0 %1301  ;;  %1280 = vst.msk [vmem:[#allocation3 + $0x78] sm:$0xff] %vm494_vm3, %v1260_v49 }
 0x30a   : > { %1325 = vst.msk [vmem:[#allocation3] sm:$0xff] %vm543_vm4, %v1302_v50 }
 0x30c   : > { %v1208_v14 = vpop.permute.xlu1 %1207 }
 0x30d   : > { %v1418_v51 = vpop.permute.xlu0 %1417  ;;  %1230 = vst.msk [vmem:[#allocation3 + $0x28] sm:$0xff] %vm445_vm2, %v1208_v14 }
 0x30e   : > { %1439 = vst.msk [vmem:[#allocation3 + $0x58] sm:$0xff] %vm494_vm3, %v1418_v51 }
 0x310   : > { %v1256_v52 = vpop.permute.xlu1 %1255 }
 0x311   : > { %v1466_v53 = vpop.permute.xlu0 %1465  ;;  %1278 = vst.msk [vmem:[#allocation3 + $0x28] sm:$0xff] %vm494_vm3, %v1256_v52  ;;  %v1509_v63 = vld [vmem:[#allocation3] sm:$0xff] }
 0x312   : > { %1487 = vst.msk [vmem:[#allocation3 + $0x58] sm:$0xff] %vm543_vm4, %v1466_v53 }
 0x314   : > { %v1372_v54 = vpop.permute.xlu1 %1371 }
 0x315   : > { %v1214_v55 = vpop.permute.xlu0 %1213  ;;  %1392 = vst.msk [vmem:[#allocation3 + $0x80] sm:$0xff] %vm445_vm2, %v1372_v54 }
 0x316   : > { %1233 = vst.msk [vmem:[#allocation3 + $0xa0] sm:$0xff] %vm445_vm2, %v1214_v55  ;;  %v4836_v55 = vld [vmem:[%s6506_s2] sm:$0xff]  }
 0x317   : > { %4704 = vmatprep.subr.bf16.mxu0 %v4836_v55 }
 0x318   : > { %v1308_v56 = vpop.permute.xlu1 %1307  ;;  %4705 = vmatpush3.bf16.msra.mxu0 %v4836_v55  ;;  %v4837_v55 = vld [vmem:[%s6507_s3 + $0x80] sm:$0xff]  }
 0x319   : > { %v1262_v57 = vpop.permute.xlu0 %1261  ;;  %1328 = vst.msk [vmem:[#allocation3 + $0x78] sm:$0xff] %vm543_vm4, %v1308_v56  ;;  %v1516_v34 = vld [vmem:[#allocation3 + $0x58] sm:$0xff]  ;;  %4714 = vmatprep.subr.bf16.mxu0 %v4837_v55 }
 0x31a   : > { %1281 = vst.msk [vmem:[#allocation3 + $0xa0] sm:$0xff] %vm494_vm3, %v1262_v57 }
 0x31c   : > { %v1368_v59 = vpop.permute.xlu1 %1367 }
 0x31d   : > { %v1414_v58 = vpop.permute.xlu0 %1413  ;;  %1390 = vst.msk [vmem:[#allocation3 + $0x30] sm:$0xff] %vm445_vm2, %v1368_v59 }
 0x31e   : > { %1437 = vst.msk [vmem:[#allocation3 + $0x8] sm:$0xff] %vm494_vm3, %v1414_v58  ;;  %1438 = vst.msk [vmem:[#allocation3 + $0x30] sm:$0xff] %vm494_vm3, %v1416_v43 }
 0x31f   : > { %1486 = vst.msk [vmem:[#allocation3 + $0x30] sm:$0xff] %vm543_vm4, %v1464_v45 }
 0x320   : > { %v1304_v61 = vpop.permute.xlu1 %1303  ;;  %v1518_v37 = vld [vmem:[#allocation3 + $0x78] sm:$0xff] }
 0x321   : > { %v1462_v60 = vpop.permute.xlu0 %1461  ;;  %1326 = vst.msk [vmem:[#allocation3 + $0x28] sm:$0xff] %vm543_vm4, %v1304_v61 }
 0x322   : > { %1485 = vst.msk [vmem:[#allocation3 + $0x8] sm:$0xff] %vm543_vm4, %v1462_v60 }
 0x325   : > { %v1210_v62 = vpop.permute.xlu0 %1209 }
 0x326   : > { %1231 = vst.msk [vmem:[#allocation3 + $0x50] sm:$0xff] %vm445_vm2, %v1210_v62  ;;  %v1513_v2 = vld [vmem:[#allocation3 + $0x30] sm:$0xff] }
 0x328   : > { %v1512_v5 = vld [vmem:[#allocation3 + $0x28] sm:$0xff] }
 0x329   : > { %v1258_v0 = vpop.permute.xlu0 %1257  ;;  %v1510_v1 = vld [vmem:[#allocation3 + $0x8] sm:$0xff]  ;;  %v1533_v8 = vpack.c.bf16 %v1512_v5, %v1509_v63 }
 0x32a   : > { %1279 = vst.msk [vmem:[#allocation3 + $0x50] sm:$0xff] %vm494_vm3, %v1258_v0  ;;  %v1534_v6 = vpack.c.bf16 %v1513_v2, %v1510_v1 }
 0x32b   : > { %1327 = vst.msk [vmem:[#allocation3 + $0x50] sm:$0xff] %vm543_vm4, %v1306_v46 }
 0x32c   : > { %1733 = vmatprep.mubr.bf16.mxu1 %v1534_v6  ;;  %v1424_v11 = vpop.permute.xlu1 %1423 }
 0x32d   : > { %1734 = vmatmul.mubr.bf16.vlgmr.msra.gmra.mrb[16].mxu1 %v1533_v8  ;;  %v1378_v12 = vpop.permute.xlu0 %1377 }
 0x32e   : > { %1395 = vst.msk [vmem:[#allocation3 + $0xf8] sm:$0xff] %vm445_vm2, %v1378_v12 }
 0x330   : > { %v1472_v15 = vpop.permute.xlu1 %1471 }
 0x331   : > { %v1374_v16 = vpop.permute.xlu0 %1373 }
 0x332   : > { %1393 = vst.msk [vmem:[#allocation3 + $0xa8] sm:$0xff] %vm445_vm2, %v1374_v16  ;;  %v1515_v30 = vld [vmem:[#allocation3 + $0x50] sm:$0xff] }
 0x333   : > { %v1536_v38 = vpack.c.bf16 %v1518_v37, %v1515_v30 }
 0x334   : > { %v1220_v17 = vpop.permute.xlu1 %1219 }
 0x335   : > { %v1310_v19 = vpop.permute.xlu0 %1309  ;;  %1236 = vst.msk [vmem:[#allocation3 + $0x118] sm:$0xff] %vm445_vm2, %v1220_v17 }
 0x336   : > { %1329 = vst.msk [vmem:[#allocation3 + $0xa0] sm:$0xff] %vm543_vm4, %v1310_v19 }
 0x338   : > { %v1268_v10 = vpop.permute.xlu1 %1267 }
 0x339   : > { %v1426_v20 = vpop.permute.xlu0 %1425  ;;  %1284 = vst.msk [vmem:[#allocation3 + $0x118] sm:$0xff] %vm494_vm3, %v1268_v10 }
 0x33a   : > { %1443 = vst.msk [vmem:[#allocation3 + $0xf8] sm:$0xff] %vm494_vm3, %v1426_v20 }
 0x33c   : > { %v1420_v22 = vpop.permute.xlu1 %1419 }
 0x33d   : > { %v1474_v23 = vpop.permute.xlu0 %1473  ;;  %1440 = vst.msk [vmem:[#allocation3 + $0x80] sm:$0xff] %vm494_vm3, %v1420_v22  ;;  %v1521_v47 = vld [vmem:[#allocation3 + $0xa0] sm:$0xff] }
 0x33e   : > { %1491 = vst.msk [vmem:[#allocation3 + $0xf8] sm:$0xff] %vm543_vm4, %v1474_v23 }
 0x340   : > { %v1468_v26 = vpop.permute.xlu1 %1467 }
 0x341   : > { %v1422_v27 = vpop.permute.xlu0 %1421  ;;  %1488 = vst.msk [vmem:[#allocation3 + $0x80] sm:$0xff] %vm543_vm4, %v1468_v26 }
 0x342   : > { %1441 = vst.msk [vmem:[#allocation3 + $0xa8] sm:$0xff] %vm494_vm3, %v1422_v27 }
 0x344   : > { %v1216_v28 = vpop.permute.xlu1 %1215 }
 0x345   : > { %v1470_v29 = vpop.permute.xlu0 %1469  ;;  %1234 = vst.msk [vmem:[#allocation3 + $0xc8] sm:$0xff] %vm445_vm2, %v1216_v28  ;;  %v1528_v50 = vld [vmem:[#allocation3 + $0xf8] sm:$0xff] }
 0x346   : > { %1489 = vst.msk [vmem:[#allocation3 + $0xa8] sm:$0xff] %vm543_vm4, %v1470_v29 }
 0x348   : > { %v1264_v31 = vpop.permute.xlu1 %1263  ;;  %v1519_v35 = vld [vmem:[#allocation3 + $0x80] sm:$0xff] }
 0x349   : > { %v1218_v33 = vpop.permute.xlu0 %1217  ;;  %1282 = vst.msk [vmem:[#allocation3 + $0xc8] sm:$0xff] %vm494_vm3, %v1264_v31  ;;  %v1537_v36 = vpack.c.bf16 %v1519_v35, %v1516_v34 }
 0x34a   : > { %1235 = vst.msk [vmem:[#allocation3 + $0xf0] sm:$0xff] %vm445_vm2, %v1218_v33 }
 0x34b   : > { %1741 = vmatprep.mubr.bf16.mxu1 %v1537_v36 }
 0x34c   : > { %1742 = vmatmul.mubr.bf16.gmra.mrb[20].mxu1 %v1536_v38  ;;  %v1380_v39 = vpop.permute.xlu1 %1379 }
 0x34d   : > { %v1266_v40 = vpop.permute.xlu0 %1265  ;;  %1396 = vst.msk [vmem:[#allocation3 + $0x120] sm:$0xff] %vm445_vm2, %v1380_v39  ;;  %v1522_v44 = vld [vmem:[#allocation3 + $0xa8] sm:$0xff] }
 0x34e   : > { %1283 = vst.msk [vmem:[#allocation3 + $0xf0] sm:$0xff] %vm494_vm3, %v1266_v40  ;;  %1444 = vst.msk [vmem:[#allocation3 + $0x120] sm:$0xff] %vm494_vm3, %v5638_v18 }
 0x350   : > { %v1376_v41 = vpop.permute.xlu1 %1375 }
 0x351   : > { %v1314_v24 = vpop.permute.xlu0 %1313  ;;  %1394 = vst.msk [vmem:[#allocation3 + $0xd0] sm:$0xff] %vm445_vm2, %v1376_v41 }
 0x352   : > { %1331 = vst.msk [vmem:[#allocation3 + $0xf0] sm:$0xff] %vm543_vm4, %v1314_v24 }
 0x353   : > { %1442 = vst.msk [vmem:[#allocation3 + $0xd0] sm:$0xff] %vm494_vm3, %v1424_v11 }
 0x354   : > { %1490 = vst.msk [vmem:[#allocation3 + $0xd0] sm:$0xff] %vm543_vm4, %v1472_v15  ;;  %v1312_v42 = vpop.permute.xlu1 %1311 }
 0x355   : > { %1330 = vst.msk [vmem:[#allocation3 + $0xc8] sm:$0xff] %vm543_vm4, %v1312_v42 }
 0x358   : > { %v1476_v43 = vpop.permute.xlu1 %1475 }
 0x359   : > { %1492 = vst.msk [vmem:[#allocation3 + $0x120] sm:$0xff] %vm543_vm4, %v1476_v43  ;;  %v1527_v52 = vld [vmem:[#allocation3 + $0xf0] sm:$0xff] }
 0x35b   : > { %v1525_v45 = vld [vmem:[#allocation3 + $0xd0] sm:$0xff] }
 0x35c   : > { %v1540_v46 = vpack.c.bf16 %v1525_v45, %v1522_v44  ;;  %v1316_v18 = vpop.permute.xlu1 %1315  ;;  %v1524_v48 = vld [vmem:[#allocation3 + $0xc8] sm:$0xff] }
 0x35d   : > { %1332 = vst.msk [vmem:[#allocation3 + $0x118] sm:$0xff] %vm543_vm4, %v1316_v18  ;;  %v1539_v49 = vpack.c.bf16 %v1524_v48, %v1521_v47 }
 0x35e   : > { %1749 = vmatprep.mubr.bf16.mxu1 %v1540_v46 }
 0x35f   : > { %1750 = vmatmul.mubr.bf16.gmra.mrb[24].mxu1 %v1539_v49 }
 0x360   : > { %v1531_v14 = vld [vmem:[#allocation3 + $0x120] sm:$0xff] }
 0x361   : > { %v1543_v51 = vpack.c.bf16 %v1531_v14, %v1528_v50 }
 0x363   : > { %1757 = vmatprep.mubr.bf16.mxu1 %v1543_v51 }
 0x364   : > { %v1530_v53 = vld [vmem:[#allocation3 + $0x118] sm:$0xff] }
 0x365   : > { %v1542_v54 = vpack.c.bf16 %v1530_v53, %v1527_v52  ;;  %v5694_v52 = vld [vmem:[#allocation2 + $0x8] sm:$0xff]  ;;  %v5698_v53 = vld [vmem:[#allocation2 + $0xdf] sm:$0xff] }
 0x366   : > { %1984 = vrot.lane.b32.xlu0 %v5694_v52, %s4982_s24  ;;  %2206 = vrot.lane.b32.xlu1 %v5698_v53, %s4983_s25 }
 0x367   : > { %1758 = vmatmul.mubr.bf16.gmra.mrb[28].mxu1 %v1542_v54  ;;  %v5700_v54 = vld [vmem:[#allocation2 + $0x9] sm:$0xff] }
 0x36a   : > { %2032 = vrot.lane.b32.xlu0 %v5700_v54, %s4983_s25 }
 0x398   : > { %v4698_v56 = vpop.f32.mrb[16].mxu0 }
 0x399   : > { %v1800_v57 = vpop.f32.mrb[17].mxu0 }
 0x39a   : > { %v4699_v58 = vpop.f32.mrb[18].mxu0 }
 0x39b   : > { %v1803_v59 = vpop.f32.mrb[19].mxu0 }
 0x3a0   : > { %v4702_v60 = vpop.f32.mrb[20].mxu0 }
 0x3a1   : > { %v1816_v61 = vpop.f32.mrb[21].mxu0 }
 0x3a2   : > { %v4703_v62 = vpop.f32.mrb[22].mxu0 }
 0x3a3   : > { %v1819_v63 = vpop.f32.mrb[23].mxu0 }
 0x400   : > { %v4455_v0 = vpop.f32.mrb[16].mxu1 }
 0x401   : > { %v4456_v1 = vpop.f32.mrb[17].mxu1 }
 0x402   : > { %v4457_v2 = vadd.f32 %v4456_v1, %v4455_v0  ;;  %v4458_v5 = vpop.f32.mrb[18].mxu1 }
 0x403   : > { %v4459_v6 = vpop.f32.mrb[19].mxu1 }
 0x404   : > { %v1801_v8 = vadd.f32 %v4457_v2, %v1800_v57  ;;  %v4460_v11 = vadd.f32 %v4459_v6, %v4458_v5  ;;  %v5712_v57 = vld [vmem:[#allocation3 + $0x128] sm:$0xff] }
 0x406   : > { %v1804_v12 = vadd.f32 %v4460_v11, %v1803_v59  ;;  %v1831_v15 = vmax.f32 %v1801_v8, 0.0  ;;  %v5715_v59 = vld [vmem:[#allocation2 + $0x7] sm:$0xff] }
 0x407   : > { %1960 = vst.msk [vmem:[#allocation3] sm:$0xff] %vm380_vm1, %v5715_v59 }
 0x408   : > { %v1832_v16 = vmax.f32 %v1804_v12, 0.0 }
 0x40a   : > { %v1839_v17 = vpack.c.bf16 %v1832_v16, %v1831_v15 }
 0x40c   : > { %4706 = vmatprep.mubr.msk.bf16.mxu0 %vm1071_vm5, %v1839_v17 }
 0x41f   : > { %v4461_v19 = vpop.f32.mrb[20].mxu1 }
 0x420   : > { %v4462_v10 = vpop.f32.mrb[21].mxu1 }
 0x421   : > { %v4463_v20 = vadd.f32 %v4462_v10, %v4461_v19  ;;  %v4464_v22 = vpop.f32.mrb[22].mxu1 }
 0x422   : > { %v4465_v23 = vpop.f32.mrb[23].mxu1 }
 0x423   : > { %v1809_v26 = vadd.f32 %v4698_v56, %v4463_v20  ;;  %v4466_v27 = vadd.f32 %v4465_v23, %v4464_v22  ;;  %v4838_v56 = vld [vmem:[%s6507_s3 + $0x88] sm:$0xff]  }
 0x425   : > { %v1812_v28 = vadd.f32 %v4699_v58, %v4466_v27  ;;  %v1833_v29 = vmax.f32 %v1809_v26, 0.0  ;;  %v2960_v58 = vld [vmem:[#allocation2 + $0xe1] sm:$0xff] }
 0x426   : > { %2968 = vst.msk [vmem:[#allocation3 + $0x128] sm:$0xff] %vm380_vm1, %v2960_v58  ;;  %v4839_v27 = vld [vmem:[%s6507_s3 + $0x40] sm:$0xff]  }
 0x427   : > { %v1834_v30 = vmax.f32 %v1812_v28, 0.0  ;;  %v4840_v28 = vld [vmem:[%s6507_s3] sm:$0xff]   ;;  %4490 = vmatprep.subr.bf16.mxu1 %v4839_v27 }
 0x428   : > { %4491 = vmatpush3.bf16.msra.mxu1 %v4840_v28 }
 0x429   : > { %v1840_v31 = vpack.c.bf16 %v1834_v30, %v1833_v29  ;;  %v4841_v29 = vld [vmem:[%s6507_s3 + $0x48] sm:$0xff]  }
 0x42a   : > { %v4842_v30 = vld [vmem:[%s6507_s3 + $0x8] sm:$0xff]   ;;  %4492 = vmatprep.subr.bf16.mxu1 %v4841_v29 }
 0x42b   : > { %4707 = vmatmul.mubr.msk.bf16.vlgmr.msra.gmra.mrb[24].mxu0 %vm1071_vm5, %v1840_v31 }
 0x42c   : > { %4715 = vmatpush3.bf16.msra.mxu0 %v4837_v55  ;;  %4493 = vmatpush3.bf16.msra.mxu1 %v4842_v30 }
 0x42d   : > { %4716 = vmatprep.subr.bf16.mxu0 %v4838_v56 }
 0x430   : > { %4717 = vmatpush3.bf16.msra.mxu0 %v4838_v56 }
 0x432   : > { %v4467_v33 = vpop.f32.mrb[24].mxu1 }
 0x433   : > { %v4468_v34 = vpop.f32.mrb[25].mxu1 }
 0x434   : > { %v4469_v35 = vadd.f32 %v4468_v34, %v4467_v33  ;;  %v4470_v36 = vpop.f32.mrb[26].mxu1  ;;  %v4843_v33 = vld [vmem:[%s6507_s3 + $0x50] sm:$0xff]  }
 0x435   : > { %v4471_v37 = vpop.f32.mrb[27].mxu1  ;;  %4494 = vmatprep.subr.bf16.mxu1 %v4843_v33 }
 0x436   : > { %v1817_v38 = vadd.f32 %v4469_v35, %v1816_v61  ;;  %v4472_v39 = vadd.f32 %v4471_v37, %v4470_v36  ;;  %v4844_v36 = vld [vmem:[%s6507_s3 + $0x10] sm:$0xff]  }
 0x437   : > { %4495 = vmatpush3.bf16.msra.mxu1 %v4844_v36 }
 0x438   : > { %v1820_v40 = vadd.f32 %v4472_v39, %v1819_v63  ;;  %v1835_v41 = vmax.f32 %v1817_v38, 0.0  ;;  %v4845_v38 = vld [vmem:[%s6507_s3 + $0x58] sm:$0xff]  }
 0x439   : > { %4496 = vmatprep.subr.bf16.mxu1 %v4845_v38 }
 0x43a   : > { %v1836_v24 = vmax.f32 %v1820_v40, 0.0  ;;  %v4473_v42 = vpop.f32.mrb[28].mxu1  ;;  %v4846_v40 = vld [vmem:[%s6507_s3 + $0x18] sm:$0xff]  }
 0x43b   : > { %v4474_v43 = vpop.f32.mrb[29].mxu1  ;;  %4497 = vmatpush3.bf16.msra.mxu1 %v4846_v40 }
 0x43c   : > { %v1841_v44 = vpack.c.bf16 %v1836_v24, %v1835_v41  ;;  %v4475_v45 = vadd.f32 %v4474_v43, %v4473_v42  ;;  %v4476_v46 = vpop.f32.mrb[30].mxu1  ;;  %v4847_v42 = vld [vmem:[%s6507_s3 + $0x60] sm:$0xff]  }
 0x43d   : > { %v4477_v18 = vpop.f32.mrb[31].mxu1  ;;  %4498 = vmatprep.subr.bf16.mxu1 %v4847_v42 }
 0x43e   : > { %v1825_v47 = vadd.f32 %v4702_v60, %v4475_v45  ;;  %v4478_v48 = vadd.f32 %v4477_v18, %v4476_v46  ;;  %4710 = vmatprep.mubr.msk.bf16.mxu0 %vm1071_vm5, %v1841_v44  ;;  %v1985_v60 = vpop.permute.xlu0 %1984 }
 0x43f   : > { %2008 = vst.msk [vmem:[#allocation3] sm:$0xff] %vm445_vm2, %v1985_v60 }
 0x440   : > { %v1828_v49 = vadd.f32 %v4703_v62, %v4478_v48  ;;  %v1837_v50 = vmax.f32 %v1825_v47, 0.0  ;;  %v4848_v48 = vld [vmem:[%s6507_s3 + $0x20] sm:$0xff]  }
 0x441   : > { %4499 = vmatpush3.bf16.msra.mxu1 %v4848_v48 }
 0x442   : > { %v1838_v14 = vmax.f32 %v1828_v49, 0.0  ;;  %v2033_v61 = vpop.permute.xlu0 %2032 }
 0x443   : > { %2056 = vst.msk [vmem:[#allocation3] sm:$0xff] %vm494_vm3, %v2033_v61 }
 0x444   : > { %v1842_v51 = vpack.c.bf16 %v1838_v14, %v1837_v50  ;;  %v4851_v50 = vld [vmem:[%s6507_s3 + $0x70] sm:$0xff]  }
 0x446   : > { %4711 = vmatmul.mubr.msk.bf16.gmra.mrb[28].mxu0 %vm1071_vm5, %v1842_v51 }
 0x4fe   : > { %v4708_v62 = vpop.f32.mrb[24].mxu0 }
 0x4ff   : > { %v1930_v63 = vadd.f32 %v4708_v62, %v5463_v21  ;;  %v1897_v0 = vpop.f32.mrb[25].mxu0 }
 0x500   : > { %v1928_v1 = vadd.f32 %v1897_v0, %v5466_v25  ;;  %v4709_v2 = vpop.f32.mrb[26].mxu0 }
 0x501   : > { %v1938_v5 = vmax.f32 %v1930_v63, 0.0  ;;  %v1931_v6 = vadd.f32 %v4709_v2, %v5470_v3  ;;  %v1900_v8 = vpop.f32.mrb[27].mxu0  ;;  %v4852_v2 = vld [vmem:[%s6507_s3 + $0x30] sm:$0xff]  }
 0x502   : > { %v1936_v11 = vmax.f32 %v1928_v1, 0.0  ;;  %v1929_v12 = vadd.f32 %v1900_v8, %v5474_v32 }
 0x503   : > { %1946 = vst.msk [vmem:[#allocation2 + $0x50] sm:$0xff] %vm380_vm1, %v1938_v5  ;;  %v1939_v15 = vmax.f32 %v1931_v6, 0.0  ;;  %v4853_v5 = vld [vmem:[%s6507_s3 + $0x78] sm:$0xff]  }
 0x504   : > { %1944 = vst.msk [vmem:[#allocation2 + $0x20] sm:$0xff] %vm380_vm1, %v1936_v11  ;;  %v1937_v16 = vmax.f32 %v1929_v12, 0.0  ;;  %v4854_v6 = vld [vmem:[%s6507_s3 + $0x38] sm:$0xff]  }
 0x505   : > { %1947 = vst.msk [vmem:[#allocation2 + $0x68] sm:$0xff] %vm380_vm1, %v1939_v15 }
 0x506   : > { %1945 = vst.msk [vmem:[#allocation2 + $0x38] sm:$0xff] %vm380_vm1, %v1937_v16 }
 0x50a   : > { %v2177_v21 = vld [vmem:[#allocation2 + $0x4f] sm:$0xff] }
 0x50b   : > { %v2130_v25 = vld [vmem:[#allocation2 + $0x51] sm:$0xff]  ;;  %2194 = vrot.lane.b32.xlu1 %v2177_v21, %s4983_s25  ;;  %v2064_v3 = vld [vmem:[#allocation2 + $0x1f] sm:$0xff]  ;;  %1963 = vst.msk [vmem:[#allocation3 + $0x78] sm:$0xff] %vm380_vm1, %v2177_v21 }
 0x50c   : > { %v2225_v17 = vld [vmem:[#allocation2 + $0x50] sm:$0xff]  ;;  %2148 = vrot.lane.b32.xlu0 %v2130_v25, %s4982_s24  ;;  %2281 = vst.msk [vmem:[#allocation3 + $0x38] sm:$0xff] %vm380_vm1, %v2130_v25  ;;  %v1969_v32 = vld [vmem:[#allocation2 + $0x20] sm:$0xff]  ;;  %v5736_v10 = vld [vmem:[#allocation2 + $0x68] sm:$0xff] }
 0x50d   : > { %2122 = vst.msk [vmem:[#allocation3 + $0x58] sm:$0xff] %vm380_vm1, %v2225_v17  ;;  %v5734_v19 = vld [vmem:[#allocation2 + $0x67] sm:$0xff]  ;;  %2120 = vst.msk [vmem:[#allocation3 + $0x8] sm:$0xff] %vm380_vm1, %v1969_v32  ;;  %v5742_v22 = vld [vmem:[#allocation2 + $0x39] sm:$0xff] }
 0x50e   : > { %v5738_v20 = vld [vmem:[#allocation2 + $0x69] sm:$0xff]  ;;  %1961 = vst.msk [vmem:[#allocation3 + $0x28] sm:$0xff] %vm380_vm1, %v2064_v3  ;;  %v5744_v23 = vld [vmem:[#allocation2 + $0x37] sm:$0xff]  ;;  %2123 = vst.msk [vmem:[#allocation3 + $0x80] sm:$0xff] %vm380_vm1, %v5736_v10 }
 0x50f   : > { %v5746_v26 = vld [vmem:[#allocation2 + $0x38] sm:$0xff]  ;;  %2282 = vst.msk [vmem:[#allocation3 + $0x60] sm:$0xff] %vm380_vm1, %v5738_v20  ;;  %1964 = vst.msk [vmem:[#allocation3 + $0xa0] sm:$0xff] %vm380_vm1, %v5734_v19  ;;  %2242 = vrot.lane.b32.xlu1 %v2225_v17, %s4984_s14  ;;  %v2128_v31 = vld [vmem:[#allocation2 + $0x21] sm:$0xff] }
 0x510   : > { %2280 = vst.msk [vmem:[#allocation3 + $0x10] sm:$0xff] %vm380_vm1, %v5742_v22  ;;  %2121 = vst.msk [vmem:[#allocation3 + $0x30] sm:$0xff] %vm380_vm1, %v5746_v26  ;;  %2084 = vrot.lane.b32.xlu0 %v2177_v21, %s4984_s14 }
 0x511   : > { %1962 = vst.msk [vmem:[#allocation3 + $0x50] sm:$0xff] %vm380_vm1, %v5744_v23 }
 0x513   : > { %1990 = vrot.lane.b32.xlu1 %v2225_v17, %s4982_s24  ;;  %v2293_v35 = vld [vmem:[#allocation3 + $0x38] sm:$0xff] }
 0x514   : > { %2144 = vrot.lane.b32.xlu0 %v2128_v31, %s4982_s24 }
 0x516   : > { %v2296_v8 = vld [vmem:[#allocation3 + $0x60] sm:$0xff] }
 0x517   : > { %v2290_v34 = vld [vmem:[#allocation3 + $0x10] sm:$0xff]  ;;  %2038 = vrot.lane.b32.xlu1 %v2130_v25, %s4983_s25 }
 0x518   : > { %v2314_v37 = vpack.c.bf16 %v2293_v35, %v2290_v34  ;;  %2080 = vrot.lane.b32.xlu0 %v2064_v3, %s4984_s14 }
 0x519   : > { %v4712_v39 = vpop.f32.mrb[28].mxu0 }
 0x51a   : > { %4718 = vmatprep.mubr.msk.bf16.mxu0 %vm380_vm1, %v2314_v37  ;;  %v1934_v41 = vadd.f32 %v4712_v39, %v5572_v4  ;;  %v1913_v24 = vpop.f32.mrb[29].mxu0 }
 0x51b   : > { %v1932_v43 = vadd.f32 %v1913_v24, %v5579_v7  ;;  %1986 = vrot.lane.b32.xlu1 %v1969_v32, %s4982_s24  ;;  %v4713_v44 = vpop.f32.mrb[30].mxu0  ;;  %v5899_v32 = vpop.permute.xlu1 %2206 }
 0x51c   : > { %2196 = vrot.lane.b32.xlu0 %v5734_v19, %s4983_s25  ;;  %v1942_v45 = vmax.f32 %v1934_v41, 0.0  ;;  %v1935_v46 = vadd.f32 %v4713_v44, %v5583_v13  ;;  %v1916_v18 = vpop.f32.mrb[31].mxu0  ;;  %v4849_v13 = vld [vmem:[%s6507_s3 + $0x68] sm:$0xff]  }
 0x51d   : > { %v1940_v47 = vmax.f32 %v1932_v43, 0.0  ;;  %v1933_v4 = vadd.f32 %v1916_v18, %v5587_v9  ;;  %v4850_v9 = vld [vmem:[%s6507_s3 + $0x28] sm:$0xff]   ;;  %4500 = vmatprep.subr.bf16.mxu1 %v4849_v13 }
 0x51e   : > { %1950 = vst.msk [vmem:[#allocation2 + $0xb0] sm:$0xff] %vm380_vm1, %v1942_v45  ;;  %v1943_v7 = vmax.f32 %v1935_v46, 0.0  ;;  %4501 = vmatpush3.bf16.msra.mxu1 %v4850_v9 }
 0x51f   : > { %1948 = vst.msk [vmem:[#allocation2 + $0x80] sm:$0xff] %vm380_vm1, %v1940_v47  ;;  %v1941_v49 = vmax.f32 %v1933_v4, 0.0  ;;  %2034 = vrot.lane.b32.xlu1 %v2128_v31, %s4983_s25  ;;  %4502 = vmatprep.subr.bf16.mxu1 %v4851_v50 }
 0x520   : > { %2244 = vrot.lane.b32.xlu0 %v5736_v10, %s4984_s14  ;;  %1951 = vst.msk [vmem:[#allocation2 + $0xc8] sm:$0xff] %vm380_vm1, %v1943_v7 }
 0x521   : > { %1949 = vst.msk [vmem:[#allocation2 + $0x98] sm:$0xff] %vm380_vm1, %v1941_v49 }
 0x522   : > { %4503 = vmatpush3.bf16.msra.mxu1 %v4852_v2 }
 0x523   : > { %2150 = vrot.lane.b32.xlu1 %v5738_v20, %s4982_s24  ;;  %4504 = vmatprep.subr.bf16.mxu1 %v4853_v5 }
 0x524   : > { %1992 = vrot.lane.b32.xlu0 %v5736_v10, %s4982_s24 }
 0x525   : > { %v5824_v14 = vld [vmem:[#allocation2 + $0xaf] sm:$0xff] }
 0x526   : > { %v2277_v51 = vld [vmem:[#allocation2 + $0xb1] sm:$0xff]  ;;  %v2275_v56 = vld [vmem:[#allocation2 + $0x81] sm:$0xff]  ;;  %1967 = vst.msk [vmem:[#allocation3 + $0x118] sm:$0xff] %vm380_vm1, %v5824_v14  ;;  %4505 = vmatpush3.bf16.msra.mxu1 %v4854_v6 }
 0x527   : > { %v2229_v55 = vld [vmem:[#allocation2 + $0xb0] sm:$0xff]  ;;  %2285 = vst.msk [vmem:[#allocation3 + $0xd8] sm:$0xff] %vm380_vm1, %v2277_v51  ;;  %v2179_v58 = vld [vmem:[#allocation2 + $0x7f] sm:$0xff]  ;;  %2086 = vrot.lane.b32.xlu1 %v5734_v19, %s4984_s14  ;;  %2283 = vst.msk [vmem:[#allocation3 + $0x88] sm:$0xff] %vm380_vm1, %v2275_v56 }
 0x528   : > { %v2227_v60 = vld [vmem:[#allocation2 + $0x80] sm:$0xff]  ;;  %2126 = vst.msk [vmem:[#allocation3 + $0xf8] sm:$0xff] %vm380_vm1, %v2229_v55  ;;  %2040 = vrot.lane.b32.xlu0 %v5738_v20, %s4983_s25  ;;  %v2278_v61 = vld [vmem:[#allocation2 + $0xc9] sm:$0xff]  ;;  %1965 = vst.msk [vmem:[#allocation3 + $0xc8] sm:$0xff] %vm380_vm1, %v2179_v58 }
 0x529   : > { %v2230_v62 = vld [vmem:[#allocation2 + $0xc8] sm:$0xff]  ;;  %2124 = vst.msk [vmem:[#allocation3 + $0xa8] sm:$0xff] %vm380_vm1, %v2227_v60  ;;  %v2276_v63 = vld [vmem:[#allocation2 + $0x99] sm:$0xff]  ;;  %2286 = vst.msk [vmem:[#allocation3 + $0x100] sm:$0xff] %vm380_vm1, %v2278_v61 }
 0x52a   : > { %v2180_v0 = vld [vmem:[#allocation2 + $0x97] sm:$0xff]  ;;  %2127 = vst.msk [vmem:[#allocation3 + $0x120] sm:$0xff] %vm380_vm1, %v2230_v62  ;;  %2284 = vst.msk [vmem:[#allocation3 + $0xb0] sm:$0xff] %vm380_vm1, %v2276_v63  ;;  %v2182_v3 = vld [vmem:[#allocation2 + $0xc7] sm:$0xff] }
 0x52b   : > { %v2228_v1 = vld [vmem:[#allocation2 + $0x98] sm:$0xff]  ;;  %1966 = vst.msk [vmem:[#allocation3 + $0xf0] sm:$0xff] %vm380_vm1, %v2180_v0  ;;  %2146 = vrot.lane.b32.xlu1 %v5742_v22, %s4982_s24 }
 0x52c   : > { %2125 = vst.msk [vmem:[#allocation3 + $0xd0] sm:$0xff] %vm380_vm1, %v2228_v1  ;;  %2192 = vrot.lane.b32.xlu0 %v5744_v23, %s4983_s25 }
 0x52e   : > { %v2299_v11 = vld [vmem:[#allocation3 + $0x88] sm:$0xff]  ;;  %v2305_v16 = vld [vmem:[#allocation3 + $0xd8] sm:$0xff] }
 0x52f   : > { %2082 = vrot.lane.b32.xlu1 %v5744_v23, %s4984_s14  ;;  %v2317_v12 = vpack.c.bf16 %v2299_v11, %v2296_v8 }
 0x530   : > { %2240 = vrot.lane.b32.xlu0 %v5746_v26, %s4984_s14  ;;  %v2308_v25 = vld [vmem:[#allocation3 + $0x100] sm:$0xff] }
 0x531   : > { %v2302_v15 = vld [vmem:[#allocation3 + $0xb0] sm:$0xff]  ;;  %4719 = vmatmul.mubr.msk.bf16.vlgmr.msra.gmra.mrb[32].mxu0 %vm380_vm1, %v2317_v12  ;;  %v2323_v17 = vpack.c.bf16 %v5712_v57, %v2308_v25 }
 0x532   : > { %v2320_v21 = vpack.c.bf16 %v2305_v16, %v2302_v15  ;;  %v2231_v57 = vld [vmem:[#allocation2 + $0xe0] sm:$0xff] }
 0x533   : > { %2202 = vrot.lane.b32.xlu1 %v5824_v14, %s4983_s25 }
 0x534   : > { %1988 = vrot.lane.b32.xlu0 %v5746_v26, %s4982_s24  ;;  %4722 = vmatprep.mubr.msk.bf16.mxu0 %vm380_vm1, %v2320_v21 }
 0x537   : > { %2250 = vrot.lane.b32.xlu1 %v2229_v55, %s4984_s14 }
 0x538   : > { %2036 = vrot.lane.b32.xlu0 %v5742_v22, %s4983_s25 }
 0x539   : > { %4723 = vmatmul.mubr.msk.bf16.gmra.mrb[36].mxu0 %vm380_vm1, %v2323_v17 }
 0x53b   : > { %1998 = vrot.lane.b32.xlu1 %v2229_v55, %s4982_s24 }
 0x53c   : > { %2156 = vrot.lane.b32.xlu0 %v2277_v51, %s4982_s24 }
 0x53f   : > { %2046 = vrot.lane.b32.xlu1 %v2277_v51, %s4983_s25 }
 0x540   : > { %2152 = vrot.lane.b32.xlu0 %v2275_v56, %s4982_s24 }
 0x543   : > { %2198 = vrot.lane.b32.xlu1 %v2179_v58, %s4983_s25 }
 0x544   : > { %2088 = vrot.lane.b32.xlu0 %v2179_v58, %s4984_s14 }
 0x547   : > { %2246 = vrot.lane.b32.xlu1 %v2227_v60, %s4984_s14 }
 0x548   : > { %2204 = vrot.lane.b32.xlu0 %v2182_v3, %s4983_s25 }
 0x54b   : > { %1994 = vrot.lane.b32.xlu1 %v2227_v60, %s4982_s24 }
 0x54c   : > { %2252 = vrot.lane.b32.xlu0 %v2230_v62, %s4984_s14 }
 0x54f   : > { %2042 = vrot.lane.b32.xlu1 %v2275_v56, %s4983_s25 }
 0x550   : > { %2200 = vrot.lane.b32.xlu0 %v2180_v0, %s4983_s25 }
 0x553   : > { %2158 = vrot.lane.b32.xlu1 %v2278_v61, %s4982_s24 }
 0x554   : > { %2248 = vrot.lane.b32.xlu0 %v2228_v1, %s4984_s14 }
 0x557   : > { %2154 = vrot.lane.b32.xlu1 %v2276_v63, %s4982_s24 }
 0x558   : > { %1996 = vrot.lane.b32.xlu0 %v2228_v1, %s4982_s24 }
 0x55b   : > { %2090 = vrot.lane.b32.xlu1 %v2180_v0, %s4984_s14 }
 0x55c   : > { %2044 = vrot.lane.b32.xlu0 %v2276_v63, %s4983_s25 }
 0x55f   : > { %2254 = vrot.lane.b32.xlu1 %v2231_v57, %s4984_s14 }
 0x560   : > { %2092 = vrot.lane.b32.xlu0 %v5824_v14, %s4984_s14 }
 0x563   : > { %2094 = vrot.lane.b32.xlu1 %v2182_v3, %s4984_s14 }
 0x564   : > { %2665 = vrot.lane.b32.xlu0 %v5694_v52, %s4982_s24 }
 0x567   : > { %2887 = vrot.lane.b32.xlu1 %v5698_v53, %s4983_s25 }
 0x568   : > { %2713 = vrot.lane.b32.xlu0 %v5700_v54, %s4983_s25 }
 0x56b   : > { %2935 = vrot.lane.b32.xlu1 %v2231_v57, %s4984_s14 }
 0x57d   : > { %v2195_v19 = vpop.permute.xlu1 %2194 }
 0x57e   : > { %v2149_v10 = vpop.permute.xlu0 %2148 }
 0x57f   : > { %2170 = vst.msk [vmem:[#allocation3 + $0x58] sm:$0xff] %vm445_vm2, %v2149_v10 }
 0x581   : > { %v2243_v20 = vpop.permute.xlu1 %2242 }
 0x582   : > { %v2085_v22 = vpop.permute.xlu0 %2084 }
 0x585   : > { %v1991_v23 = vpop.permute.xlu1 %1990 }
 0x586   : > { %v2145_v26 = vpop.permute.xlu0 %2144  ;;  %2011 = vst.msk [vmem:[#allocation3 + $0x78] sm:$0xff] %vm445_vm2, %v1991_v23 }
 0x587   : > { %2168 = vst.msk [vmem:[#allocation3 + $0x8] sm:$0xff] %vm445_vm2, %v2145_v26 }
 0x589   : > { %v2039_v52 = vpop.permute.xlu1 %2038 }
 0x58a   : > { %v2081_v53 = vpop.permute.xlu0 %2080  ;;  %2059 = vst.msk [vmem:[#allocation3 + $0x78] sm:$0xff] %vm494_vm3, %v2039_v52 }
 0x58b   : > { %2104 = vst.msk [vmem:[#allocation3] sm:$0xff] %vm543_vm4, %v2081_v53 }
 0x58d   : > { %v1987_v54 = vpop.permute.xlu1 %1986 }
 0x58e   : > { %v2197_v27 = vpop.permute.xlu0 %2196  ;;  %2009 = vst.msk [vmem:[#allocation3 + $0x28] sm:$0xff] %vm445_vm2, %v1987_v54 }
 0x58f   : > { %2218 = vst.msk [vmem:[#allocation3 + $0x58] sm:$0xff] %vm494_vm3, %v2197_v27 }
 0x591   : > { %v2035_v28 = vpop.permute.xlu1 %2034 }
 0x592   : > { %v2245_v29 = vpop.permute.xlu0 %2244  ;;  %v2288_v30 = vld [vmem:[#allocation3] sm:$0xff]  ;;  %2057 = vst.msk [vmem:[#allocation3 + $0x28] sm:$0xff] %vm494_vm3, %v2035_v28 }
 0x593   : > { %2266 = vst.msk [vmem:[#allocation3 + $0x58] sm:$0xff] %vm543_vm4, %v2245_v29 }
 0x594   : > { %2641 = vst.msk [vmem:[#allocation3] sm:$0xff] %vm380_vm1, %v5715_v59 }
 0x595   : > { %v2151_v31 = vpop.permute.xlu1 %2150 }
 0x596   : > { %v1993_v33 = vpop.permute.xlu0 %1992  ;;  %2171 = vst.msk [vmem:[#allocation3 + $0x80] sm:$0xff] %vm445_vm2, %v2151_v31  ;;  %v4855_v31 = vld [vmem:[%s6509_s5 + $0x80] sm:$0xff]  }
 0x597   : > { %2012 = vst.msk [vmem:[#allocation3 + $0xa0] sm:$0xff] %vm445_vm2, %v1993_v33  ;;  %4726 = vmatprep.subr.bf16.mxu0 %v4855_v31  ;;  %v4856_v33 = vld [vmem:[%s6509_s5 + $0x88] sm:$0xff]  }
 0x598   : > { %4727 = vmatpush3.bf16.msra.mxu0 %v4855_v31 }
 0x599   : > { %v2087_v34 = vpop.permute.xlu1 %2086  ;;  %4728 = vmatprep.subr.bf16.mxu0 %v4856_v33 }
 0x59a   : > { %v2041_v35 = vpop.permute.xlu0 %2040  ;;  %2107 = vst.msk [vmem:[#allocation3 + $0x78] sm:$0xff] %vm543_vm4, %v2087_v34  ;;  %v2295_v58 = vld [vmem:[#allocation3 + $0x58] sm:$0xff] }
 0x59b   : > { %2060 = vst.msk [vmem:[#allocation3 + $0xa0] sm:$0xff] %vm494_vm3, %v2041_v35 }
 0x59c   : > { %4729 = vmatpush3.bf16.msra.mxu0 %v4856_v33 }
 0x59d   : > { %v2147_v36 = vpop.permute.xlu1 %2146 }
 0x59e   : > { %v2193_v37 = vpop.permute.xlu0 %2192  ;;  %2169 = vst.msk [vmem:[#allocation3 + $0x30] sm:$0xff] %vm445_vm2, %v2147_v36 }
 0x59f   : > { %2216 = vst.msk [vmem:[#allocation3 + $0x8] sm:$0xff] %vm494_vm3, %v2193_v37  ;;  %2217 = vst.msk [vmem:[#allocation3 + $0x30] sm:$0xff] %vm494_vm3, %v2195_v19  ;;  %v5973_v37 = vld [vmem:[%s6508_s4] ss:$0 sm:$0xff] }
 0x5a0   : > { %2265 = vst.msk [vmem:[#allocation3 + $0x30] sm:$0xff] %vm543_vm4, %v2243_v20 }
 0x5a1   : > { %v2083_v59 = vpop.permute.xlu1 %2082  ;;  %v2297_v62 = vld [vmem:[#allocation3 + $0x78] sm:$0xff] }
 0x5a2   : > { %v2241_v38 = vpop.permute.xlu0 %2240  ;;  %2105 = vst.msk [vmem:[#allocation3 + $0x28] sm:$0xff] %vm543_vm4, %v2083_v59 }
 0x5a3   : > { %2264 = vst.msk [vmem:[#allocation3 + $0x8] sm:$0xff] %vm543_vm4, %v2241_v38 }
 0x5a5   : > { %v2203_v40 = vpop.permute.xlu1 %2202 }
 0x5a6   : > { %v1989_v39 = vpop.permute.xlu0 %1988 }
 0x5a7   : > { %2010 = vst.msk [vmem:[#allocation3 + $0x50] sm:$0xff] %vm445_vm2, %v1989_v39  ;;  %v2292_v43 = vld [vmem:[#allocation3 + $0x30] sm:$0xff] }
 0x5a9   : > { %v2251_v24 = vpop.permute.xlu1 %2250  ;;  %v2291_v44 = vld [vmem:[#allocation3 + $0x28] sm:$0xff] }
 0x5aa   : > { %v2037_v41 = vpop.permute.xlu0 %2036  ;;  %v2289_v42 = vld [vmem:[#allocation3 + $0x8] sm:$0xff]  ;;  %v2312_v46 = vpack.c.bf16 %v2291_v44, %v2288_v30 }
 0x5ab   : > { %2058 = vst.msk [vmem:[#allocation3 + $0x50] sm:$0xff] %vm494_vm3, %v2037_v41  ;;  %v2313_v45 = vpack.c.bf16 %v2292_v43, %v2289_v42 }
 0x5ac   : > { %2106 = vst.msk [vmem:[#allocation3 + $0x50] sm:$0xff] %vm543_vm4, %v2085_v22 }
 0x5ad   : > { %2519 = vmatprep.mubr.bf16.mxu1 %v2313_v45  ;;  %v1999_v47 = vpop.permute.xlu1 %1998 }
 0x5ae   : > { %2520 = vmatmul.mubr.bf16.vlgmr.msra.gmra.mrb[32].mxu1 %v2312_v46  ;;  %v2157_v18 = vpop.permute.xlu0 %2156  ;;  %2015 = vst.msk [vmem:[#allocation3 + $0x118] sm:$0xff] %vm445_vm2, %v1999_v47  ;;  %v4857_v46 = vld [vmem:[%s6509_s5 + $0x40] sm:$0xff]  }
 0x5af   : > { %2174 = vst.msk [vmem:[#allocation3 + $0xf8] sm:$0xff] %vm445_vm2, %v2157_v18  ;;  %4536 = vmatprep.subr.bf16.mxu1 %v4857_v46  ;;  %v4858_v47 = vld [vmem:[%s6509_s5] sm:$0xff]  }
 0x5b0   : > { %4537 = vmatpush3.bf16.msra.mxu1 %v4858_v47 }
 0x5b1   : > { %v2047_v4 = vpop.permute.xlu1 %2046 }
 0x5b2   : > { %v2153_v48 = vpop.permute.xlu0 %2152  ;;  %2063 = vst.msk [vmem:[#allocation3 + $0x118] sm:$0xff] %vm494_vm3, %v2047_v4  ;;  %v4859_v4 = vld [vmem:[%s6509_s5 + $0x48] sm:$0xff]  }
 0x5b3   : > { %2172 = vst.msk [vmem:[#allocation3 + $0xa8] sm:$0xff] %vm445_vm2, %v2153_v48  ;;  %v2294_v51 = vld [vmem:[#allocation3 + $0x50] sm:$0xff]  ;;  %4538 = vmatprep.subr.bf16.mxu1 %v4859_v4  ;;  %v4860_v48 = vld [vmem:[%s6509_s5 + $0x8] sm:$0xff]  }
 0x5b4   : > { %v2315_v63 = vpack.c.bf16 %v2297_v62, %v2294_v51  ;;  %4539 = vmatpush3.bf16.msra.mxu1 %v4860_v48  ;;  %v4865_v62 = vld [vmem:[%s6509_s5 + $0x60] sm:$0xff]  }
 0x5b5   : > { %v2199_v7 = vpop.permute.xlu1 %2198 }
 0x5b6   : > { %v2089_v49 = vpop.permute.xlu0 %2088  ;;  %2219 = vst.msk [vmem:[#allocation3 + $0x80] sm:$0xff] %vm494_vm3, %v2199_v7 }
 0x5b7   : > { %2108 = vst.msk [vmem:[#allocation3 + $0xa0] sm:$0xff] %vm543_vm4, %v2089_v49 }
 0x5b9   : > { %v2247_v13 = vpop.permute.xlu1 %2246 }
 0x5ba   : > { %v2205_v9 = vpop.permute.xlu0 %2204  ;;  %2267 = vst.msk [vmem:[#allocation3 + $0x80] sm:$0xff] %vm543_vm4, %v2247_v13 }
 0x5bb   : > { %2222 = vst.msk [vmem:[#allocation3 + $0xf8] sm:$0xff] %vm494_vm3, %v2205_v9  ;;  %v4861_v9 = vld [vmem:[%s6509_s5 + $0x50] sm:$0xff]  }
 0x5bc   : > { %4540 = vmatprep.subr.bf16.mxu1 %v4861_v9 }
 0x5bd   : > { %v1995_v50 = vpop.permute.xlu1 %1994 }
 0x5be   : > { %v2253_v14 = vpop.permute.xlu0 %2252  ;;  %2013 = vst.msk [vmem:[#allocation3 + $0xc8] sm:$0xff] %vm445_vm2, %v1995_v50  ;;  %v2300_v17 = vld [vmem:[#allocation3 + $0xa0] sm:$0xff] }
 0x5bf   : > { %2270 = vst.msk [vmem:[#allocation3 + $0xf8] sm:$0xff] %vm543_vm4, %v2253_v14 }
 0x5c1   : > { %v2043_v55 = vpop.permute.xlu1 %2042  ;;  %v2298_v60 = vld [vmem:[#allocation3 + $0x80] sm:$0xff] }
 0x5c2   : > { %v2201_v56 = vpop.permute.xlu0 %2200  ;;  %2061 = vst.msk [vmem:[#allocation3 + $0xc8] sm:$0xff] %vm494_vm3, %v2043_v55  ;;  %v2316_v61 = vpack.c.bf16 %v2298_v60, %v2295_v58  ;;  %v4862_v55 = vld [vmem:[%s6509_s5 + $0x10] sm:$0xff]   ;;  %v4864_v60 = vld [vmem:[%s6509_s5 + $0x18] sm:$0xff]  }
 0x5c3   : > { %2220 = vst.msk [vmem:[#allocation3 + $0xa8] sm:$0xff] %vm494_vm3, %v2201_v56  ;;  %v4863_v56 = vld [vmem:[%s6509_s5 + $0x58] sm:$0xff]   ;;  %4541 = vmatpush3.bf16.msra.mxu1 %v4862_v55 }
 0x5c4   : > { %2527 = vmatprep.mubr.bf16.mxu1 %v2316_v61  ;;  %4542 = vmatprep.subr.bf16.mxu1 %v4863_v56 }
 0x5c5   : > { %2528 = vmatmul.mubr.bf16.gmra.mrb[36].mxu1 %v2315_v63  ;;  %v2159_v0 = vpop.permute.xlu1 %2158 }
 0x5c6   : > { %v2249_v1 = vpop.permute.xlu0 %2248  ;;  %2175 = vst.msk [vmem:[#allocation3 + $0x120] sm:$0xff] %vm445_vm2, %v2159_v0 }
 0x5c7   : > { %2268 = vst.msk [vmem:[#allocation3 + $0xa8] sm:$0xff] %vm543_vm4, %v2249_v1  ;;  %4543 = vmatpush3.bf16.msra.mxu1 %v4864_v60 }
 0x5c8   : > { %2223 = vst.msk [vmem:[#allocation3 + $0x120] sm:$0xff] %vm494_vm3, %v5899_v32  ;;  %v2307_v32 = vld [vmem:[#allocation3 + $0xf8] sm:$0xff]  ;;  %4544 = vmatprep.subr.bf16.mxu1 %v4865_v62 }
 0x5c9   : > { %v2155_v2 = vpop.permute.xlu1 %2154 }
 0x5ca   : > { %v1997_v5 = vpop.permute.xlu0 %1996  ;;  %2173 = vst.msk [vmem:[#allocation3 + $0xd0] sm:$0xff] %vm445_vm2, %v2155_v2 }
 0x5cb   : > { %2014 = vst.msk [vmem:[#allocation3 + $0xf0] sm:$0xff] %vm445_vm2, %v1997_v5 }
 0x5cc   : > { %2221 = vst.msk [vmem:[#allocation3 + $0xd0] sm:$0xff] %vm494_vm3, %v2203_v40 }
 0x5cd   : > { %2269 = vst.msk [vmem:[#allocation3 + $0xd0] sm:$0xff] %vm543_vm4, %v2251_v24  ;;  %v2091_v6 = vpop.permute.xlu1 %2090 }
 0x5ce   : > { %v2045_v8 = vpop.permute.xlu0 %2044  ;;  %2109 = vst.msk [vmem:[#allocation3 + $0xc8] sm:$0xff] %vm543_vm4, %v2091_v6  ;;  %v2301_v15 = vld [vmem:[#allocation3 + $0xa8] sm:$0xff]  ;;  %v4866_v6 = vld [vmem:[%s6509_s5 + $0x20] sm:$0xff]  }
 0x5cf   : > { %2062 = vst.msk [vmem:[#allocation3 + $0xf0] sm:$0xff] %vm494_vm3, %v2045_v8  ;;  %v4867_v8 = vld [vmem:[%s6509_s5 + $0x68] sm:$0xff]   ;;  %4545 = vmatpush3.bf16.msra.mxu1 %v4866_v6 }
 0x5d0   : > { %4546 = vmatprep.subr.bf16.mxu1 %v4867_v8 }
 0x5d1   : > { %v2255_v11 = vpop.permute.xlu1 %2254 }
 0x5d2   : > { %v2093_v12 = vpop.permute.xlu0 %2092  ;;  %2271 = vst.msk [vmem:[#allocation3 + $0x120] sm:$0xff] %vm543_vm4, %v2255_v11 }
 0x5d3   : > { %2110 = vst.msk [vmem:[#allocation3 + $0xf0] sm:$0xff] %vm543_vm4, %v2093_v12 }
 0x5d4   : > { %v2304_v16 = vld [vmem:[#allocation3 + $0xd0] sm:$0xff] }
 0x5d5   : > { %v2319_v21 = vpack.c.bf16 %v2304_v16, %v2301_v15  ;;  %v2095_v25 = vpop.permute.xlu1 %2094  ;;  %v2303_v3 = vld [vmem:[#allocation3 + $0xc8] sm:$0xff] }
 0x5d6   : > { %2111 = vst.msk [vmem:[#allocation3 + $0x118] sm:$0xff] %vm543_vm4, %v2095_v25  ;;  %v2318_v57 = vpack.c.bf16 %v2303_v3, %v2300_v17  ;;  %v2666_v34 = vpop.permute.xlu0 %2665  ;;  %v4869_v25 = vld [vmem:[%s6509_s5 + $0x70] sm:$0xff]  }
 0x5d7   : > { %2535 = vmatprep.mubr.bf16.mxu1 %v2319_v21  ;;  %2689 = vst.msk [vmem:[#allocation3] sm:$0xff] %vm445_vm2, %v2666_v34  ;;  %v4868_v21 = vld [vmem:[%s6509_s5 + $0x28] sm:$0xff]   ;;  %v4870_v3 = vld [vmem:[%s6509_s5 + $0x30] sm:$0xff]  }
 0x5d8   : > { %2536 = vmatmul.mubr.bf16.gmra.mrb[40].mxu1 %v2318_v57  ;;  %v4871_v57 = vld [vmem:[%s6509_s5 + $0x78] sm:$0xff]  }
 0x5d9   : > { %v2310_v19 = vld [vmem:[#allocation3 + $0x120] sm:$0xff]  ;;  %4547 = vmatpush3.bf16.msra.mxu1 %v4868_v21 }
 0x5da   : > { %v2322_v10 = vpack.c.bf16 %v2310_v19, %v2307_v32  ;;  %v2306_v20 = vld [vmem:[#allocation3 + $0xf0] sm:$0xff]  ;;  %v2714_v35 = vpop.permute.xlu0 %2713  ;;  %4548 = vmatprep.subr.bf16.mxu1 %v4869_v25  ;;  %v4872_v32 = vld [vmem:[%s6509_s5 + $0x38] sm:$0xff]  }
 0x5db   : > { %2737 = vst.msk [vmem:[#allocation3] sm:$0xff] %vm494_vm3, %v2714_v35 }
 0x5dc   : > { %2543 = vmatprep.mubr.bf16.mxu1 %v2322_v10 }
 0x5dd   : > { %v2309_v22 = vld [vmem:[#allocation3 + $0x118] sm:$0xff]  ;;  %4549 = vmatpush3.bf16.msra.mxu1 %v4870_v3 }
 0x5de   : > { %v2321_v23 = vpack.c.bf16 %v2309_v22, %v2306_v20  ;;  %4550 = vmatprep.subr.bf16.mxu1 %v4871_v57 }
 0x5e0   : > { %2544 = vmatmul.mubr.bf16.gmra.mrb[44].mxu1 %v2321_v23 }
 0x5e1   : > { %4551 = vmatpush3.bf16.msra.mxu1 %v4872_v32 }
 0x604   : > { %v5950_v26 = vpop.f32.mrb[32].mxu0 }
 0x605   : > { %v2586_v52 = vpop.f32.mrb[33].mxu0 }
 0x606   : > { %v5952_v53 = vpop.f32.mrb[34].mxu0 }
 0x607   : > { %v2589_v54 = vpop.f32.mrb[35].mxu0 }
 0x60c   : > { %v5954_v27 = vpop.f32.mrb[36].mxu0 }
 0x60d   : > { %v5956_v28 = vpop.f32.mrb[37].mxu0 }
 0x60e   : > { %v5958_v29 = vpop.f32.mrb[38].mxu0 }
 0x60f   : > { %v5960_v30 = vpop.f32.mrb[39].mxu0 }
 0x681   : > { %v4506_v36 = vpop.f32.mrb[32].mxu1 }
 0x682   : > { %v4507_v59 = vpop.f32.mrb[33].mxu1 }
 0x683   : > { %v4508_v38 = vadd.f32 %v4507_v59, %v4506_v36  ;;  %v4509_v39 = vpop.f32.mrb[34].mxu1 }
 0x684   : > { %v4510_v40 = vpop.f32.mrb[35].mxu1 }
 0x685   : > { %v2522_v41 = vadd.f32 %v4508_v38, %v5973_v37  ;;  %v4511_v24 = vadd.f32 %v4510_v40, %v4509_v39 }
 0x687   : > { %v2587_v42 = vadd.f32 %v2586_v52, %v2522_v41  ;;  %v2525_v43 = vadd.f32 %v4511_v24, %v5973_v37 }
 0x689   : > { %v2617_v44 = vmax.f32 %v2587_v42, 0.0  ;;  %v2590_v45 = vadd.f32 %v2589_v54, %v2525_v43 }
 0x68b   : > { %2625 = vst.msk [vmem:[#allocation2 + $0x20] sm:$0xff] %vm380_vm1, %v2617_v44  ;;  %v2618_v18 = vmax.f32 %v2590_v45, 0.0 }
 0x68d   : > { %2626 = vst.msk [vmem:[#allocation2 + $0x38] sm:$0xff] %vm380_vm1, %v2618_v18 }
 0x692   : > { %v2650_v7 = vld [vmem:[#allocation2 + $0x20] sm:$0xff] }
 0x693   : > { %v2809_v49 = vld [vmem:[#allocation2 + $0x21] sm:$0xff]  ;;  %2667 = vrot.lane.b32.xlu1 %v2650_v7, %s4982_s24  ;;  %2801 = vst.msk [vmem:[#allocation3 + $0x8] sm:$0xff] %vm380_vm1, %v2650_v7 }
 0x694   : > { %v2745_v13 = vld [vmem:[#allocation2 + $0x1f] sm:$0xff]  ;;  %2825 = vrot.lane.b32.xlu0 %v2809_v49, %s4982_s24  ;;  %v2857_v14 = vld [vmem:[#allocation2 + $0x37] sm:$0xff] }
 0x695   : > { %2642 = vst.msk [vmem:[#allocation3 + $0x28] sm:$0xff] %vm380_vm1, %v2745_v13  ;;  %v2810_v50 = vld [vmem:[#allocation2 + $0x39] sm:$0xff]  ;;  %2643 = vst.msk [vmem:[#allocation3 + $0x50] sm:$0xff] %vm380_vm1, %v2857_v14 }
 0x696   : > { %v2905_v51 = vld [vmem:[#allocation2 + $0x38] sm:$0xff]  ;;  %2961 = vst.msk [vmem:[#allocation3 + $0x10] sm:$0xff] %vm380_vm1, %v2810_v50 }
 0x697   : > { %2802 = vst.msk [vmem:[#allocation3 + $0x30] sm:$0xff] %vm380_vm1, %v2905_v51  ;;  %2715 = vrot.lane.b32.xlu1 %v2809_v49, %s4983_s25 }
 0x698   : > { %2761 = vrot.lane.b32.xlu0 %v2745_v13, %s4984_s14  ;;  %v4512_v58 = vpop.f32.mrb[36].mxu1 }
 0x699   : > { %v4513_v61 = vpop.f32.mrb[37].mxu1 }
 0x69a   : > { %v4514_v63 = vadd.f32 %v4513_v61, %v4512_v58  ;;  %v4515_v0 = vpop.f32.mrb[38].mxu1 }
 0x69b   : > { %2827 = vrot.lane.b32.xlu1 %v2810_v50, %s4982_s24  ;;  %v4516_v1 = vpop.f32.mrb[39].mxu1 }
 0x69c   : > { %2873 = vrot.lane.b32.xlu0 %v2857_v14, %s4983_s25  ;;  %v2530_v2 = vadd.f32 %v4514_v63, %v5973_v37  ;;  %v4517_v5 = vadd.f32 %v4516_v1, %v4515_v0  ;;  %v2992_v1 = vld [vmem:[#allocation3 + $0x128] sm:$0xff] }
 0x69d   : > { %v2971_v38 = vld [vmem:[#allocation3 + $0x10] sm:$0xff] }
 0x69e   : > { %v2595_v11 = vadd.f32 %v5950_v26, %v2530_v2  ;;  %v2533_v12 = vadd.f32 %v4517_v5, %v5973_v37 }
 0x69f   : > { %2763 = vrot.lane.b32.xlu1 %v2857_v14, %s4984_s14 }
 0x6a0   : > { %2921 = vrot.lane.b32.xlu0 %v2905_v51, %s4984_s14  ;;  %v2619_v15 = vmax.f32 %v2595_v11, 0.0  ;;  %v2598_v16 = vadd.f32 %v5952_v53, %v2533_v12  ;;  %v6115_v11 = vpop.permute.xlu1 %2887 }
 0x6a2   : > { %2627 = vst.msk [vmem:[#allocation2 + $0x50] sm:$0xff] %vm380_vm1, %v2619_v15  ;;  %v2620_v17 = vmax.f32 %v2598_v16, 0.0 }
 0x6a4   : > { %2669 = vrot.lane.b32.xlu0 %v2905_v51, %s4982_s24  ;;  %2628 = vst.msk [vmem:[#allocation2 + $0x68] sm:$0xff] %vm380_vm1, %v2620_v17  ;;  %v6117_v12 = vpop.permute.xlu1 %2935 }
 0x6a8   : > { %2717 = vrot.lane.b32.xlu0 %v2810_v50, %s4983_s25 }
 0x6a9   : > { %v2858_v19 = vld [vmem:[#allocation2 + $0x4f] sm:$0xff] }
 0x6aa   : > { %v2811_v10 = vld [vmem:[#allocation2 + $0x51] sm:$0xff]  ;;  %2875 = vrot.lane.b32.xlu1 %v2858_v19, %s4983_s25  ;;  %2644 = vst.msk [vmem:[#allocation3 + $0x78] sm:$0xff] %vm380_vm1, %v2858_v19 }
 0x6ab   : > { %v2906_v20 = vld [vmem:[#allocation2 + $0x50] sm:$0xff]  ;;  %2962 = vst.msk [vmem:[#allocation3 + $0x38] sm:$0xff] %vm380_vm1, %v2811_v10  ;;  %v4518_v22 = vpop.f32.mrb[40].mxu1  ;;  %v2859_v23 = vld [vmem:[#allocation2 + $0x67] sm:$0xff] }
 0x6ac   : > { %2829 = vrot.lane.b32.xlu0 %v2811_v10, %s4982_s24  ;;  %2803 = vst.msk [vmem:[#allocation3 + $0x58] sm:$0xff] %vm380_vm1, %v2906_v20  ;;  %v2907_v26 = vld [vmem:[#allocation2 + $0x68] sm:$0xff]  ;;  %v4519_v53 = vpop.f32.mrb[41].mxu1  ;;  %2645 = vst.msk [vmem:[#allocation3 + $0xa0] sm:$0xff] %vm380_vm1, %v2859_v23 }
 0x6ad   : > { %v2812_v52 = vld [vmem:[#allocation2 + $0x69] sm:$0xff]  ;;  %2804 = vst.msk [vmem:[#allocation3 + $0x80] sm:$0xff] %vm380_vm1, %v2907_v26  ;;  %v4520_v54 = vadd.f32 %v4519_v53, %v4518_v22  ;;  %v4521_v31 = vpop.f32.mrb[42].mxu1 }
 0x6ae   : > { %2963 = vst.msk [vmem:[#allocation3 + $0x60] sm:$0xff] %vm380_vm1, %v2812_v52  ;;  %2923 = vrot.lane.b32.xlu1 %v2906_v20, %s4984_s14  ;;  %v4522_v33 = vpop.f32.mrb[43].mxu1 }
 0x6af   : > { %v2538_v34 = vadd.f32 %v4520_v54, %v5973_v37  ;;  %v4523_v35 = vadd.f32 %v4522_v33, %v4521_v31 }
 0x6b0   : > { %2765 = vrot.lane.b32.xlu0 %v2858_v19, %s4984_s14 }
 0x6b1   : > { %v2603_v36 = vadd.f32 %v5956_v28, %v2538_v34  ;;  %v2541_v59 = vadd.f32 %v4523_v35, %v5973_v37 }
 0x6b2   : > { %v2974_v39 = vld [vmem:[#allocation3 + $0x38] sm:$0xff]  ;;  %2671 = vrot.lane.b32.xlu1 %v2906_v20, %s4982_s24 }
 0x6b3   : > { %v2995_v40 = vpack.c.bf16 %v2974_v39, %v2971_v38  ;;  %v2621_v41 = vmax.f32 %v2603_v36, 0.0  ;;  %v2606_v24 = vadd.f32 %v5960_v30, %v2541_v59  ;;  %v4524_v42 = vpop.f32.mrb[44].mxu1 }
 0x6b4   : > { %2877 = vrot.lane.b32.xlu0 %v2859_v23, %s4983_s25  ;;  %v4525_v43 = vpop.f32.mrb[45].mxu1 }
 0x6b5   : > { %4730 = vmatprep.mubr.msk.bf16.mxu0 %vm380_vm1, %v2995_v40  ;;  %2629 = vst.msk [vmem:[#allocation2 + $0x80] sm:$0xff] %vm380_vm1, %v2621_v41  ;;  %v2622_v44 = vmax.f32 %v2606_v24, 0.0  ;;  %v4526_v28 = vadd.f32 %v4525_v43, %v4524_v42  ;;  %v4527_v45 = vpop.f32.mrb[46].mxu1 }
 0x6b6   : > { %2719 = vrot.lane.b32.xlu1 %v2811_v10, %s4983_s25  ;;  %v4528_v46 = vpop.f32.mrb[47].mxu1 }
 0x6b7   : > { %2630 = vst.msk [vmem:[#allocation2 + $0x98] sm:$0xff] %vm380_vm1, %v2622_v44  ;;  %v2546_v18 = vadd.f32 %v4526_v28, %v5973_v37  ;;  %v4529_v47 = vadd.f32 %v4528_v46, %v4527_v45 }
 0x6b8   : > { %2925 = vrot.lane.b32.xlu0 %v2907_v26, %s4984_s14 }
 0x6b9   : > { %v2611_v30 = vadd.f32 %v5954_v27, %v2546_v18  ;;  %v2549_v4 = vadd.f32 %v4529_v47, %v5973_v37 }
 0x6ba   : > { %2831 = vrot.lane.b32.xlu1 %v2812_v52, %s4982_s24 }
 0x6bb   : > { %v2623_v48 = vmax.f32 %v2611_v30, 0.0  ;;  %v2614_v7 = vadd.f32 %v5958_v29, %v2549_v4  ;;  %v2977_v29 = vld [vmem:[#allocation3 + $0x60] sm:$0xff] }
 0x6bc   : > { %2673 = vrot.lane.b32.xlu0 %v2907_v26, %s4982_s24  ;;  %v2860_v49 = vld [vmem:[#allocation2 + $0x7f] sm:$0xff] }
 0x6bd   : > { %v2813_v13 = vld [vmem:[#allocation2 + $0x81] sm:$0xff]  ;;  %2631 = vst.msk [vmem:[#allocation2 + $0xb0] sm:$0xff] %vm380_vm1, %v2623_v48  ;;  %v2624_v50 = vmax.f32 %v2614_v7, 0.0  ;;  %2646 = vst.msk [vmem:[#allocation3 + $0xc8] sm:$0xff] %vm380_vm1, %v2860_v49 }
 0x6be   : > { %v2908_v9 = vld [vmem:[#allocation2 + $0x80] sm:$0xff]  ;;  %2964 = vst.msk [vmem:[#allocation3 + $0x88] sm:$0xff] %vm380_vm1, %v2813_v13  ;;  %2767 = vrot.lane.b32.xlu1 %v2859_v23, %s4984_s14  ;;  %v2861_v27 = vld [vmem:[#allocation2 + $0x97] sm:$0xff] }
 0x6bf   : > { %2805 = vst.msk [vmem:[#allocation3 + $0xa8] sm:$0xff] %vm380_vm1, %v2908_v9  ;;  %v2909_v37 = vld [vmem:[#allocation2 + $0x98] sm:$0xff]  ;;  %2632 = vst.msk [vmem:[#allocation2 + $0xc8] sm:$0xff] %vm380_vm1, %v2624_v50 }
 0x6c0   : > { %2721 = vrot.lane.b32.xlu0 %v2812_v52, %s4983_s25  ;;  %v2957_v14 = vld [vmem:[#allocation2 + $0x99] sm:$0xff]  ;;  %2806 = vst.msk [vmem:[#allocation3 + $0xd0] sm:$0xff] %vm380_vm1, %v2909_v37  ;;  %2647 = vst.msk [vmem:[#allocation3 + $0xf0] sm:$0xff] %vm380_vm1, %v2861_v27 }
 0x6c1   : > { %2965 = vst.msk [vmem:[#allocation3 + $0xb0] sm:$0xff] %vm380_vm1, %v2957_v14 }
 0x6c2   : > { %2879 = vrot.lane.b32.xlu1 %v2860_v49, %s4983_s25 }
 0x6c4   : > { %2833 = vrot.lane.b32.xlu0 %v2813_v13, %s4982_s24  ;;  %v2958_v55 = vld [vmem:[#allocation2 + $0xb1] sm:$0xff] }
 0x6c5   : > { %v2980_v51 = vld [vmem:[#allocation3 + $0x88] sm:$0xff]  ;;  %v2862_v56 = vld [vmem:[#allocation2 + $0xaf] sm:$0xff]  ;;  %2966 = vst.msk [vmem:[#allocation3 + $0xd8] sm:$0xff] %vm380_vm1, %v2958_v55 }
 0x6c6   : > { %v2998_v58 = vpack.c.bf16 %v2980_v51, %v2977_v29  ;;  %v2910_v60 = vld [vmem:[#allocation2 + $0xb0] sm:$0xff]  ;;  %2648 = vst.msk [vmem:[#allocation3 + $0x118] sm:$0xff] %vm380_vm1, %v2862_v56  ;;  %2927 = vrot.lane.b32.xlu1 %v2908_v9, %s4984_s14  ;;  %v2911_v62 = vld [vmem:[#allocation2 + $0xc8] sm:$0xff] }
 0x6c7   : > { %v2959_v61 = vld [vmem:[#allocation2 + $0xc9] sm:$0xff]  ;;  %2807 = vst.msk [vmem:[#allocation3 + $0xf8] sm:$0xff] %vm380_vm1, %v2910_v60  ;;  %2808 = vst.msk [vmem:[#allocation3 + $0x120] sm:$0xff] %vm380_vm1, %v2911_v62 }
 0x6c8   : > { %2769 = vrot.lane.b32.xlu0 %v2860_v49, %s4984_s14  ;;  %4731 = vmatmul.mubr.msk.bf16.vlgmr.msra.gmra.mrb[40].mxu0 %vm380_vm1, %v2998_v58  ;;  %2967 = vst.msk [vmem:[#allocation3 + $0x100] sm:$0xff] %vm380_vm1, %v2959_v61  ;;  %v2983_v63 = vld [vmem:[#allocation3 + $0xb0] sm:$0xff] }
 0x6c9   : > { %v2863_v8 = vld [vmem:[#allocation2 + $0xc7] sm:$0xff] }
 0x6ca   : > { %2675 = vrot.lane.b32.xlu1 %v2908_v9, %s4982_s24 }
 0x6cc   : > { %2881 = vrot.lane.b32.xlu0 %v2861_v27, %s4983_s25  ;;  %v2986_v0 = vld [vmem:[#allocation3 + $0xd8] sm:$0xff] }
 0x6cd   : > { %v3001_v2 = vpack.c.bf16 %v2986_v0, %v2983_v63 }
 0x6ce   : > { %2723 = vrot.lane.b32.xlu1 %v2813_v13, %s4983_s25 }
 0x6cf   : > { %v2989_v5 = vld [vmem:[#allocation3 + $0x100] sm:$0xff]  ;;  %4734 = vmatprep.mubr.msk.bf16.mxu0 %vm380_vm1, %v3001_v2 }
 0x6d0   : > { %2929 = vrot.lane.b32.xlu0 %v2909_v37, %s4984_s14  ;;  %v3004_v6 = vpack.c.bf16 %v2992_v1, %v2989_v5 }
 0x6d2   : > { %4735 = vmatmul.mubr.msk.bf16.gmra.mrb[44].mxu0 %vm380_vm1, %v3004_v6  ;;  %2835 = vrot.lane.b32.xlu1 %v2957_v14, %s4982_s24 }
 0x6d4   : > { %2677 = vrot.lane.b32.xlu0 %v2909_v37, %s4982_s24 }
 0x6d6   : > { %2771 = vrot.lane.b32.xlu1 %v2861_v27, %s4984_s14 }
 0x6d8   : > { %2725 = vrot.lane.b32.xlu0 %v2957_v14, %s4983_s25 }
 0x6da   : > { %2883 = vrot.lane.b32.xlu1 %v2862_v56, %s4983_s25 }
 0x6dc   : > { %2837 = vrot.lane.b32.xlu0 %v2958_v55, %s4982_s24 }
 0x6de   : > { %2931 = vrot.lane.b32.xlu1 %v2910_v60, %s4984_s14 }
 0x6e0   : > { %2885 = vrot.lane.b32.xlu0 %v2863_v8, %s4983_s25 }
 0x6e2   : > { %2679 = vrot.lane.b32.xlu1 %v2910_v60, %s4982_s24 }
 0x6e4   : > { %2933 = vrot.lane.b32.xlu0 %v2911_v62, %s4984_s14 }
 0x6e6   : > { %2727 = vrot.lane.b32.xlu1 %v2958_v55, %s4983_s25 }
 0x6e8   : > { %2773 = vrot.lane.b32.xlu0 %v2862_v56, %s4984_s14 }
 0x6ea   : > { %2839 = vrot.lane.b32.xlu1 %v2959_v61, %s4982_s24  ;;  %s6440_s24 = scalar_lea.vmem [#allocation4], %s4237_s26 }
 0x6ee   : > { %2775 = vrot.lane.b32.xlu1 %v2863_v8, %s4984_s14  ;;  %s4387_s14 = sshll.u32 %s5059_s13, 10  ;;  %s6463_s13 = scalar_lea.sflag [#allocation5], %s323_s23 }
 0x6ef   : > { %s6455_s29 = scalar_lea.hbm %s6513_s9, %s4387_s14 }
 0x705   : > { %v2668_v15 = vpop.permute.xlu1 %2667 }
 0x706   : > { %v2826_v16 = vpop.permute.xlu0 %2825  ;;  %2690 = vst.msk [vmem:[#allocation3 + $0x28] sm:$0xff] %vm445_vm2, %v2668_v15 }
 0x707   : > { %2849 = vst.msk [vmem:[#allocation3 + $0x8] sm:$0xff] %vm445_vm2, %v2826_v16 }
 0x709   : > { %v2716_v21 = vpop.permute.xlu1 %2715 }
 0x70a   : > { %v2762_v25 = vpop.permute.xlu0 %2761  ;;  %2738 = vst.msk [vmem:[#allocation3 + $0x28] sm:$0xff] %vm494_vm3, %v2716_v21 }
 0x70b   : > { %2785 = vst.msk [vmem:[#allocation3] sm:$0xff] %vm543_vm4, %v2762_v25 }
 0x70d   : > { %v2828_v17 = vpop.permute.xlu1 %2827 }
 0x70e   : > { %v2874_v3 = vpop.permute.xlu0 %2873  ;;  %2850 = vst.msk [vmem:[#allocation3 + $0x30] sm:$0xff] %vm445_vm2, %v2828_v17 }
 0x70f   : > { %2897 = vst.msk [vmem:[#allocation3 + $0x8] sm:$0xff] %vm494_vm3, %v2874_v3 }
 0x711   : > { %v2764_v57 = vpop.permute.xlu1 %2763 }
 0x712   : > { %v2922_v32 = vpop.permute.xlu0 %2921  ;;  %2786 = vst.msk [vmem:[#allocation3 + $0x28] sm:$0xff] %vm543_vm4, %v2764_v57  ;;  %v2969_v59 = vld [vmem:[#allocation3] sm:$0xff]  ;;  %v3330_v57 = vld [vmem:[#allocation2 + $0x8] sm:$0xff] }
 0x713   : > { %2945 = vst.msk [vmem:[#allocation3 + $0x8] sm:$0xff] %vm543_vm4, %v2922_v32  ;;  %3346 = vrot.lane.b32.xlu0 %v3330_v57, %s4983_s25  ;;  %v4898_v57 = vld [vmem:[%s6511_s7 + $0xa0] sm:$0xff]  }
 0x716   : > { %v2670_v19 = vpop.permute.xlu0 %2669 }
 0x717   : > { %2691 = vst.msk [vmem:[#allocation3 + $0x50] sm:$0xff] %vm445_vm2, %v2670_v19 }
 0x719   : > { %v2972_v54 = vld [vmem:[#allocation3 + $0x28] sm:$0xff] }
 0x71a   : > { %v2718_v10 = vpop.permute.xlu0 %2717  ;;  %v2970_v34 = vld [vmem:[#allocation3 + $0x8] sm:$0xff]  ;;  %v2993_v38 = vpack.c.bf16 %v2972_v54, %v2969_v59  ;;  %v4875_v54 = vld [vmem:[%s6511_s7 + $0x48] sm:$0xff]  }
 0x71b   : > { %2739 = vst.msk [vmem:[#allocation3 + $0x50] sm:$0xff] %vm494_vm3, %v2718_v10  ;;  %v4879_v59 = vld [vmem:[%s6511_s7 + $0x58] sm:$0xff]  }
 0x71c   : > { %v2876_v20 = vpop.permute.xlu1 %2875 }
 0x71d   : > { %2898 = vst.msk [vmem:[#allocation3 + $0x30] sm:$0xff] %vm494_vm3, %v2876_v20 }
 0x71e   : > { %v2830_v22 = vpop.permute.xlu0 %2829 }
 0x71f   : > { %2851 = vst.msk [vmem:[#allocation3 + $0x58] sm:$0xff] %vm445_vm2, %v2830_v22 }
 0x720   : > { %v2924_v23 = vpop.permute.xlu1 %2923 }
 0x721   : > { %2946 = vst.msk [vmem:[#allocation3 + $0x30] sm:$0xff] %vm543_vm4, %v2924_v23 }
 0x722   : > { %v2766_v26 = vpop.permute.xlu0 %2765 }
 0x723   : > { %2787 = vst.msk [vmem:[#allocation3 + $0x50] sm:$0xff] %vm543_vm4, %v2766_v26  ;;  %v3578_v26 = vld [vmem:[#allocation2 + $0xe1] sm:$0xff] }
 0x724   : > { %v2672_v52 = vpop.permute.xlu1 %2671  ;;  %3586 = vst.msk [vmem:[#allocation3 + $0x138] sm:$0xff] %vm332_vm0, %v3578_v26 }
 0x725   : > { %2692 = vst.msk [vmem:[#allocation3 + $0x78] sm:$0xff] %vm445_vm2, %v2672_v52  ;;  %v4873_v52 = vld [vmem:[%s6511_s7 + $0x40] sm:$0xff]  }
 0x726   : > { %v2878_v53 = vpop.permute.xlu0 %2877  ;;  %4582 = vmatprep.subr.bf16.mxu0 %v4873_v52 }
 0x727   : > { %2899 = vst.msk [vmem:[#allocation3 + $0x58] sm:$0xff] %vm494_vm3, %v2878_v53  ;;  %v4874_v53 = vld [vmem:[%s6511_s7] sm:$0xff]  }
 0x728   : > { %v2720_v31 = vpop.permute.xlu1 %2719  ;;  %v2973_v35 = vld [vmem:[#allocation3 + $0x30] sm:$0xff]  ;;  %4583 = vmatpush3.bf16.msra.mxu0 %v4874_v53 }
 0x729   : > { %2740 = vst.msk [vmem:[#allocation3 + $0x78] sm:$0xff] %vm494_vm3, %v2720_v31  ;;  %v2994_v36 = vpack.c.bf16 %v2973_v35, %v2970_v34  ;;  %v3314_v31 = vld [vmem:[#allocation2 + $0x7] sm:$0xff]  ;;  %4584 = vmatprep.subr.bf16.mxu0 %v4875_v54  ;;  %v4877_v35 = vld [vmem:[%s6511_s7 + $0x50] sm:$0xff]  }
 0x72a   : > { %v2926_v33 = vpop.permute.xlu0 %2925  ;;  %v2975_v49 = vld [vmem:[#allocation3 + $0x50] sm:$0xff]  ;;  %3322 = vst.msk [vmem:[#allocation3] sm:$0xff] %vm332_vm0, %v3314_v31  ;;  %v3379_v34 = vld [vmem:[#allocation2 + $0x9] sm:$0xff] }
 0x72b   : > { %2947 = vst.msk [vmem:[#allocation3 + $0x58] sm:$0xff] %vm543_vm4, %v2926_v33  ;;  %3200 = vmatprep.mubr.bf16.mxu1 %v2994_v36  ;;  %v4876_v33 = vld [vmem:[%s6511_s7 + $0x8] sm:$0xff]   ;;  %v4878_v36 = vld [vmem:[%s6511_s7 + $0x10] sm:$0xff]  }
 0x72c   : > { %v2832_v39 = vpop.permute.xlu1 %2831  ;;  %3201 = vmatmul.mubr.bf16.vlgmr.msra.gmra.mrb[48].mxu1 %v2993_v38  ;;  %3387 = vst.msk [vmem:[#allocation3 + $0x8] sm:$0xff] %vm332_vm0, %v3379_v34  ;;  %4585 = vmatpush3.bf16.msra.mxu0 %v4876_v33  ;;  %v4880_v38 = vld [vmem:[%s6511_s7 + $0x18] sm:$0xff]   ;;  %v4900_v54 = vld [vmem:[%s6511_s7 + $0xa8] sm:$0xff]   ;;  %v4901_v31 = vld [vmem:[%s6511_s7 + $0xf0] sm:$0xff]  }
 0x72d   : > { %2852 = vst.msk [vmem:[#allocation3 + $0x80] sm:$0xff] %vm445_vm2, %v2832_v39  ;;  %4586 = vmatprep.subr.bf16.mxu0 %v4877_v35  ;;  %v4881_v39 = vld [vmem:[%s6511_s7 + $0x60] sm:$0xff]   ;;  %v4903_v33 = vld [vmem:[%s6511_s7 + $0xf8] sm:$0xff]  }
 0x72e   : > { %v2674_v40 = vpop.permute.xlu0 %2673  ;;  %v4904_v34 = vld [vmem:[%s6511_s7 + $0xb8] sm:$0xff]  }
 0x72f   : > { %2693 = vst.msk [vmem:[#allocation3 + $0xa0] sm:$0xff] %vm445_vm2, %v2674_v40 }
 0x730   : > { %v2768_v41 = vpop.permute.xlu1 %2767  ;;  %4587 = vmatpush3.bf16.msra.mxu0 %v4878_v36 }
 0x731   : > { %2788 = vst.msk [vmem:[#allocation3 + $0x78] sm:$0xff] %vm543_vm4, %v2768_v41  ;;  %4588 = vmatprep.subr.bf16.mxu0 %v4879_v59 }
 0x732   : > { %v2722_v24 = vpop.permute.xlu0 %2721  ;;  %v2976_v4 = vld [vmem:[#allocation3 + $0x58] sm:$0xff] }
 0x733   : > { %2741 = vst.msk [vmem:[#allocation3 + $0xa0] sm:$0xff] %vm494_vm3, %v2722_v24  ;;  %v6214_v24 = vld [vmem:[%s6510_s6] ss:$0 sm:$0xff] }
 0x734   : > { %v2880_v42 = vpop.permute.xlu1 %2879  ;;  %4589 = vmatpush3.bf16.msra.mxu0 %v4880_v38 }
 0x735   : > { %2900 = vst.msk [vmem:[#allocation3 + $0x80] sm:$0xff] %vm494_vm3, %v2880_v42  ;;  %4590 = vmatprep.subr.bf16.mxu0 %v4881_v39 }
 0x736   : > { %v2834_v43 = vpop.permute.xlu0 %2833 }
 0x737   : > { %2853 = vst.msk [vmem:[#allocation3 + $0xa8] sm:$0xff] %vm445_vm2, %v2834_v43 }
 0x738   : > { %v2928_v44 = vpop.permute.xlu1 %2927  ;;  %v2978_v18 = vld [vmem:[#allocation3 + $0x78] sm:$0xff] }
 0x739   : > { %2948 = vst.msk [vmem:[#allocation3 + $0x80] sm:$0xff] %vm543_vm4, %v2928_v44  ;;  %v2996_v13 = vpack.c.bf16 %v2978_v18, %v2975_v49  ;;  %v4882_v18 = vld [vmem:[%s6511_s7 + $0x20] sm:$0xff]   ;;  %v4884_v49 = vld [vmem:[%s6511_s7 + $0x28] sm:$0xff]  }
 0x73a   : > { %v2770_v28 = vpop.permute.xlu0 %2769  ;;  %4591 = vmatpush3.bf16.msra.mxu0 %v4882_v18 }
 0x73b   : > { %2789 = vst.msk [vmem:[#allocation3 + $0xa0] sm:$0xff] %vm543_vm4, %v2770_v28 }
 0x73c   : > { %v2676_v45 = vpop.permute.xlu1 %2675 }
 0x73d   : > { %2694 = vst.msk [vmem:[#allocation3 + $0xc8] sm:$0xff] %vm445_vm2, %v2676_v45 }
 0x73e   : > { %v2882_v46 = vpop.permute.xlu0 %2881 }
 0x73f   : > { %2901 = vst.msk [vmem:[#allocation3 + $0xa8] sm:$0xff] %vm494_vm3, %v2882_v46 }
 0x740   : > { %v2724_v47 = vpop.permute.xlu1 %2723  ;;  %v2979_v48 = vld [vmem:[#allocation3 + $0x80] sm:$0xff] }
 0x741   : > { %2742 = vst.msk [vmem:[#allocation3 + $0xc8] sm:$0xff] %vm494_vm3, %v2724_v47  ;;  %v2997_v7 = vpack.c.bf16 %v2979_v48, %v2976_v4  ;;  %v4883_v47 = vld [vmem:[%s6511_s7 + $0x68] sm:$0xff]  }
 0x742   : > { %v2930_v30 = vpop.permute.xlu0 %2929  ;;  %v2981_v2 = vld [vmem:[#allocation3 + $0xa0] sm:$0xff]  ;;  %4592 = vmatprep.subr.bf16.mxu0 %v4883_v47 }
 0x743   : > { %2949 = vst.msk [vmem:[#allocation3 + $0xa8] sm:$0xff] %vm543_vm4, %v2930_v30  ;;  %3208 = vmatprep.mubr.bf16.mxu1 %v2997_v7  ;;  %4593 = vmatpush3.bf16.msra.mxu0 %v4884_v49 }
 0x744   : > { %v2836_v9 = vpop.permute.xlu1 %2835  ;;  %3209 = vmatmul.mubr.bf16.gmra.mrb[52].mxu1 %v2996_v13  ;;  %v4885_v13 = vld [vmem:[%s6511_s7 + $0x70] sm:$0xff]  }
 0x745   : > { %2854 = vst.msk [vmem:[#allocation3 + $0xd0] sm:$0xff] %vm445_vm2, %v2836_v9  ;;  %v4886_v9 = vld [vmem:[%s6511_s7 + $0xc0] sm:$0xff]   ;;  %4594 = vmatprep.subr.bf16.mxu0 %v4885_v13 }
 0x746   : > { %v2678_v50 = vpop.permute.xlu0 %2677  ;;  %4622 = vmatprep.subr.bf16.mxu1 %v4886_v9 }
 0x747   : > { %2695 = vst.msk [vmem:[#allocation3 + $0xf0] sm:$0xff] %vm445_vm2, %v2678_v50 }
 0x748   : > { %v2772_v27 = vpop.permute.xlu1 %2771 }
 0x749   : > { %2790 = vst.msk [vmem:[#allocation3 + $0xc8] sm:$0xff] %vm543_vm4, %v2772_v27  ;;  %v4887_v27 = vld [vmem:[%s6511_s7 + $0x30] sm:$0xff]  }
 0x74a   : > { %v2726_v37 = vpop.permute.xlu0 %2725  ;;  %v2982_v63 = vld [vmem:[#allocation3 + $0xa8] sm:$0xff]  ;;  %4595 = vmatpush3.bf16.msra.mxu0 %v4887_v27 }
 0x74b   : > { %2743 = vst.msk [vmem:[#allocation3 + $0xf0] sm:$0xff] %vm494_vm3, %v2726_v37  ;;  %v4888_v37 = vld [vmem:[%s6511_s7 + $0x80] sm:$0xff]  }
 0x74c   : > { %v2884_v14 = vpop.permute.xlu1 %2883  ;;  %4623 = vmatpush3.bf16.msra.mxu1 %v4888_v37 }
 0x74d   : > { %2902 = vst.msk [vmem:[#allocation3 + $0xd0] sm:$0xff] %vm494_vm3, %v2884_v14  ;;  %v4889_v14 = vld [vmem:[%s6511_s7 + $0x78] sm:$0xff]  }
 0x74e   : > { %v2838_v29 = vpop.permute.xlu0 %2837  ;;  %4596 = vmatprep.subr.bf16.mxu0 %v4889_v14 }
 0x74f   : > { %2855 = vst.msk [vmem:[#allocation3 + $0xf8] sm:$0xff] %vm445_vm2, %v2838_v29  ;;  %v4890_v29 = vld [vmem:[%s6511_s7 + $0xc8] sm:$0xff]  }
 0x750   : > { %v2932_v51 = vpop.permute.xlu1 %2931  ;;  %v2984_v60 = vld [vmem:[#allocation3 + $0xc8] sm:$0xff]  ;;  %4624 = vmatprep.subr.bf16.mxu1 %v4890_v29 }
 0x751   : > { %2950 = vst.msk [vmem:[#allocation3 + $0xd0] sm:$0xff] %vm543_vm4, %v2932_v51  ;;  %v2999_v5 = vpack.c.bf16 %v2984_v60, %v2981_v2  ;;  %v4891_v51 = vld [vmem:[%s6511_s7 + $0x38] sm:$0xff]  }
 0x752   : > { %v2886_v55 = vpop.permute.xlu0 %2885  ;;  %4597 = vmatpush3.bf16.msra.mxu0 %v4891_v51  ;;  %v4895_v2 = vld [vmem:[%s6511_s7 + $0xd8] sm:$0xff]  }
 0x753   : > { %2903 = vst.msk [vmem:[#allocation3 + $0xf8] sm:$0xff] %vm494_vm3, %v2886_v55  ;;  %v4892_v55 = vld [vmem:[%s6511_s7 + $0x88] sm:$0xff]  }
 0x754   : > { %v2680_v58 = vpop.permute.xlu1 %2679  ;;  %4625 = vmatpush3.bf16.msra.mxu1 %v4892_v55 }
 0x755   : > { %2696 = vst.msk [vmem:[#allocation3 + $0x118] sm:$0xff] %vm445_vm2, %v2680_v58 }
 0x756   : > { %v2934_v56 = vpop.permute.xlu0 %2933 }
 0x757   : > { %2951 = vst.msk [vmem:[#allocation3 + $0xf8] sm:$0xff] %vm543_vm4, %v2934_v56 }
 0x758   : > { %v2728_v62 = vpop.permute.xlu1 %2727  ;;  %v2985_v0 = vld [vmem:[#allocation3 + $0xd0] sm:$0xff] }
 0x759   : > { %2744 = vst.msk [vmem:[#allocation3 + $0x118] sm:$0xff] %vm494_vm3, %v2728_v62  ;;  %v3000_v1 = vpack.c.bf16 %v2985_v0, %v2982_v63  ;;  %v4893_v0 = vld [vmem:[%s6511_s7 + $0xd0] sm:$0xff]  }
 0x75a   : > { %v2774_v61 = vpop.permute.xlu0 %2773  ;;  %4626 = vmatprep.subr.bf16.mxu1 %v4893_v0 }
 0x75b   : > { %2791 = vst.msk [vmem:[#allocation3 + $0xf0] sm:$0xff] %vm543_vm4, %v2774_v61  ;;  %3216 = vmatprep.mubr.bf16.mxu1 %v3000_v1  ;;  %v4894_v1 = vld [vmem:[%s6511_s7 + $0x90] sm:$0xff]  }
 0x75c   : > { %3217 = vmatmul.mubr.bf16.gmra.mrb[56].mxu1 %v2999_v5  ;;  %v2840_v6 = vpop.permute.xlu1 %2839 }
 0x75d   : > { %2856 = vst.msk [vmem:[#allocation3 + $0x120] sm:$0xff] %vm445_vm2, %v2840_v6  ;;  %4627 = vmatpush3.bf16.msra.mxu1 %v4894_v1  ;;  %v4896_v6 = vld [vmem:[%s6511_s7 + $0x98] sm:$0xff]  }
 0x75e   : > { %2904 = vst.msk [vmem:[#allocation3 + $0x120] sm:$0xff] %vm494_vm3, %v6115_v11  ;;  %v2988_v15 = vld [vmem:[#allocation3 + $0xf8] sm:$0xff]  ;;  %4628 = vmatprep.subr.bf16.mxu1 %v4895_v2 }
 0x75f   : > { %2952 = vst.msk [vmem:[#allocation3 + $0x120] sm:$0xff] %vm543_vm4, %v6117_v12 }
 0x760   : > { %v2776_v8 = vpop.permute.xlu1 %2775 }
 0x761   : > { %2792 = vst.msk [vmem:[#allocation3 + $0x118] sm:$0xff] %vm543_vm4, %v2776_v8  ;;  %4629 = vmatpush3.bf16.msra.mxu1 %v4896_v6  ;;  %v3530_v6 = vld [vmem:[#allocation2 + $0xe0] sm:$0xff] }
 0x762   : > { %v2987_v25 = vld [vmem:[#allocation3 + $0xf0] sm:$0xff] }
 0x766   : > { %v2991_v16 = vld [vmem:[#allocation3 + $0x120] sm:$0xff] }
 0x767   : > { %v3003_v21 = vpack.c.bf16 %v2991_v16, %v2988_v15  ;;  %v4897_v15 = vld [vmem:[%s6511_s7 + $0xe0] sm:$0xff]  }
 0x768   : > { %v2990_v17 = vld [vmem:[#allocation3 + $0x118] sm:$0xff]  ;;  %4630 = vmatprep.subr.bf16.mxu1 %v4897_v15 }
 0x769   : > { %3224 = vmatprep.mubr.bf16.mxu1 %v3003_v21  ;;  %v3002_v3 = vpack.c.bf16 %v2990_v17, %v2987_v25  ;;  %4631 = vmatpush3.bf16.msra.mxu1 %v4898_v57 }
 0x76b   : > { %3225 = vmatmul.mubr.bf16.gmra.mrb[60].mxu1 %v3002_v3 }
 0x785   : > { %v3347_v40 = vpop.permute.xlu0 %3346 }
 0x786   : > { %3371 = vst.msk [vmem:[#allocation3] sm:$0xff] %vm3370_vm6, %v3347_v40 }
 0x79b   : > { %v6168_v32 = vpop.f32.mrb[40].mxu0 }
 0x79c   : > { %v3267_v11 = vpop.f32.mrb[41].mxu0 }
 0x79d   : > { %v6170_v19 = vpop.f32.mrb[42].mxu0 }
 0x79e   : > { %v3270_v12 = vpop.f32.mrb[43].mxu0 }
 0x7a5   : > { %v6172_v10 = vpop.f32.mrb[44].mxu0 }
 0x7a6   : > { %v6174_v20 = vpop.f32.mrb[45].mxu0 }
 0x7a7   : > { %v6176_v22 = vpop.f32.mrb[46].mxu0 }
 0x7a8   : > { %v6178_v23 = vpop.f32.mrb[47].mxu0 }
 0x7ff   : > { %v4552_v41 = vpop.f32.mrb[48].mxu1 }
 0x800   : > { %v4553_v42 = vpop.f32.mrb[49].mxu1 }
 0x801   : > { %v4554_v43 = vadd.f32 %v4553_v42, %v4552_v41  ;;  %v4555_v44 = vpop.f32.mrb[50].mxu1 }
 0x802   : > { %v4556_v28 = vpop.f32.mrb[51].mxu1 }
 0x803   : > { %v3203_v45 = vadd.f32 %v4554_v43, %v6214_v24  ;;  %v4557_v46 = vadd.f32 %v4556_v28, %v4555_v44 }
 0x805   : > { %v3268_v30 = vadd.f32 %v3267_v11, %v3203_v45  ;;  %v3206_v4 = vadd.f32 %v4557_v46, %v6214_v24  ;;  %v4899_v11 = vld [vmem:[%s6511_s7 + $0xe8] sm:$0xff]  }
 0x806   : > { %4632 = vmatprep.subr.bf16.mxu1 %v4899_v11 }
 0x807   : > { %v3298_v48 = vmax.f32 %v3268_v30, 0.0  ;;  %v3271_v7 = vadd.f32 %v3270_v12, %v3206_v4  ;;  %4633 = vmatpush3.bf16.msra.mxu1 %v4900_v54  ;;  %v4906_v54 = vld [vmem:[%s6511_s7 + $0x108] sm:$0xff]  }
 0x808   : > { %4634 = vmatprep.subr.bf16.mxu1 %v4901_v31  ;;  %v4907_v31 = vld [vmem:[%s6511_s7 + $0x110] sm:$0xff]  }
 0x809   : > { %3306 = vst.msk [vmem:[#allocation2 + $0x20] sm:$0xff] %vm332_vm0, %v3298_v48  ;;  %v3299_v50 = vmax.f32 %v3271_v7, 0.0  ;;  %v6337_v7 = vld [vmem:[%s6511_s7 + $0x100] sm:$0xff]  }
 0x80a   : > { %4738 = vmatprep.subr.bf16.mxu0 %v6337_v7 }
 0x80b   : > { %3307 = vst.msk [vmem:[#allocation2 + $0x38] sm:$0xff] %vm332_vm0, %v3299_v50 }
 0x810   : > { %v3395_v56 = vld [vmem:[#allocation2 + $0x1f] sm:$0xff] }
 0x811   : > { %v3331_v58 = vld [vmem:[#allocation2 + $0x20] sm:$0xff]  ;;  %3411 = vrot.lane.b32.xlu0 %v3395_v56, %s4983_s25  ;;  %3323 = vst.msk [vmem:[#allocation3 + $0x28] sm:$0xff] %vm332_vm0, %v3395_v56 }
 0x812   : > { %v3459_v60 = vld [vmem:[#allocation2 + $0x21] sm:$0xff]  ;;  %3348 = vrot.lane.b32.xlu1 %v3331_v58, %s4983_s25  ;;  %3451 = vst.msk [vmem:[#allocation3 + $0x10] sm:$0xff] %vm332_vm0, %v3331_v58  ;;  %v3396_v61 = vld [vmem:[#allocation2 + $0x37] sm:$0xff] }
 0x813   : > { %3388 = vst.msk [vmem:[#allocation3 + $0x30] sm:$0xff] %vm332_vm0, %v3459_v60  ;;  %v3332_v62 = vld [vmem:[#allocation2 + $0x38] sm:$0xff]  ;;  %3324 = vst.msk [vmem:[#allocation3 + $0x50] sm:$0xff] %vm332_vm0, %v3396_v61 }
 0x814   : > { %v3460_v63 = vld [vmem:[#allocation2 + $0x39] sm:$0xff]  ;;  %3452 = vst.msk [vmem:[#allocation3 + $0x38] sm:$0xff] %vm332_vm0, %v3332_v62  ;;  %3515 = vst.msk [vmem:[#allocation3 + $0x18] sm:$0xff] %vm332_vm0, %v3396_v61 }
 0x815   : > { %3389 = vst.msk [vmem:[#allocation3 + $0x58] sm:$0xff] %vm332_vm0, %v3460_v63  ;;  %3579 = vst.msk [vmem:[#allocation3 + $0x20] sm:$0xff] %vm332_vm0, %v3460_v63  ;;  %3475 = vrot.lane.b32.xlu0 %v3459_v60, %s4983_s25 }
 0x816   : > { %3413 = vrot.lane.b32.xlu1 %v3396_v61, %s4983_s25 }
 0x817   : > { %v4558_v5 = vpop.f32.mrb[52].mxu1 }
 0x818   : > { %v4559_v8 = vpop.f32.mrb[53].mxu1 }
 0x819   : > { %v4560_v16 = vadd.f32 %v4559_v8, %v4558_v5  ;;  %v4561_v21 = vpop.f32.mrb[54].mxu1  ;;  %3350 = vrot.lane.b32.xlu0 %v3332_v62, %s4983_s25  ;;  %v3514_v5 = vld [vmem:[#allocation2 + $0xdf] sm:$0xff] }
 0x81a   : > { %3477 = vrot.lane.b32.xlu1 %v3460_v63, %s4983_s25  ;;  %v4562_v25 = vpop.f32.mrb[55].mxu1  ;;  %3522 = vst.msk [vmem:[#allocation3 + $0x130] sm:$0xff] %vm332_vm0, %v3514_v5 }
 0x81b   : > { %v3211_v17 = vadd.f32 %v4560_v16, %v6214_v24  ;;  %v4563_v3 = vadd.f32 %v4562_v25, %v4561_v21 }
 0x81d   : > { %v3276_v12 = vadd.f32 %v6168_v32, %v3211_v17  ;;  %v3214_v26 = vadd.f32 %v4563_v3, %v6214_v24  ;;  %3539 = vrot.lane.b32.xlu0 %v3332_v62, %s4983_s25  ;;  %v3587_v3 = vld [vmem:[#allocation3] sm:$0xff] }
 0x81f   : > { %v3300_v52 = vmax.f32 %v3276_v12, 0.0  ;;  %v3279_v53 = vadd.f32 %v6170_v19, %v3214_v26  ;;  %v4902_v19 = vld [vmem:[%s6511_s7 + $0xb0] sm:$0xff]  }
 0x820   : > { %4635 = vmatpush3.bf16.msra.mxu1 %v4902_v19 }
 0x821   : > { %3308 = vst.msk [vmem:[#allocation2 + $0x50] sm:$0xff] %vm332_vm0, %v3300_v52  ;;  %v3301_v32 = vmax.f32 %v3279_v53, 0.0  ;;  %4636 = vmatprep.subr.bf16.mxu1 %v4903_v33 }
 0x823   : > { %3309 = vst.msk [vmem:[#allocation2 + $0x68] sm:$0xff] %vm332_vm0, %v3301_v32  ;;  %v4908_v32 = vld [vmem:[%s6511_s7 + $0x118] sm:$0xff]  }
 0x824   : > { %4637 = vmatpush3.bf16.msra.mxu1 %v4904_v34 }
 0x828   : > { %v3397_v35 = vld [vmem:[#allocation2 + $0x4f] sm:$0xff] }
 0x829   : > { %v3333_v36 = vld [vmem:[#allocation2 + $0x50] sm:$0xff]  ;;  %3415 = vrot.lane.b32.xlu0 %v3397_v35, %s4983_s25  ;;  %3325 = vst.msk [vmem:[#allocation3 + $0x78] sm:$0xff] %vm332_vm0, %v3397_v35  ;;  %3516 = vst.msk [vmem:[#allocation3 + $0x40] sm:$0xff] %vm332_vm0, %v3397_v35 }
 0x82a   : > { %v3461_v59 = vld [vmem:[#allocation2 + $0x51] sm:$0xff]  ;;  %3352 = vrot.lane.b32.xlu1 %v3333_v36, %s4983_s25  ;;  %3453 = vst.msk [vmem:[#allocation3 + $0x60] sm:$0xff] %vm332_vm0, %v3333_v36  ;;  %v3334_v38 = vld [vmem:[#allocation2 + $0x68] sm:$0xff] }
 0x82b   : > { %3390 = vst.msk [vmem:[#allocation3 + $0x80] sm:$0xff] %vm332_vm0, %v3461_v59  ;;  %3580 = vst.msk [vmem:[#allocation3 + $0x48] sm:$0xff] %vm332_vm0, %v3461_v59  ;;  %v3398_v39 = vld [vmem:[#allocation2 + $0x67] sm:$0xff] }
 0x82c   : > { %v3462_v40 = vld [vmem:[#allocation2 + $0x69] sm:$0xff]  ;;  %3326 = vst.msk [vmem:[#allocation3 + $0xa0] sm:$0xff] %vm332_vm0, %v3398_v39  ;;  %3517 = vst.msk [vmem:[#allocation3 + $0x68] sm:$0xff] %vm332_vm0, %v3398_v39 }
 0x82d   : > { %3454 = vst.msk [vmem:[#allocation3 + $0x88] sm:$0xff] %vm332_vm0, %v3334_v38  ;;  %3391 = vst.msk [vmem:[#allocation3 + $0xa8] sm:$0xff] %vm332_vm0, %v3462_v40  ;;  %3479 = vrot.lane.b32.xlu0 %v3461_v59, %s4983_s25 }
 0x82e   : > { %3581 = vst.msk [vmem:[#allocation3 + $0x70] sm:$0xff] %vm332_vm0, %v3462_v40  ;;  %3541 = vrot.lane.b32.xlu1 %v3333_v36, %s4983_s25 }
 0x82f   : > { %v4564_v41 = vpop.f32.mrb[56].mxu1 }
 0x830   : > { %v4565_v42 = vpop.f32.mrb[57].mxu1 }
 0x831   : > { %v4566_v43 = vadd.f32 %v4565_v42, %v4564_v41  ;;  %v4567_v44 = vpop.f32.mrb[58].mxu1  ;;  %3354 = vrot.lane.b32.xlu0 %v3334_v38, %s4983_s25 }
 0x832   : > { %3417 = vrot.lane.b32.xlu1 %v3398_v39, %s4983_s25  ;;  %v4568_v28 = vpop.f32.mrb[59].mxu1 }
 0x833   : > { %v3219_v45 = vadd.f32 %v4566_v43, %v6214_v24  ;;  %v4569_v46 = vadd.f32 %v4568_v28, %v4567_v44 }
 0x835   : > { %v3284_v18 = vadd.f32 %v6174_v20, %v3219_v45  ;;  %v3222_v47 = vadd.f32 %v4569_v46, %v6214_v24  ;;  %3543 = vrot.lane.b32.xlu0 %v3334_v38, %s4983_s25 }
 0x836   : > { %3481 = vrot.lane.b32.xlu1 %v3462_v40, %s4983_s25 }
 0x837   : > { %v3302_v30 = vmax.f32 %v3284_v18, 0.0  ;;  %v3287_v4 = vadd.f32 %v6178_v23, %v3222_v47 }
 0x839   : > { %3310 = vst.msk [vmem:[#allocation2 + $0x80] sm:$0xff] %vm332_vm0, %v3302_v30  ;;  %v3303_v48 = vmax.f32 %v3287_v4, 0.0 }
 0x83b   : > { %3311 = vst.msk [vmem:[#allocation2 + $0x98] sm:$0xff] %vm332_vm0, %v3303_v48 }
 0x83e   : > { %v4570_v20 = vpop.f32.mrb[60].mxu1 }
 0x83f   : > { %v4571_v49 = vpop.f32.mrb[61].mxu1 }
 0x840   : > { %v4572_v13 = vadd.f32 %v4571_v49, %v4570_v20  ;;  %v4573_v9 = vpop.f32.mrb[62].mxu1  ;;  %v3399_v50 = vld [vmem:[#allocation2 + $0x7f] sm:$0xff] }
 0x841   : > { %v3335_v27 = vld [vmem:[#allocation2 + $0x80] sm:$0xff]  ;;  %3419 = vrot.lane.b32.xlu0 %v3399_v50, %s4983_s25  ;;  %v4574_v23 = vpop.f32.mrb[63].mxu1  ;;  %3327 = vst.msk [vmem:[#allocation3 + $0xc8] sm:$0xff] %vm332_vm0, %v3399_v50  ;;  %3518 = vst.msk [vmem:[#allocation3 + $0x90] sm:$0xff] %vm332_vm0, %v3399_v50 }
 0x842   : > { %v3463_v37 = vld [vmem:[#allocation2 + $0x81] sm:$0xff]  ;;  %3356 = vrot.lane.b32.xlu1 %v3335_v27, %s4983_s25  ;;  %3455 = vst.msk [vmem:[#allocation3 + $0xb0] sm:$0xff] %vm332_vm0, %v3335_v27  ;;  %v3227_v14 = vadd.f32 %v4572_v13, %v6214_v24  ;;  %v4575_v29 = vadd.f32 %v4574_v23, %v4573_v9  ;;  %v3336_v51 = vld [vmem:[#allocation2 + $0x98] sm:$0xff] }
 0x843   : > { %3392 = vst.msk [vmem:[#allocation3 + $0xd0] sm:$0xff] %vm332_vm0, %v3463_v37  ;;  %3582 = vst.msk [vmem:[#allocation3 + $0x98] sm:$0xff] %vm332_vm0, %v3463_v37  ;;  %v3400_v55 = vld [vmem:[#allocation2 + $0x97] sm:$0xff] }
 0x844   : > { %v3464_v56 = vld [vmem:[#allocation2 + $0x99] sm:$0xff]  ;;  %3328 = vst.msk [vmem:[#allocation3 + $0xf0] sm:$0xff] %vm332_vm0, %v3400_v55  ;;  %3519 = vst.msk [vmem:[#allocation3 + $0xb8] sm:$0xff] %vm332_vm0, %v3400_v55  ;;  %v3292_v58 = vadd.f32 %v6172_v10, %v3227_v14  ;;  %v3230_v60 = vadd.f32 %v4575_v29, %v6214_v24 }
 0x845   : > { %3393 = vst.msk [vmem:[#allocation3 + $0xf8] sm:$0xff] %vm332_vm0, %v3464_v56  ;;  %3456 = vst.msk [vmem:[#allocation3 + $0xd8] sm:$0xff] %vm332_vm0, %v3336_v51  ;;  %3358 = vrot.lane.b32.xlu0 %v3336_v51, %s4983_s25 }
 0x846   : > { %3583 = vst.msk [vmem:[#allocation3 + $0xc0] sm:$0xff] %vm332_vm0, %v3464_v56  ;;  %3545 = vrot.lane.b32.xlu1 %v3335_v27, %s4983_s25  ;;  %v3304_v61 = vmax.f32 %v3292_v58, 0.0  ;;  %v3295_v62 = vadd.f32 %v6176_v22, %v3230_v60 }
 0x848   : > { %3312 = vst.msk [vmem:[#allocation2 + $0xb0] sm:$0xff] %vm332_vm0, %v3304_v61  ;;  %v3305_v63 = vmax.f32 %v3295_v62, 0.0 }
 0x84a   : > { %3421 = vrot.lane.b32.xlu1 %v3400_v55, %s4983_s25  ;;  %3313 = vst.msk [vmem:[#allocation2 + $0xc8] sm:$0xff] %vm332_vm0, %v3305_v63 }
 0x84f   : > { %v3401_v0 = vld [vmem:[#allocation2 + $0xaf] sm:$0xff] }
 0x850   : > { %v3337_v1 = vld [vmem:[#allocation2 + $0xb0] sm:$0xff]  ;;  %3423 = vrot.lane.b32.xlu0 %v3401_v0, %s4983_s25  ;;  %3329 = vst.msk [vmem:[#allocation3 + $0x118] sm:$0xff] %vm332_vm0, %v3401_v0  ;;  %3520 = vst.msk [vmem:[#allocation3 + $0xe0] sm:$0xff] %vm332_vm0, %v3401_v0 }
 0x851   : > { %v3465_v2 = vld [vmem:[#allocation2 + $0xb1] sm:$0xff]  ;;  %3360 = vrot.lane.b32.xlu1 %v3337_v1, %s4983_s25  ;;  %3457 = vst.msk [vmem:[#allocation3 + $0x100] sm:$0xff] %vm332_vm0, %v3337_v1  ;;  %v3402_v10 = vld [vmem:[#allocation2 + $0xc7] sm:$0xff] }
 0x852   : > { %3394 = vst.msk [vmem:[#allocation3 + $0x120] sm:$0xff] %vm332_vm0, %v3465_v2  ;;  %3584 = vst.msk [vmem:[#allocation3 + $0xe8] sm:$0xff] %vm332_vm0, %v3465_v2  ;;  %v3529_v22 = vld [vmem:[#allocation2 + $0xc8] sm:$0xff] }
 0x853   : > { %v3466_v24 = vld [vmem:[#allocation2 + $0xc9] sm:$0xff]  ;;  %3521 = vst.msk [vmem:[#allocation3 + $0x108] sm:$0xff] %vm332_vm0, %v3402_v10  ;;  %3458 = vst.msk [vmem:[#allocation3 + $0x128] sm:$0xff] %vm332_vm0, %v3529_v22 }
 0x854   : > { %3585 = vst.msk [vmem:[#allocation3 + $0x110] sm:$0xff] %vm332_vm0, %v3466_v24  ;;  %3547 = vrot.lane.b32.xlu0 %v3336_v51, %s4983_s25 }
 0x855   : > { %3425 = vrot.lane.b32.xlu1 %v3402_v10, %s4983_s25 }
 0x858   : > { %3483 = vrot.lane.b32.xlu0 %v3463_v37, %s4983_s25 }
 0x859   : > { %3549 = vrot.lane.b32.xlu1 %v3337_v1, %s4983_s25 }
 0x85c   : > { %3551 = vrot.lane.b32.xlu0 %v3529_v22, %s4983_s25 }
 0x85d   : > { %3485 = vrot.lane.b32.xlu1 %v3464_v56, %s4983_s25 }
 0x860   : > { %3487 = vrot.lane.b32.xlu0 %v3465_v2, %s4983_s25 }
 0x861   : > { %3553 = vrot.lane.b32.xlu1 %v3530_v6, %s4983_s25 }
 0x865   : > { %3489 = vrot.lane.b32.xlu1 %v3466_v24, %s4983_s25  ;;  %s4171_s25 = sshll.u32 %s6440_s24, 4  ;;  %s6457_s25 = int_to_ptr.vmem [resolvable:$true] %s4171_s25 }
 0x866   : > { %s4917_s16 = scalar_lea.vmem %s6457_s25, 1024  ;;  %p4924_p0 = scmp.lt.s32.totalorder %s6457_s25, %s4922_s21 }
 0x867   : > { %p4918_p11 = scmp.ne.s32.totalorder %s6457_s25, %s4917_s16  ;;  %p4925_p1 = scmp.lt.s32.totalorder %s4923_s22, %s4917_s16 }
 0x869   : > { %p4919_p12 = pnand %p4918_p11, %p5076_p5  ;;  %p4926_p2 = por %p4925_p1, %p4924_p0 }
 0x86b   : > { %p4920_p13 = pneg %p4919_p12 }
 0x86d   : > { %p4927_p3 = pnand %p4926_p2, %p4920_p13 }
 0x883   : > { %v3412_v8 = vpop.permute.xlu0 %3411 }
 0x884   : > { %v3349_v15 = vpop.permute.xlu1 %3348  ;;  %3435 = vst.msk [vmem:[#allocation3 + $0x8] sm:$0xff] %vm3370_vm6, %v3412_v8  ;;  %v3596_v8 = vld [vmem:[#allocation3 + $0x48] sm:$0xff] }
 0x885   : > { %3372 = vst.msk [vmem:[#allocation3 + $0x28] sm:$0xff] %vm3370_vm6, %v3349_v15 }
 0x887   : > { %v3476_v16 = vpop.permute.xlu0 %3475 }
 0x888   : > { %v3414_v21 = vpop.permute.xlu1 %3413  ;;  %3499 = vst.msk [vmem:[#allocation3 + $0x10] sm:$0xff] %vm3370_vm6, %v3476_v16 }
 0x889   : > { %3436 = vst.msk [vmem:[#allocation3 + $0x30] sm:$0xff] %vm3370_vm6, %v3414_v21 }
 0x88b   : > { %v3351_v25 = vpop.permute.xlu0 %3350  ;;  %v3588_v12 = vld [vmem:[#allocation3 + $0x8] sm:$0xff] }
 0x88c   : > { %v3478_v17 = vpop.permute.xlu1 %3477  ;;  %3373 = vst.msk [vmem:[#allocation3 + $0x50] sm:$0xff] %vm3370_vm6, %v3351_v25  ;;  %v3592_v57 = vld [vmem:[#allocation3 + $0x28] sm:$0xff]  ;;  %v3591_v25 = vld [vmem:[#allocation3 + $0x20] sm:$0xff] }
 0x88d   : > { %3500 = vst.msk [vmem:[#allocation3 + $0x38] sm:$0xff] %vm3370_vm6, %v3478_v17  ;;  %v3627_v53 = vpack.c.bf16 %v3592_v57, %v3587_v3  ;;  %v3631_v17 = vpack.c.bf16 %v3596_v8, %v3591_v25 }
 0x88f   : > { %v3540_v11 = vpop.permute.xlu0 %3539  ;;  %v3589_v44 = vld [vmem:[#allocation3 + $0x10] sm:$0xff] }
 0x890   : > { %v3593_v26 = vld [vmem:[#allocation3 + $0x30] sm:$0xff]  ;;  %3563 = vst.msk [vmem:[#allocation3 + $0x18] sm:$0xff] %vm3370_vm6, %v3540_v11 }
 0x891   : > { %v3628_v52 = vpack.c.bf16 %v3593_v26, %v3588_v12 }
 0x893   : > { %3986 = vmatprep.mubr.bf16.mxu0 %v3628_v52  ;;  %v3597_v30 = vld [vmem:[#allocation3 + $0x50] sm:$0xff]  ;;  %v3606_v52 = vld [vmem:[#allocation3 + $0x98] sm:$0xff] }
 0x894   : > { %3987 = vmatmul.mubr.bf16.vlgmr.msra.gmra.mrb[48].mxu0 %v3627_v53  ;;  %v3594_v38 = vld [vmem:[#allocation3 + $0x38] sm:$0xff] }
 0x895   : > { %4739 = vmatpush3.bf16.msra.mxu0 %v6337_v7  ;;  %v3629_v28 = vpack.c.bf16 %v3594_v38, %v3589_v44 }
 0x896   : > { %4740 = vmatprep.subr.bf16.mxu0 %v4906_v54 }
 0x897   : > { %v3590_v41 = vld [vmem:[#allocation3 + $0x18] sm:$0xff] }
 0x899   : > { %4741 = vmatpush3.bf16.msra.mxu0 %v4906_v54 }
 0x89a   : > { %4742 = vmatprep.subr.bf16.mxu0 %v4907_v31 }
 0x89b   : > { %v3416_v19 = vpop.permute.xlu0 %3415 }
 0x89c   : > { %v3353_v33 = vpop.permute.xlu1 %3352  ;;  %3437 = vst.msk [vmem:[#allocation3 + $0x58] sm:$0xff] %vm3370_vm6, %v3416_v19 }
 0x89d   : > { %3374 = vst.msk [vmem:[#allocation3 + $0x78] sm:$0xff] %vm3370_vm6, %v3353_v33  ;;  %4743 = vmatpush3.bf16.msra.mxu0 %v4907_v31  ;;  %v3601_v33 = vld [vmem:[#allocation3 + $0x70] sm:$0xff] }
 0x89e   : > { %4744 = vmatprep.subr.bf16.mxu0 %v4908_v32 }
 0x89f   : > { %v3480_v34 = vpop.permute.xlu0 %3479 }
 0x8a0   : > { %v3542_v35 = vpop.permute.xlu1 %3541  ;;  %3501 = vst.msk [vmem:[#allocation3 + $0x60] sm:$0xff] %vm3370_vm6, %v3480_v34  ;;  %v3636_v34 = vpack.c.bf16 %v3606_v52, %v3601_v33 }
 0x8a1   : > { %3564 = vst.msk [vmem:[#allocation3 + $0x40] sm:$0xff] %vm3370_vm6, %v3542_v35  ;;  %4745 = vmatpush3.bf16.msra.mxu0 %v4908_v32  ;;  %v3616_v32 = vld [vmem:[#allocation3 + $0xe8] sm:$0xff]  ;;  %v3611_v35 = vld [vmem:[#allocation3 + $0xc0] sm:$0xff] }
 0x8a3   : > { %v3355_v36 = vpop.permute.xlu0 %3354  ;;  %v3598_v46 = vld [vmem:[#allocation3 + $0x58] sm:$0xff] }
 0x8a4   : > { %v3418_v59 = vpop.permute.xlu1 %3417  ;;  %3375 = vst.msk [vmem:[#allocation3 + $0xa0] sm:$0xff] %vm3370_vm6, %v3355_v36  ;;  %v3602_v45 = vld [vmem:[#allocation3 + $0x78] sm:$0xff]  ;;  %v3641_v36 = vpack.c.bf16 %v3616_v32, %v3611_v35 }
 0x8a5   : > { %3438 = vst.msk [vmem:[#allocation3 + $0x80] sm:$0xff] %vm3370_vm6, %v3418_v59  ;;  %v3632_v4 = vpack.c.bf16 %v3602_v45, %v3597_v30 }
 0x8a7   : > { %v3544_v39 = vpop.permute.xlu0 %3543  ;;  %v3599_v23 = vld [vmem:[#allocation3 + $0x60] sm:$0xff] }
 0x8a8   : > { %v3482_v40 = vpop.permute.xlu1 %3481  ;;  %v3595_v42 = vld [vmem:[#allocation3 + $0x40] sm:$0xff]  ;;  %3565 = vst.msk [vmem:[#allocation3 + $0x68] sm:$0xff] %vm3370_vm6, %v3544_v39 }
 0x8a9   : > { %3502 = vst.msk [vmem:[#allocation3 + $0x88] sm:$0xff] %vm3370_vm6, %v3482_v40  ;;  %v3630_v43 = vpack.c.bf16 %v3595_v42, %v3590_v41  ;;  %v3621_v40 = vld [vmem:[#allocation3 + $0x110] sm:$0xff]  ;;  %v3626_v41 = vld [vmem:[#allocation3 + $0x138] sm:$0xff] }
 0x8ab   : > { %4051 = vmatprep.mubr.bf16.mxu1 %v3630_v43  ;;  %v3607_v61 = vld [vmem:[#allocation3 + $0xa0] sm:$0xff] }
 0x8ac   : > { %4052 = vmatmul.mubr.bf16.vlgmr.msra.gmra.mrb[64].mxu1 %v3629_v28  ;;  %v3603_v18 = vld [vmem:[#allocation3 + $0x80] sm:$0xff]  ;;  %v3646_v28 = vpack.c.bf16 %v3626_v41, %v3621_v40 }
 0x8ad   : > { %v3633_v47 = vpack.c.bf16 %v3603_v18, %v3598_v46 }
 0x8af   : > { %3994 = vmatprep.mubr.bf16.mxu0 %v3633_v47  ;;  %v3600_v50 = vld [vmem:[#allocation3 + $0x68] sm:$0xff] }
 0x8b0   : > { %3995 = vmatmul.mubr.bf16.gmra.mrb[52].mxu0 %v3632_v4  ;;  %v3604_v9 = vld [vmem:[#allocation3 + $0x88] sm:$0xff] }
 0x8b1   : > { %v3634_v14 = vpack.c.bf16 %v3604_v9, %v3599_v23 }
 0x8b3   : > { %v3420_v48 = vpop.permute.xlu0 %3419 }
 0x8b4   : > { %v3357_v7 = vpop.permute.xlu1 %3356  ;;  %3439 = vst.msk [vmem:[#allocation3 + $0xa8] sm:$0xff] %vm3370_vm6, %v3420_v48  ;;  %v6429_v48 = vld [vmem:[%s6512_s8] ss:$0 sm:$0xff] }
 0x8b5   : > { %3376 = vst.msk [vmem:[#allocation3 + $0xc8] sm:$0xff] %vm3370_vm6, %v3357_v7 }
 0x8b7   : > { %v3359_v20 = vpop.permute.xlu0 %3358 }
 0x8b8   : > { %v3546_v49 = vpop.permute.xlu1 %3545  ;;  %3377 = vst.msk [vmem:[#allocation3 + $0xf0] sm:$0xff] %vm3370_vm6, %v3359_v20 }
 0x8b9   : > { %3566 = vst.msk [vmem:[#allocation3 + $0x90] sm:$0xff] %vm3370_vm6, %v3546_v49 }
 0x8bb   : > { %v3608_v56 = vld [vmem:[#allocation3 + $0xa8] sm:$0xff] }
 0x8bc   : > { %v3422_v13 = vpop.permute.xlu1 %3421  ;;  %v3612_v55 = vld [vmem:[#allocation3 + $0xc8] sm:$0xff] }
 0x8bd   : > { %3440 = vst.msk [vmem:[#allocation3 + $0xd0] sm:$0xff] %vm3370_vm6, %v3422_v13  ;;  %v3637_v62 = vpack.c.bf16 %v3612_v55, %v3607_v61 }
 0x8bf   : > { %v3617_v16 = vld [vmem:[#allocation3 + $0xf0] sm:$0xff] }
 0x8c0   : > { %v3605_v27 = vld [vmem:[#allocation3 + $0x90] sm:$0xff] }
 0x8c1   : > { %v3635_v37 = vpack.c.bf16 %v3605_v27, %v3600_v50 }
 0x8c2   : > { %v3424_v29 = vpop.permute.xlu0 %3423 }
 0x8c3   : > { %4059 = vmatprep.mubr.bf16.mxu1 %v3635_v37  ;;  %v3361_v51 = vpop.permute.xlu1 %3360  ;;  %3441 = vst.msk [vmem:[#allocation3 + $0xf8] sm:$0xff] %vm3370_vm6, %v3424_v29 }
 0x8c4   : > { %3378 = vst.msk [vmem:[#allocation3 + $0x118] sm:$0xff] %vm3370_vm6, %v3361_v51  ;;  %4060 = vmatmul.mubr.bf16.gmra.mrb[68].mxu1 %v3634_v14  ;;  %v3613_v58 = vld [vmem:[#allocation3 + $0xd0] sm:$0xff] }
 0x8c5   : > { %v3638_v60 = vpack.c.bf16 %v3613_v58, %v3608_v56 }
 0x8c6   : > { %v3548_v63 = vpop.permute.xlu0 %3547 }
 0x8c7   : > { %4002 = vmatprep.mubr.bf16.mxu0 %v3638_v60  ;;  %v3426_v0 = vpop.permute.xlu1 %3425  ;;  %3567 = vst.msk [vmem:[#allocation3 + $0xb8] sm:$0xff] %vm3370_vm6, %v3548_v63 }
 0x8c8   : > { %3442 = vst.msk [vmem:[#allocation3 + $0x120] sm:$0xff] %vm3370_vm6, %v3426_v0  ;;  %4003 = vmatmul.mubr.bf16.gmra.mrb[56].mxu0 %v3637_v62 }
 0x8ca   : > { %v3484_v1 = vpop.permute.xlu0 %3483  ;;  %v3618_v5 = vld [vmem:[#allocation3 + $0xf8] sm:$0xff] }
 0x8cb   : > { %v3550_v2 = vpop.permute.xlu1 %3549  ;;  %3503 = vst.msk [vmem:[#allocation3 + $0xb0] sm:$0xff] %vm3370_vm6, %v3484_v1  ;;  %v3622_v10 = vld [vmem:[#allocation3 + $0x118] sm:$0xff] }
 0x8cc   : > { %3568 = vst.msk [vmem:[#allocation3 + $0xe0] sm:$0xff] %vm3370_vm6, %v3550_v2  ;;  %v3642_v21 = vpack.c.bf16 %v3622_v10, %v3617_v16 }
 0x8ce   : > { %v3552_v22 = vpop.permute.xlu0 %3551  ;;  %v3610_v11 = vld [vmem:[#allocation3 + $0xb8] sm:$0xff] }
 0x8cf   : > { %v3486_v24 = vpop.permute.xlu1 %3485  ;;  %v3623_v6 = vld [vmem:[#allocation3 + $0x120] sm:$0xff]  ;;  %3569 = vst.msk [vmem:[#allocation3 + $0x108] sm:$0xff] %vm3370_vm6, %v3552_v22 }
 0x8d0   : > { %3504 = vst.msk [vmem:[#allocation3 + $0xd8] sm:$0xff] %vm3370_vm6, %v3486_v24  ;;  %v3643_v15 = vpack.c.bf16 %v3623_v6, %v3618_v5 }
 0x8d2   : > { %4010 = vmatprep.mubr.bf16.mxu0 %v3643_v15  ;;  %v3488_v3 = vpop.permute.xlu0 %3487  ;;  %v3609_v54 = vld [vmem:[#allocation3 + $0xb0] sm:$0xff] }
 0x8d3   : > { %v3554_v57 = vpop.permute.xlu1 %3553  ;;  %4011 = vmatmul.mubr.bf16.gmra.mrb[60].mxu0 %v3642_v21  ;;  %v3615_v12 = vld [vmem:[#allocation3 + $0xe0] sm:$0xff]  ;;  %3505 = vst.msk [vmem:[#allocation3 + $0x100] sm:$0xff] %vm3370_vm6, %v3488_v3 }
 0x8d4   : > { %3570 = vst.msk [vmem:[#allocation3 + $0x130] sm:$0xff] %vm3370_vm6, %v3554_v57  ;;  %4746 = vmatprep.mubr.msk.bf16.mxu0 %vm332_vm0, %v3631_v17  ;;  %v3640_v26 = vpack.c.bf16 %v3615_v12, %v3610_v11 }
 0x8d6   : > { %4067 = vmatprep.mubr.bf16.mxu1 %v3640_v26  ;;  %v3620_v59 = vld [vmem:[#allocation3 + $0x108] sm:$0xff] }
 0x8d7   : > { %v3490_v53 = vpop.permute.xlu1 %3489  ;;  %v3614_v31 = vld [vmem:[#allocation3 + $0xd8] sm:$0xff] }
 0x8d8   : > { %3506 = vst.msk [vmem:[#allocation3 + $0x128] sm:$0xff] %vm3370_vm6, %v3490_v53  ;;  %v3639_v19 = vpack.c.bf16 %v3614_v31, %v3609_v54 }
 0x8da   : > { %4068 = vmatmul.mubr.bf16.gmra.mrb[72].mxu1 %v3639_v19  ;;  %v3619_v42 = vld [vmem:[#allocation3 + $0x100] sm:$0xff] }
 0x8db   : > { %4747 = vmatmul.mubr.msk.bf16.vlgmr.msra.gmra.mrb[64].mxu0 %vm332_vm0, %v3636_v34  ;;  %v3625_v38 = vld [vmem:[#allocation3 + $0x130] sm:$0xff] }
 0x8dc   : > { %4750 = vmatprep.mubr.msk.bf16.mxu0 %vm332_vm0, %v3641_v36  ;;  %v3645_v39 = vpack.c.bf16 %v3625_v38, %v3620_v59 }
 0x8de   : > { %4075 = vmatprep.mubr.bf16.mxu1 %v3645_v39 }
 0x8df   : > { %v3624_v43 = vld [vmem:[#allocation3 + $0x128] sm:$0xff] }
 0x8e0   : > { %v3644_v44 = vpack.c.bf16 %v3624_v43, %v3619_v42 }
 0x8e2   : > { %4076 = vmatmul.mubr.bf16.gmra.mrb[76].mxu1 %v3644_v44 }
 0x8e3   : > { %4751 = vmatmul.mubr.msk.bf16.gmra.mrb[68].mxu0 %vm332_vm0, %v3646_v28 }
 0x967   : > { %v4598_v45 = vpop.f32.mrb[48].mxu0 }
 0x968   : > { %v4599_v46 = vpop.f32.mrb[49].mxu0 }
 0x969   : > { %v4600_v18 = vadd.f32 %v4599_v46, %v4598_v45  ;;  %v4601_v47 = vpop.f32.mrb[50].mxu0 }
 0x96a   : > { %v4602_v30 = vpop.f32.mrb[51].mxu0 }
 0x96b   : > { %v4603_v4 = vadd.f32 %v4602_v30, %v4601_v47  ;;  %v3989_v49 = vadd.f32 %v4600_v18, %v6429_v48 }
 0x96d   : > { %v3992_v27 = vadd.f32 %v4603_v4, %v6429_v48 }
 0x97f   : > { %v4638_v7 = vpop.f32.mrb[64].mxu1 }
 0x980   : > { %v4639_v20 = vpop.f32.mrb[65].mxu1 }
 0x981   : > { %v4640_v13 = vadd.f32 %v4639_v20, %v4638_v7  ;;  %v4641_v9 = vpop.f32.mrb[66].mxu1 }
 0x982   : > { %v4642_v50 = vpop.f32.mrb[67].mxu1 }
 0x983   : > { %v4643_v37 = vadd.f32 %v4642_v50, %v4641_v9  ;;  %v4604_v23 = vpop.f32.mrb[52].mxu0  ;;  %v4054_v14 = vadd.f32 %v4640_v13, %v3989_v49 }
 0x984   : > { %v4605_v29 = vpop.f32.mrb[53].mxu0 }
 0x985   : > { %v4606_v51 = vadd.f32 %v4605_v29, %v4604_v23  ;;  %v4607_v55 = vpop.f32.mrb[54].mxu0  ;;  %v4057_v56 = vadd.f32 %v4643_v37, %v3992_v27 }
 0x986   : > { %v4608_v58 = vpop.f32.mrb[55].mxu0 }
 0x987   : > { %v4609_v60 = vadd.f32 %v4608_v58, %v4607_v55  ;;  %v3997_v63 = vadd.f32 %v4606_v51, %v6429_v48 }
 0x989   : > { %v4000_v10 = vadd.f32 %v4609_v60, %v6429_v48 }
 0x997   : > { %v4644_v61 = vpop.f32.mrb[68].mxu1 }
 0x998   : > { %v4645_v62 = vpop.f32.mrb[69].mxu1 }
 0x999   : > { %v4646_v0 = vadd.f32 %v4645_v62, %v4644_v61  ;;  %v4647_v1 = vpop.f32.mrb[70].mxu1 }
 0x99a   : > { %v4648_v2 = vpop.f32.mrb[71].mxu1 }
 0x99b   : > { %v4649_v22 = vadd.f32 %v4648_v2, %v4647_v1  ;;  %v4610_v24 = vpop.f32.mrb[56].mxu0  ;;  %v4062_v5 = vadd.f32 %v4646_v0, %v3997_v63 }
 0x99c   : > { %v4611_v6 = vpop.f32.mrb[57].mxu0 }
 0x99d   : > { %v4612_v8 = vadd.f32 %v4611_v6, %v4610_v24  ;;  %v4613_v15 = vpop.f32.mrb[58].mxu0  ;;  %v4065_v16 = vadd.f32 %v4649_v22, %v4000_v10 }
 0x99e   : > { %v4614_v21 = vpop.f32.mrb[59].mxu0 }
 0x99f   : > { %v4615_v25 = vadd.f32 %v4614_v21, %v4613_v15  ;;  %v4005_v31 = vadd.f32 %v4612_v8, %v6429_v48 }
 0x9a1   : > { %v4008_v38 = vadd.f32 %v4615_v25, %v6429_v48 }
 0x9a6   : > { %v4616_v17 = vpop.f32.mrb[60].mxu0 }
 0x9a7   : > { %v4617_v3 = vpop.f32.mrb[61].mxu0 }
 0x9a8   : > { %v4618_v57 = vadd.f32 %v4617_v3, %v4616_v17  ;;  %v4619_v11 = vpop.f32.mrb[62].mxu0 }
 0x9a9   : > { %v4620_v12 = vpop.f32.mrb[63].mxu0 }
 0x9aa   : > { %v4621_v26 = vadd.f32 %v4620_v12, %v4619_v11  ;;  %v4013_v18 = vadd.f32 %v4618_v57, %v6429_v48 }
 0x9ac   : > { %v4016_v13 = vadd.f32 %v4621_v26, %v6429_v48 }
 0x9ad   : > { %v4650_v52 = vpop.f32.mrb[72].mxu1 }
 0x9ae   : > { %v4651_v53 = vpop.f32.mrb[73].mxu1  ;;  %v4748_v54 = vpop.f32.mrb[64].mxu0 }
 0x9af   : > { %v4652_v32 = vadd.f32 %v4651_v53, %v4650_v52  ;;  %v4127_v19 = vadd.f32 %v4748_v54, %v4062_v5  ;;  %v4653_v33 = vpop.f32.mrb[74].mxu1  ;;  %v4118_v34 = vpop.f32.mrb[65].mxu0 }
 0x9b0   : > { %v4119_v35 = vadd.f32 %v4118_v34, %v4054_v14  ;;  %v4654_v36 = vpop.f32.mrb[75].mxu1  ;;  %v4749_v59 = vpop.f32.mrb[66].mxu0 }
 0x9b1   : > { %4151 = vst [vmem:[%s6440_s24 + $0x10] sm:$0xff] %v4127_v19  ;;  %v4655_v39 = vadd.f32 %v4654_v36, %v4653_v33  ;;  %v4130_v40 = vadd.f32 %v4749_v59, %v4065_v16  ;;  %v4121_v41 = vpop.f32.mrb[67].mxu0  ;;  %v4070_v42 = vadd.f32 %v4652_v32, %v4005_v31 }
 0x9b2   : > { %4149 = vst [vmem:[%s6440_s24] sm:$0xff] %v4119_v35  ;;  %v4122_v43 = vadd.f32 %v4121_v41, %v4057_v56 }
 0x9b3   : > { %4152 = vst [vmem:[%s6440_s24 + $0x18] sm:$0xff] %v4130_v40  ;;  %v4073_v44 = vadd.f32 %v4655_v39, %v4008_v38 }
 0x9b4   : > { %4150 = vst [vmem:[%s6440_s24 + $0x8] sm:$0xff] %v4122_v43 }
 0x9b5   : > { %v4656_v28 = vpop.f32.mrb[76].mxu1 }
 0x9b6   : > { %v4657_v45 = vpop.f32.mrb[77].mxu1  ;;  %v4752_v46 = vpop.f32.mrb[68].mxu0 }
 0x9b7   : > { %v4658_v47 = vadd.f32 %v4657_v45, %v4656_v28  ;;  %v4659_v30 = vpop.f32.mrb[78].mxu1  ;;  %v4134_v4 = vpop.f32.mrb[69].mxu0 }
 0x9b8   : > { %v4135_v7 = vadd.f32 %v4134_v4, %v4070_v42  ;;  %v4660_v20 = vpop.f32.mrb[79].mxu1  ;;  %v4753_v49 = vpop.f32.mrb[70].mxu0 }
 0x9b9   : > { %v4078_v9 = vadd.f32 %v4658_v47, %v4013_v18  ;;  %v4661_v50 = vadd.f32 %v4660_v20, %v4659_v30  ;;  %v4137_v27 = vpop.f32.mrb[71].mxu0 }
 0x9ba   : > { %4153 = vst [vmem:[%s6440_s24 + $0x20] sm:$0xff] %v4135_v7  ;;  %v4138_v37 = vadd.f32 %v4137_v27, %v4073_v44 }
 0x9bb   : > { %v4143_v23 = vadd.f32 %v4752_v46, %v4078_v9  ;;  %v4081_v14 = vadd.f32 %v4661_v50, %v4016_v13 }
 0x9bc   : > { %4154 = vst [vmem:[%s6440_s24 + $0x28] sm:$0xff] %v4138_v37 }
 0x9bd   : > { %4155 = vst [vmem:[%s6440_s24 + $0x30] sm:$0xff] %v4143_v23  ;;  %v4146_v48 = vadd.f32 %v4753_v49, %v4081_v14 }
 0x9bf   : > { %4156 = vst [vmem:[%s6440_s24 + $0x38] sm:$0xff] %v4146_v48 }
 0x9c0   : > { %4930 = shalt.err (!%p4927_p3)
}
 0x9c1   : > { %s4931_s23 = scalar_lea.hbm %s6455_s29, 1024  ;;  %s4935_s14 = scalar_lea.hbm %s6513_s9, 2048 }
 0x9c2   : > { %p4932_p4 = scmp.ne.s32.totalorder %s6455_s29, %s4931_s23  ;;  %p4936_p9 = scmp.lt.u32.totalorder %s6455_s29, %s6513_s9 }
 0x9c3   : > { %p4937_p10 = scmp.lt.u32.totalorder %s4935_s14, %s4931_s23  ;;  %p4939_p12 = scmp.lt.u32.totalorder %s4931_s23, %s6455_s29 }
 0x9c4   : > { %p4933_p7 = pnand %p4932_p4, %p5076_p5 }
 0x9c5   : > { %p4938_p11 = por %p4937_p10, %p4936_p9 }
 0x9c6   : > { %p4934_p8 = pneg %p4933_p7 }
 0x9c7   : > { %p4940_p13 = por %p4939_p12, %p4938_p11 }
 0x9c9   : > { %p4941_p0 = pnand %p4940_p13, %p4934_p8 }
 0x9cb   : > { %4944 = shalt.err (!%p4941_p0)
}
 0x9cc   : > { %s4986_s16 = smov 128   ;;  %s4987_s17 = smov 8  }
 0x9cd   : > { %4754 = dma.vmem_to_hbm [thread:$0]  (%p5076_p5), %s6457_s25, 1024, %s6455_s29, %s6463_s13, %s4986_s16, %s4986_s16, %s4987_s17  }
 0x9ce PF: > { %p4760_p1 = scmp.ge.s32.totalorder %s4979_s12, 2  ;;  %s4186_s21 = sand.u32 1, %s4967_s30  }
 0x9cf   : > { %s4187_s22 = scalar_lea.sflag [#allocation5], %s4186_s21 }
 0x9d0   : > { %p4757_p2 = pnand %p4760_p1, %p5080_p6 }
 0x9d2   : > { %4962 = dma.done.wait (!%p4757_p2), %s4187_s22, 1024  }
 0x9d3   : > { %4964 = vsyncadd (!%p4757_p2), %s4187_s22, 4294966272  ;;  %p19_p3 = scmp.ge.s32.totalorder %s5063_s15, 4   ;;  %s6516_s30 = smov %s4971_s10 }
 0x9d4   : > { %s6517_s10 = smov %s4975_s11  ;;  %s6518_s11 = smov %s5074_s18 }
 0x9d5   : > { %s6519_s12 = smov %s5063_s15  ;;  %21 = sbr.rel (!%p19_p3) target bundleno = 3 (0x3), region = 93 }
 0x9dc   :  { %4192 = vsyncpa [#allocation5], 1 }
 0x9dd   :  { %4194 = vsyncpa [#allocation5 + $0x1], 1 }

</bundles_post_ra>
